<compile_context>
chip_gen: v5e
topology: v5e:2x2
jax: 0.10.0
libtpu: 0.0.40
codegen_flags: <defaults>
</compile_context>

<pallas_src>
import functools
import math

import jax
import jax.numpy as jnp
from jax.experimental import pallas as pl
from jax.experimental.pallas import tpu as pltpu


# ----------------------------------------------------------------------------
# helpers
# ----------------------------------------------------------------------------
def _pick_tile(dim, pref):
    """Use `pref` if it evenly tiles `dim`, otherwise fall back to full dim."""
    return pref if (dim > pref and dim % pref == 0) else dim


def _rotate_half(x, head_dim):
    # concat(-x[:, d/2:], x[:, :d/2]) : lane slice + concat -> VPU/XLU only,
    # keeps the MXU free (replaces the previous R-matrix matmul).
    half = head_dim // 2
    return jnp.concatenate([-x[:, half:], x[:, :half]], axis=-1)


# ----------------------------------------------------------------------------
# Kernel 1: generic tiled matmul  (M/N/K grid, f32 accumulator scratch)
# ----------------------------------------------------------------------------
def _matmul_kernel(x_ref, w_ref, b_ref, o_ref, acc_ref, *, act):
    @pl.when(pl.program_id(2) == 0)
    def _():
        acc_ref[...] = jnp.zeros_like(acc_ref)

    acc_ref[...] += jnp.dot(x_ref[...], w_ref[...],
                            preferred_element_type=jnp.float32)

    @pl.when(pl.program_id(2) == pl.num_programs(2) - 1)
    def _():
        y = acc_ref[...] + b_ref[...].astype(jnp.float32)
        if act == "silu":
            y = y * jax.nn.sigmoid(y)
        elif act == "gelu":
            y = jax.nn.gelu(y)
        o_ref[...] = y.astype(o_ref.dtype)


def pallas_matmul(x, w, b, *, act="none", out_dtype=None,
                  tm=256, tn=256, tk=512):
    """x: (..., K) @ w: (K, N) + b -> (..., N).  bf16 in, f32 accumulate.

    tn=256 fills the 256-wide MXU on v6e/v7x (use tn=128 on v5e); tile sizes
    fall back to full dims when they do not divide (small/toy shapes)."""
    orig = x.shape
    K = orig[-1]
    N = w.shape[1]
    x2 = x.reshape(-1, K)
    M = x2.shape[0]
    out_dtype = out_dtype or x.dtype
    tm, tn, tk = _pick_tile(M, tm), _pick_tile(N, tn), _pick_tile(K, tk)
    out = pl.pallas_call(
        functools.partial(_matmul_kernel, act=act),
        out_shape=jax.ShapeDtypeStruct((M, N), out_dtype),
        grid=(M // tm, N // tn, K // tk),
        in_specs=[
            pl.BlockSpec((tm, tk), lambda i, j, k: (i, k)),
            pl.BlockSpec((tk, tn), lambda i, j, k: (k, j)),
            pl.BlockSpec((1, tn), lambda i, j, k: (0, j)),
        ],
        out_specs=pl.BlockSpec((tm, tn), lambda i, j, k: (i, j)),
        scratch_shapes=[pltpu.VMEM((tm, tn), jnp.float32)],
        compiler_params=pltpu.CompilerParams(
            dimension_semantics=("parallel", "parallel", "arbitrary")),
    )(x2, w, b.reshape(1, N))
    return out.reshape(orig[:-1] + (N,))


# ----------------------------------------------------------------------------
# Kernel 2: fused [LayerNorm / adaLN] -> matmul -> act -> [gate] -> [residual]
#   grid = (B, S-tiles); K is kept whole per block (fits VMEM at DiT widths).
# ----------------------------------------------------------------------------
def _make_fused_linear_kernel(ln, act, epilogue):
    def kernel(*refs):
        it = iter(refs)
        x_ref = next(it)
        sc_ref = sh_ref = None
        if ln == "ada":
            sc_ref = next(it)
            sh_ref = next(it)
        w_ref = next(it)
        b_ref = next(it)
        g_ref = r_ref = None
        if epilogue == "gate_res":
            g_ref = next(it)
        if epilogue in ("res", "gate_res"):
            r_ref = next(it)
        o_ref = next(it)

        xin = x_ref[0]                                        # (tS, K)
        if ln != "none":
            x32 = xin.astype(jnp.float32)
            mu = jnp.mean(x32, axis=-1, keepdims=True)
            var = jnp.mean((x32 - mu) ** 2, axis=-1, keepdims=True)
            xhat = (x32 - mu) * jax.lax.rsqrt(var + 1e-5)
            if ln == "ada":
                xhat = (xhat * (1.0 + sc_ref[0].astype(jnp.float32))
                        + sh_ref[0].astype(jnp.float32))
            xin = xhat.astype(w_ref.dtype)                    # bf16 for the MXU

        y = jnp.dot(xin, w_ref[...], preferred_element_type=jnp.float32)
        y = y + b_ref[...].astype(jnp.float32)
        if act == "gelu":
            y = jax.nn.gelu(y)
        elif act == "silu":
            y = y * jax.nn.sigmoid(y)
        if epilogue == "gate_res":
            y = r_ref[0].astype(jnp.float32) + g_ref[0].astype(jnp.float32) * y
        elif epilogue == "res":
            y = r_ref[0].astype(jnp.float32) + y
        o_ref[0] = y.astype(o_ref.dtype)

    return kernel


def fused_linear(x, w, bias, *, ln="none", scale=None, shift=None, act="none",
                 gate=None, residual=None, out_dtype=None, seq_tile=256):
    """x: (B,S,K) -> (B,S,N) with LN prologue / gate+residual epilogue fused."""
    B, S, K = x.shape
    N = w.shape[1]
    tS = _pick_tile(S, seq_tile)
    out_dtype = out_dtype or x.dtype
    epilogue = ("gate_res" if gate is not None
                else ("res" if residual is not None else "none"))

    in_specs = [pl.BlockSpec((1, tS, K), lambda bi, si: (bi, si, 0))]
    inputs = [x]
    if ln == "ada":
        in_specs += [pl.BlockSpec((1, 1, K), lambda bi, si: (bi, 0, 0)),
                     pl.BlockSpec((1, 1, K), lambda bi, si: (bi, 0, 0))]
        inputs += [scale.reshape(B, 1, K), shift.reshape(B, 1, K)]
    in_specs += [pl.BlockSpec((K, N), lambda bi, si: (0, 0)),
                 pl.BlockSpec((1, N), lambda bi, si: (0, 0))]
    inputs += [w, bias.reshape(1, N)]
    if gate is not None:
        in_specs += [pl.BlockSpec((1, 1, N), lambda bi, si: (bi, 0, 0))]
        inputs += [gate.reshape(B, 1, N)]
    if residual is not None:
        in_specs += [pl.BlockSpec((1, tS, N), lambda bi, si: (bi, si, 0))]
        inputs += [residual]

    return pl.pallas_call(
        _make_fused_linear_kernel(ln, act, epilogue),
        out_shape=jax.ShapeDtypeStruct((B, S, N), out_dtype),
        grid=(B, S // tS),
        in_specs=in_specs,
        out_specs=pl.BlockSpec((1, tS, N), lambda bi, si: (bi, si, 0)),
        compiler_params=pltpu.CompilerParams(
            dimension_semantics=("parallel", "parallel")),
    )(*inputs)


# ----------------------------------------------------------------------------
# Kernel 3: standalone adaLN (used for GlobalAdaLN), tiled over (B, S)
# ----------------------------------------------------------------------------
def _adaln_kernel(x_ref, sc_ref, sh_ref, o_ref):
    x = x_ref[0].astype(jnp.float32)
    mu = jnp.mean(x, axis=-1, keepdims=True)
    var = jnp.mean((x - mu) ** 2, axis=-1, keepdims=True)
    xhat = (x - mu) * jax.lax.rsqrt(var + 1e-5)
    y = xhat * (1.0 + sc_ref[0].astype(jnp.float32)) + sh_ref[0].astype(jnp.float32)
    o_ref[0] = y.astype(o_ref.dtype)


def pallas_adaln(x, scale, shift, *, seq_tile=256, out_dtype=None):
    B, S, D = x.shape
    tS = _pick_tile(S, seq_tile)
    out_dtype = out_dtype or x.dtype
    return pl.pallas_call(
        _adaln_kernel,
        out_shape=jax.ShapeDtypeStruct((B, S, D), out_dtype),
        grid=(B, S // tS),
        in_specs=[
            pl.BlockSpec((1, tS, D), lambda bi, si: (bi, si, 0)),
            pl.BlockSpec((1, 1, D), lambda bi, si: (bi, 0, 0)),
            pl.BlockSpec((1, 1, D), lambda bi, si: (bi, 0, 0)),
        ],
        out_specs=pl.BlockSpec((1, tS, D), lambda bi, si: (bi, si, 0)),
        compiler_params=pltpu.CompilerParams(
            dimension_semantics=("parallel", "parallel")),
    )(x, scale.reshape(B, 1, D), shift.reshape(B, 1, D))


# ----------------------------------------------------------------------------
# Kernel 4: flash-style multi-head attention (optional fused RoPE)
#   grid = (B, KV-tiles); KV axis is an online-softmax reduction ("arbitrary").
#   q/k/v stay lane-dense (full D on the last axis); heads are a static unroll.
# ----------------------------------------------------------------------------
def _flash_attn_kernel(*refs, num_heads, head_dim, scale, use_rope):
    if use_rope:
        (q_ref, k_ref, v_ref, cq_ref, sq_ref, ck_ref, sk_ref,
         o_ref, m_ref, l_ref, acc_ref) = refs
    else:
        q_ref, k_ref, v_ref, o_ref, m_ref, l_ref, acc_ref = refs
        cq_ref = sq_ref = ck_ref = sk_ref = None

    kv_i = pl.program_id(1)

    @pl.when(kv_i == 0)
    def _():
        m_ref[...] = jnp.full_like(m_ref, -jnp.inf)
        l_ref[...] = jnp.zeros_like(l_ref)
        acc_ref[...] = jnp.zeros_like(acc_ref)

    q = q_ref[0]                      # (Sq, D)  bf16
    k = k_ref[0]                      # (tk, D)  bf16
    v = v_ref[0]                      # (tk, D)  bf16
    if use_rope:
        cq, sq = cq_ref[...], sq_ref[...]          # (Sq, Dh) f32
        ck, sk = ck_ref[...], sk_ref[...]          # (tk, Dh) f32

    for h in range(num_heads):                     # static unroll over heads
        lo = h * head_dim
        qh = q[:, lo:lo + head_dim]
        kh = k[:, lo:lo + head_dim]
        vh = v[:, lo:lo + head_dim]
        if use_rope:
            qh32 = qh.astype(jnp.float32)
            kh32 = kh.astype(jnp.float32)
            qh = (qh32 * cq + _rotate_half(qh32, head_dim) * sq).astype(q.dtype)
            kh = (kh32 * ck + _rotate_half(kh32, head_dim) * sk).astype(k.dtype)

        s = jax.lax.dot_general(qh, kh, (((1,), (1,)), ((), ())),
                                preferred_element_type=jnp.float32) * scale
        m_prev = m_ref[h]                          # (Sq, 1)
        l_prev = l_ref[h]
        m_new = jnp.maximum(m_prev, jnp.max(s, axis=-1, keepdims=True))
        alpha = jnp.exp(m_prev - m_new)
        p = jnp.exp(s - m_new)
        l_ref[h] = alpha * l_prev + jnp.sum(p, axis=-1, keepdims=True)
        acc_ref[h] = alpha * acc_ref[h] + jnp.dot(
            p.astype(v.dtype), vh, preferred_element_type=jnp.float32)
        m_ref[h] = m_new

    @pl.when(kv_i == pl.num_programs(1) - 1)
    def _():
        outs = []
        for h in range(num_heads):
            inv_l = pl.reciprocal(l_ref[h], approx=True)   # EUP, off critical path
            outs.append(acc_ref[h] * inv_l)
        # single lane-dense (Sq, D) store
        o_ref[0] = jnp.concatenate(outs, axis=-1).astype(o_ref.dtype)


def pallas_flash_mha(q, k, v, num_heads, rope=None, *, kv_tile=512):
    """q: (B,Sq,D), k/v: (B,Sk,D) -> (B,Sq,D).  No wrapper head transposes."""
    B, Sq, D = q.shape
    Sk = k.shape[1]
    Dh = D // num_heads
    scale = 1.0 / math.sqrt(Dh)
    tk = _pick_tile(Sk, kv_tile)
    use_rope = rope is not None

    in_specs = [
        pl.BlockSpec((1, Sq, D), lambda bi, ki: (bi, 0, 0)),
        pl.BlockSpec((1, tk, D), lambda bi, ki: (bi, ki, 0)),
        pl.BlockSpec((1, tk, D), lambda bi, ki: (bi, ki, 0)),
    ]
    inputs = [q, k, v]
    if use_rope:
        cos, sin = rope                                  # (Sq, Dh) f32 each
        in_specs += [
            pl.BlockSpec((Sq, Dh), lambda bi, ki: (0, 0)),
            pl.BlockSpec((Sq, Dh), lambda bi, ki: (0, 0)),
            pl.BlockSpec((tk, Dh), lambda bi, ki: (ki, 0)),
            pl.BlockSpec((tk, Dh), lambda bi, ki: (ki, 0)),
        ]
        inputs += [cos, sin, cos, sin]

    return pl.pallas_call(
        functools.partial(_flash_attn_kernel, num_heads=num_heads,
                          head_dim=Dh, scale=scale, use_rope=use_rope),
        out_shape=jax.ShapeDtypeStruct((B, Sq, D), q.dtype),
        grid=(B, Sk // tk),
        in_specs=in_specs,
        out_specs=pl.BlockSpec((1, Sq, D), lambda bi, ki: (bi, 0, 0)),
        scratch_shapes=[
            pltpu.VMEM((num_heads, Sq, 1), jnp.float32),   # m (running max)
            pltpu.VMEM((num_heads, Sq, 1), jnp.float32),   # l (running denom)
            pltpu.VMEM((num_heads, Sq, Dh), jnp.float32),  # acc
        ],
        compiler_params=pltpu.CompilerParams(
            dimension_semantics=("parallel", "arbitrary")),
    )(*inputs)


# ----------------------------------------------------------------------------
# Model pieces (tiny conditioning math stays in XLA; hot paths use kernels)
# ----------------------------------------------------------------------------
def rotary_tables(seq_len, dim):
    inv_freq = 1.0 / (10000.0 ** (jnp.arange(0, dim, 2, dtype=jnp.float32) / dim))
    pos = jnp.arange(seq_len, dtype=jnp.float32)
    freqs = jnp.outer(pos, inv_freq)                     # (S, dim/2)
    emb = jnp.concatenate([freqs, freqs], axis=-1)       # (S, dim)
    return jnp.cos(emb), jnp.sin(emb)


def global_ada_ln(x, t_emb, text_emb, p):
    # tiny (B, *) conditioning matmuls: launch-overhead dominated -> plain XLA
    cond = (jnp.dot(jax.nn.silu(t_emb), p["ada_time_w"]) + p["ada_time_b"]
            + jnp.dot(jnp.mean(text_emb.astype(jnp.float32), axis=1),
                      p["ada_text_w"]) + p["ada_text_b"])
    scale, shift = jnp.split(cond, 2, axis=-1)
    return pallas_adaln(x, scale, shift)


def dit_block(x, text_emb, t_emb, rope, num_heads, blk):
    # per-block modulation: (B,time_dim)@(time_dim,6D) is tiny -> plain XLA
    mod = jnp.dot(jax.nn.silu(t_emb), blk["mod_w"]) + blk["mod_b"]    # (B,6D) f32
    (shift_msa, scale_msa, gate_msa,
     shift_mlp, scale_mlp, gate_mlp) = jnp.split(mod, 6, axis=-1)

    # --- self-attention: fused adaLN + packed QKV projection, RoPE in-kernel ---
    qkv = fused_linear(x, blk["wqkv"], blk["bqkv"],
                       ln="ada", scale=scale_msa, shift=shift_msa)    # (B,S,3D)
    q, k, v = jnp.split(qkv, 3, axis=-1)
    attn = pallas_flash_mha(q, k, v, num_heads, rope=rope)
    # fused: out-projection + gate * (.) + residual add
    x = fused_linear(attn, blk["wo"], blk["bo"], gate=gate_msa, residual=x)

    # --- cross-attention on text (plain LN fused into the q projection) ---
    qc = fused_linear(x, blk["cwq"], blk["cbq"], ln="plain")
    kc = pallas_matmul(text_emb, blk["cwk"], blk["cbk"])
    vc = pallas_matmul(text_emb, blk["cwv"], blk["cbv"])
    cattn = pallas_flash_mha(qc, kc, vc, num_heads, rope=None)
    x = fused_linear(cattn, blk["cwo"], blk["cbo"], residual=x)

    # --- MLP: fused adaLN + fc1 + GELU, then fc2 + gate + residual ---
    h = fused_linear(x, blk["mw1"], blk["mb1"],
                     ln="ada", scale=scale_mlp, shift=shift_mlp, act="gelu")
    x = fused_linear(h, blk["mw2"], blk["mb2"], gate=gate_mlp, residual=x)
    return x


def ditto_forward(params, x, text_emb, t, *, num_heads):
    compute_dtype = jnp.bfloat16
    x = x.astype(compute_dtype)
    text_emb = text_emb.astype(compute_dtype)

    # timestep embedding + tiny time MLP: plain XLA (K=time_dim uses ~16 MXU rows)
    t_emb = params["t_embedding"][t]                                   # (B, time_dim)
    t_emb = jax.nn.silu(jnp.dot(t_emb, params["te_w1"]) + params["te_b1"])
    t_emb = jnp.dot(t_emb, params["te_w2"]) + params["te_b2"]

    S = x.shape[1]
    head_dim = x.shape[2] // num_heads
    rope = rotary_tables(S, head_dim)

    x_skip = pallas_matmul(x, params["proj_in_w"], params["proj_in_b"])
    h = global_ada_ln(x, t_emb, text_emb, params)
    for blk in params["blocks"]:
        h = dit_block(h, text_emb, t_emb, rope, num_heads, blk)
    # fused proj_out + skip residual; final output in f32
    return fused_linear(h, params["proj_out_w"], params["proj_out_b"],
                        residual=x_skip, out_dtype=jnp.float32)


# ----------------------------------------------------------------------------
# Deterministic parameter init (synthetic; no checkpoint loading)
# ----------------------------------------------------------------------------
def init_params(key, hidden_dim, num_layers, time_dim, text_dim, diffusion_steps,
                compute_dtype=jnp.bfloat16):
    keys = iter(jax.random.split(key, 8 + 16 * num_layers))
    f32 = jnp.float32

    def dense(fan_in, fan_out, dt):
        w = (0.02 * jax.random.normal(next(keys), (fan_in, fan_out), f32)).astype(dt)
        return w, jnp.zeros((fan_out,), dt)

    p = {}
    # small conditioning params stay f32 (run in XLA)
    p["t_embedding"] = 0.02 * jax.random.normal(
        next(keys), (diffusion_steps, time_dim), f32)
    p["te_w1"], p["te_b1"] = dense(time_dim, time_dim, f32)
    p["te_w2"], p["te_b2"] = dense(time_dim, time_dim, f32)
    p["ada_time_w"], p["ada_time_b"] = dense(time_dim, 2 * hidden_dim, f32)
    p["ada_text_w"], p["ada_text_b"] = dense(text_dim, 2 * hidden_dim, f32)
    # big matrices in bf16 (MXU dtype)
    p["proj_in_w"], p["proj_in_b"] = dense(hidden_dim, hidden_dim, compute_dtype)
    p["proj_out_w"], p["proj_out_b"] = dense(hidden_dim, hidden_dim, compute_dtype)

    blocks = []
    for _ in range(num_layers):
        b = {}
        b["mod_w"], b["mod_b"] = dense(time_dim, 6 * hidden_dim, f32)
        b["wqkv"], b["bqkv"] = dense(hidden_dim, 3 * hidden_dim, compute_dtype)
        b["wo"], b["bo"] = dense(hidden_dim, hidden_dim, compute_dtype)
        b["cwq"], b["cbq"] = dense(hidden_dim, hidden_dim, compute_dtype)
        b["cwk"], b["cbk"] = dense(text_dim, hidden_dim, compute_dtype)
        b["cwv"], b["cbv"] = dense(text_dim, hidden_dim, compute_dtype)
        b["cwo"], b["cbo"] = dense(hidden_dim, hidden_dim, compute_dtype)
        b["mw1"], b["mb1"] = dense(hidden_dim, 4 * hidden_dim, compute_dtype)
        b["mw2"], b["mb2"] = dense(4 * hidden_dim, hidden_dim, compute_dtype)
        blocks.append(b)
    p["blocks"] = blocks
    return p


# ----------------------------------------------------------------------------
if __name__ == "__main__":
    B, SEQ, TXT_SEQ = 2, 8, 8
    HIDDEN, HEADS, TIME_DIM, TEXT_DIM = 32, 4, 16, 32
    LAYERS, STEPS = 2, 50

    key = jax.random.PRNGKey(0)
    kp, kx, ktxt, kt = jax.random.split(key, 4)

    params = init_params(kp, HIDDEN, LAYERS, TIME_DIM, TEXT_DIM, STEPS)
    x = jax.random.normal(kx, (B, SEQ, HIDDEN), jnp.float32)
    text_emb = jax.random.normal(ktxt, (B, TXT_SEQ, TEXT_DIM), jnp.float32)
    t = jax.random.randint(kt, (B,), 0, STEPS, dtype=jnp.int32)

    fwd = jax.jit(functools.partial(ditto_forward, num_heads=HEADS))
    out = jax.block_until_ready(fwd(params, x, text_emb, t))

    assert out.shape == (B, SEQ, HIDDEN), out.shape
    assert bool(jnp.all(jnp.isfinite(out)))
    print("KERNEL_OK")
</pallas_src>

<mosaic_0001>
module attributes {stable_mosaic.version = 11 : i64} {
  func.func @_adaln_kernel(%arg0: i32, %arg1: i32, %arg2: memref<1x8x32xbf16, #tpu.memory_space<vmem>>, %arg3: memref<1x1x32xf32, #tpu.memory_space<vmem>>, %arg4: memref<1x1x32xf32, #tpu.memory_space<vmem>>, %arg5: memref<1x8x32xbf16, #tpu.memory_space<vmem>>) attributes {dimension_semantics = [#tpu.dimension_semantics<parallel>, #tpu.dimension_semantics<parallel>], iteration_bounds = array<i64: 2, 1>, scalar_prefetch = 0 : i64, scratch_operands = 0 : i64, tpu.core_type = #tpu.core_type<tc>, window_params = [{transform_indices = @transform_0, window_bounds = array<i64: 1, 8, 32>}, {transform_indices = @transform_1, window_bounds = array<i64: 1, 1, 32>}, {transform_indices = @transform_2, window_bounds = array<i64: 1, 1, 32>}, {transform_indices = @transform_3, window_bounds = array<i64: 1, 8, 32>}]} {
    %c0 = arith.constant 0 : index
    %c0_0 = arith.constant 0 : index
    %c0_1 = arith.constant 0 : index
    %0 = vector.load %arg2[%c0, %c0_0, %c0_1] : memref<1x8x32xbf16, #tpu.memory_space<vmem>>, vector<1x8x32xbf16>
    %1 = vector.shape_cast %0 : vector<1x8x32xbf16> to vector<8x32xbf16>
    %2 = arith.extf %1 : vector<8x32xbf16> to vector<8x32xf32>
    %cst = arith.constant dense<0.000000e+00> : vector<8xf32>
    %3 = vector.multi_reduction <add>, %2, %cst [1] : vector<8x32xf32> to vector<8xf32>
    %4 = vector.shape_cast %3 : vector<8xf32> to vector<8x1xf32>
    %cst_2 = arith.constant 3.200000e+01 : f32
    %5 = vector.broadcast %cst_2 : f32 to vector<8x1xf32>
    %6 = arith.divf %4, %5 : vector<8x1xf32>
    %7 = vector.broadcast %6 : vector<8x1xf32> to vector<8x32xf32>
    %8 = arith.subf %2, %7 : vector<8x32xf32>
    %9 = arith.mulf %8, %8 : vector<8x32xf32>
    %cst_3 = arith.constant dense<0.000000e+00> : vector<8xf32>
    %10 = vector.multi_reduction <add>, %9, %cst_3 [1] : vector<8x32xf32> to vector<8xf32>
    %11 = vector.shape_cast %10 : vector<8xf32> to vector<8x1xf32>
    %cst_4 = arith.constant 3.200000e+01 : f32
    %12 = vector.broadcast %cst_4 : f32 to vector<8x1xf32>
    %13 = arith.divf %11, %12 : vector<8x1xf32>
    %14 = vector.broadcast %6 : vector<8x1xf32> to vector<8x32xf32>
    %15 = arith.subf %2, %14 : vector<8x32xf32>
    %cst_5 = arith.constant 9.99999974E-6 : f32
    %16 = vector.broadcast %cst_5 : f32 to vector<8x1xf32>
    %17 = arith.addf %13, %16 : vector<8x1xf32>
    %18 = math.rsqrt %17 : vector<8x1xf32>
    %19 = vector.broadcast %18 : vector<8x1xf32> to vector<8x32xf32>
    %20 = arith.mulf %15, %19 : vector<8x32xf32>
    %c0_6 = arith.constant 0 : index
    %c0_7 = arith.constant 0 : index
    %c0_8 = arith.constant 0 : index
    %21 = vector.load %arg3[%c0_6, %c0_7, %c0_8] : memref<1x1x32xf32, #tpu.memory_space<vmem>>, vector<1x1x32xf32>
    %22 = vector.shape_cast %21 : vector<1x1x32xf32> to vector<1x32xf32>
    %cst_9 = arith.constant 1.000000e+00 : f32
    %23 = vector.broadcast %cst_9 : f32 to vector<1x32xf32>
    %24 = arith.addf %23, %22 : vector<1x32xf32>
    %25 = vector.broadcast %24 : vector<1x32xf32> to vector<8x32xf32>
    %26 = arith.mulf %20, %25 : vector<8x32xf32>
    %c0_10 = arith.constant 0 : index
    %c0_11 = arith.constant 0 : index
    %c0_12 = arith.constant 0 : index
    %27 = vector.load %arg4[%c0_10, %c0_11, %c0_12] : memref<1x1x32xf32, #tpu.memory_space<vmem>>, vector<1x1x32xf32>
    %28 = vector.shape_cast %27 : vector<1x1x32xf32> to vector<1x32xf32>
    %29 = vector.broadcast %28 : vector<1x32xf32> to vector<8x32xf32>
    %30 = arith.addf %26, %29 : vector<8x32xf32>
    %31 = arith.truncf %30 : vector<8x32xf32> to vector<8x32xbf16>
    %c0_13 = arith.constant 0 : index
    %c0_14 = arith.constant 0 : index
    %c0_15 = arith.constant 0 : index
    %32 = vector.load %arg5[%c0_13, %c0_14, %c0_15] : memref<1x8x32xbf16, #tpu.memory_space<vmem>>, vector<1x8x32xbf16>
    %33 = vector.shape_cast %32 : vector<1x8x32xbf16> to vector<8x32xbf16>
    %34 = vector.shape_cast %31 : vector<8x32xbf16> to vector<1x8x32xbf16>
    tpu.vector_store %arg5[%c0_13, %c0_14, %c0_15], %34 {strides = array<i32>} : memref<1x8x32xbf16, #tpu.memory_space<vmem>>, vector<1x8x32xbf16>,
    return
  }
  func.func @transform_0(%arg0: i32, %arg1: i32) -> (i32, i32, i32) {
    %c0_i32 = arith.constant 0 : i32
    %c0_i32_0 = arith.constant 0 : i32
    return %arg0, %arg1, %c0_i32 : i32, i32, i32
  }
  func.func @transform_1(%arg0: i32, %arg1: i32) -> (i32, i32, i32) {
    %c0_i32 = arith.constant 0 : i32
    %c0_i32_0 = arith.constant 0 : i32
    %c0_i32_1 = arith.constant 0 : i32
    return %arg0, %c0_i32, %c0_i32_0 : i32, i32, i32
  }
  func.func @transform_2(%arg0: i32, %arg1: i32) -> (i32, i32, i32) {
    %c0_i32 = arith.constant 0 : i32
    %c0_i32_0 = arith.constant 0 : i32
    %c0_i32_1 = arith.constant 0 : i32
    return %arg0, %c0_i32, %c0_i32_0 : i32, i32, i32
  }
  func.func @transform_3(%arg0: i32, %arg1: i32) -> (i32, i32, i32) {
    %c0_i32 = arith.constant 0 : i32
    %c0_i32_0 = arith.constant 0 : i32
    return %arg0, %arg1, %c0_i32 : i32, i32, i32
  }
}

module attributes {stable_mosaic.version = 11 : i64} {
  func.func @kernel(%arg0: i32, %arg1: i32, %arg2: memref<1x8x32xbf16, #tpu.memory_space<vmem>>, %arg3: memref<1x1x32xf32, #tpu.memory_space<vmem>>, %arg4: memref<1x1x32xf32, #tpu.memory_space<vmem>>, %arg5: memref<32x96xbf16, #tpu.memory_space<vmem>>, %arg6: memref<1x96xbf16, #tpu.memory_space<vmem>>, %arg7: memref<1x8x96xbf16, #tpu.memory_space<vmem>>) attributes {dimension_semantics = [#tpu.dimension_semantics<parallel>, #tpu.dimension_semantics<parallel>], iteration_bounds = array<i64: 2, 1>, scalar_prefetch = 0 : i64, scratch_operands = 0 : i64, tpu.core_type = #tpu.core_type<tc>, window_params = [{transform_indices = @transform_0, window_bounds = array<i64: 1, 8, 32>}, {transform_indices = @transform_1, window_bounds = array<i64: 1, 1, 32>}, {transform_indices = @transform_2, window_bounds = array<i64: 1, 1, 32>}, {pipeline_mode = #tpu.pipeline_mode<synchronous>, transform_indices = @transform_3, window_bounds = array<i64: 32, 96>}, {pipeline_mode = #tpu.pipeline_mode<synchronous>, transform_indices = @transform_4, window_bounds = array<i64: 1, 96>}, {transform_indices = @transform_5, window_bounds = array<i64: 1, 8, 96>}]} {
    %c0 = arith.constant 0 : index
    %c0_0 = arith.constant 0 : index
    %c0_1 = arith.constant 0 : index
    %0 = vector.load %arg2[%c0, %c0_0, %c0_1] : memref<1x8x32xbf16, #tpu.memory_space<vmem>>, vector<1x8x32xbf16>
    %1 = vector.shape_cast %0 : vector<1x8x32xbf16> to vector<8x32xbf16>
    %2 = arith.extf %1 : vector<8x32xbf16> to vector<8x32xf32>
    %cst = arith.constant dense<0.000000e+00> : vector<8xf32>
    %3 = vector.multi_reduction <add>, %2, %cst [1] : vector<8x32xf32> to vector<8xf32>
    %4 = vector.shape_cast %3 : vector<8xf32> to vector<8x1xf32>
    %cst_2 = arith.constant 3.200000e+01 : f32
    %5 = vector.broadcast %cst_2 : f32 to vector<8x1xf32>
    %6 = arith.divf %4, %5 : vector<8x1xf32>
    %7 = vector.broadcast %6 : vector<8x1xf32> to vector<8x32xf32>
    %8 = arith.subf %2, %7 : vector<8x32xf32>
    %9 = arith.mulf %8, %8 : vector<8x32xf32>
    %cst_3 = arith.constant dense<0.000000e+00> : vector<8xf32>
    %10 = vector.multi_reduction <add>, %9, %cst_3 [1] : vector<8x32xf32> to vector<8xf32>
    %11 = vector.shape_cast %10 : vector<8xf32> to vector<8x1xf32>
    %cst_4 = arith.constant 3.200000e+01 : f32
    %12 = vector.broadcast %cst_4 : f32 to vector<8x1xf32>
    %13 = arith.divf %11, %12 : vector<8x1xf32>
    %14 = vector.broadcast %6 : vector<8x1xf32> to vector<8x32xf32>
    %15 = arith.subf %2, %14 : vector<8x32xf32>
    %cst_5 = arith.constant 9.99999974E-6 : f32
    %16 = vector.broadcast %cst_5 : f32 to vector<8x1xf32>
    %17 = arith.addf %13, %16 : vector<8x1xf32>
    %18 = math.rsqrt %17 : vector<8x1xf32>
    %19 = vector.broadcast %18 : vector<8x1xf32> to vector<8x32xf32>
    %20 = arith.mulf %15, %19 : vector<8x32xf32>
    %c0_6 = arith.constant 0 : index
    %c0_7 = arith.constant 0 : index
    %c0_8 = arith.constant 0 : index
    %21 = vector.load %arg3[%c0_6, %c0_7, %c0_8] : memref<1x1x32xf32, #tpu.memory_space<vmem>>, vector<1x1x32xf32>
    %22 = vector.shape_cast %21 : vector<1x1x32xf32> to vector<1x32xf32>
    %cst_9 = arith.constant 1.000000e+00 : f32
    %23 = vector.broadcast %cst_9 : f32 to vector<1x32xf32>
    %24 = arith.addf %23, %22 : vector<1x32xf32>
    %25 = vector.broadcast %24 : vector<1x32xf32> to vector<8x32xf32>
    %26 = arith.mulf %20, %25 : vector<8x32xf32>
    %c0_10 = arith.constant 0 : index
    %c0_11 = arith.constant 0 : index
    %c0_12 = arith.constant 0 : index
    %27 = vector.load %arg4[%c0_10, %c0_11, %c0_12] : memref<1x1x32xf32, #tpu.memory_space<vmem>>, vector<1x1x32xf32>
    %28 = vector.shape_cast %27 : vector<1x1x32xf32> to vector<1x32xf32>
    %29 = vector.broadcast %28 : vector<1x32xf32> to vector<8x32xf32>
    %30 = arith.addf %26, %29 : vector<8x32xf32>
    %31 = arith.truncf %30 : vector<8x32xf32> to vector<8x32xbf16>
    %c0_13 = arith.constant 0 : index
    %c0_14 = arith.constant 0 : index
    %32 = vector.load %arg5[%c0_13, %c0_14] : memref<32x96xbf16, #tpu.memory_space<vmem>>, vector<32x96xbf16>
    %cst_15 = arith.constant dense<0.000000e+00> : vector<8x96xf32>
    %33 = tpu.matmul %31, %32, %cst_15 {dimension_numbers = #tpu.dot_dimension_numbers<[1], [0], [0], [1], [0, 0, 1, 1], [], []>} : vector<8x32xbf16>, vector<32x96xbf16>, vector<8x96xf32> -> vector<8x96xf32>
    %c0_16 = arith.constant 0 : index
    %c0_17 = arith.constant 0 : index
    %34 = vector.load %arg6[%c0_16, %c0_17] : memref<1x96xbf16, #tpu.memory_space<vmem>>, vector<1x96xbf16>
    %35 = arith.extf %34 : vector<1x96xbf16> to vector<1x96xf32>
    %36 = vector.broadcast %35 : vector<1x96xf32> to vector<8x96xf32>
    %37 = arith.addf %33, %36 : vector<8x96xf32>
    %38 = arith.truncf %37 : vector<8x96xf32> to vector<8x96xbf16>
    %c0_18 = arith.constant 0 : index
    %c0_19 = arith.constant 0 : index
    %c0_20 = arith.constant 0 : index
    %39 = vector.load %arg7[%c0_18, %c0_19, %c0_20] : memref<1x8x96xbf16, #tpu.memory_space<vmem>>, vector<1x8x96xbf16>
    %40 = vector.shape_cast %39 : vector<1x8x96xbf16> to vector<8x96xbf16>
    %41 = vector.shape_cast %38 : vector<8x96xbf16> to vector<1x8x96xbf16>
    tpu.vector_store %arg7[%c0_18, %c0_19, %c0_20], %41 {strides = array<i32>} : memref<1x8x96xbf16, #tpu.memory_space<vmem>>, vector<1x8x96xbf16>,
    return
  }
  func.func @transform_0(%arg0: i32, %arg1: i32) -> (i32, i32, i32) {
    %c0_i32 = arith.constant 0 : i32
    %c0_i32_0 = arith.constant 0 : i32
    return %arg0, %arg1, %c0_i32 : i32, i32, i32
  }
  func.func @transform_1(%arg0: i32, %arg1: i32) -> (i32, i32, i32) {
    %c0_i32 = arith.constant 0 : i32
    %c0_i32_0 = arith.constant 0 : i32
    %c0_i32_1 = arith.constant 0 : i32
    return %arg0, %c0_i32, %c0_i32_0 : i32, i32, i32
  }
  func.func @transform_2(%arg0: i32, %arg1: i32) -> (i32, i32, i32) {
    %c0_i32 = arith.constant 0 : i32
    %c0_i32_0 = arith.constant 0 : i32
    %c0_i32_1 = arith.constant 0 : i32
    return %arg0, %c0_i32, %c0_i32_0 : i32, i32, i32
  }
  func.func @transform_3(%arg0: i32, %arg1: i32) -> (i32, i32) {
    %c0_i32 = arith.constant 0 : i32
    %c0_i32_0 = arith.constant 0 : i32
    %c0_i32_1 = arith.constant 0 : i32
    return %c0_i32, %c0_i32_0 : i32, i32
  }
  func.func @transform_4(%arg0: i32, %arg1: i32) -> (i32, i32) {
    %c0_i32 = arith.constant 0 : i32
    %c0_i32_0 = arith.constant 0 : i32
    %c0_i32_1 = arith.constant 0 : i32
    return %c0_i32, %c0_i32_0 : i32, i32
  }
  func.func @transform_5(%arg0: i32, %arg1: i32) -> (i32, i32, i32) {
    %c0_i32 = arith.constant 0 : i32
    %c0_i32_0 = arith.constant 0 : i32
    return %arg0, %arg1, %c0_i32 : i32, i32, i32
  }
}

module attributes {stable_mosaic.version = 11 : i64} {
  func.func @kernel(%arg0: i32, %arg1: i32, %arg2: memref<1x8x32xbf16, #tpu.memory_space<vmem>>, %arg3: memref<32x32xbf16, #tpu.memory_space<vmem>>, %arg4: memref<1x32xbf16, #tpu.memory_space<vmem>>, %arg5: memref<1x1x32xf32, #tpu.memory_space<vmem>>, %arg6: memref<1x8x32xbf16, #tpu.memory_space<vmem>>, %arg7: memref<1x8x32xbf16, #tpu.memory_space<vmem>>) attributes {dimension_semantics = [#tpu.dimension_semantics<parallel>, #tpu.dimension_semantics<parallel>], iteration_bounds = array<i64: 2, 1>, scalar_prefetch = 0 : i64, scratch_operands = 0 : i64, tpu.core_type = #tpu.core_type<tc>, window_params = [{transform_indices = @transform_0, window_bounds = array<i64: 1, 8, 32>}, {pipeline_mode = #tpu.pipeline_mode<synchronous>, transform_indices = @transform_1, window_bounds = array<i64: 32, 32>}, {pipeline_mode = #tpu.pipeline_mode<synchronous>, transform_indices = @transform_2, window_bounds = array<i64: 1, 32>}, {transform_indices = @transform_3, window_bounds = array<i64: 1, 1, 32>}, {transform_indices = @transform_4, window_bounds = array<i64: 1, 8, 32>}, {transform_indices = @transform_5, window_bounds = array<i64: 1, 8, 32>}]} {
    %c0 = arith.constant 0 : index
    %c0_0 = arith.constant 0 : index
    %c0_1 = arith.constant 0 : index
    %0 = vector.load %arg2[%c0, %c0_0, %c0_1] : memref<1x8x32xbf16, #tpu.memory_space<vmem>>, vector<1x8x32xbf16>
    %1 = vector.shape_cast %0 : vector<1x8x32xbf16> to vector<8x32xbf16>
    %c0_2 = arith.constant 0 : index
    %c0_3 = arith.constant 0 : index
    %2 = vector.load %arg3[%c0_2, %c0_3] : memref<32x32xbf16, #tpu.memory_space<vmem>>, vector<32x32xbf16>
    %cst = arith.constant dense<0.000000e+00> : vector<8x32xf32>
    %3 = tpu.matmul %1, %2, %cst {dimension_numbers = #tpu.dot_dimension_numbers<[1], [0], [0], [1], [0, 0, 1, 1], [], []>} : vector<8x32xbf16>, vector<32x32xbf16>, vector<8x32xf32> -> vector<8x32xf32>
    %c0_4 = arith.constant 0 : index
    %c0_5 = arith.constant 0 : index
    %4 = vector.load %arg4[%c0_4, %c0_5] : memref<1x32xbf16, #tpu.memory_space<vmem>>, vector<1x32xbf16>
    %5 = arith.extf %4 : vector<1x32xbf16> to vector<1x32xf32>
    %6 = vector.broadcast %5 : vector<1x32xf32> to vector<8x32xf32>
    %7 = arith.addf %3, %6 : vector<8x32xf32>
    %c0_6 = arith.constant 0 : index
    %c0_7 = arith.constant 0 : index
    %c0_8 = arith.constant 0 : index
    %8 = vector.load %arg6[%c0_6, %c0_7, %c0_8] : memref<1x8x32xbf16, #tpu.memory_space<vmem>>, vector<1x8x32xbf16>
    %9 = vector.shape_cast %8 : vector<1x8x32xbf16> to vector<8x32xbf16>
    %10 = arith.extf %9 : vector<8x32xbf16> to vector<8x32xf32>
    %c0_9 = arith.constant 0 : index
    %c0_10 = arith.constant 0 : index
    %c0_11 = arith.constant 0 : index
    %11 = vector.load %arg5[%c0_9, %c0_10, %c0_11] : memref<1x1x32xf32, #tpu.memory_space<vmem>>, vector<1x1x32xf32>
    %12 = vector.shape_cast %11 : vector<1x1x32xf32> to vector<1x32xf32>
    %13 = vector.broadcast %12 : vector<1x32xf32> to vector<8x32xf32>
    %14 = arith.mulf %13, %7 : vector<8x32xf32>
    %15 = arith.addf %10, %14 : vector<8x32xf32>
    %16 = arith.truncf %15 : vector<8x32xf32> to vector<8x32xbf16>
    %c0_12 = arith.constant 0 : index
    %c0_13 = arith.constant 0 : index
    %c0_14 = arith.constant 0 : index
    %17 = vector.load %arg7[%c0_12, %c0_13, %c0_14] : memref<1x8x32xbf16, #tpu.memory_space<vmem>>, vector<1x8x32xbf16>
    %18 = vector.shape_cast %17 : vector<1x8x32xbf16> to vector<8x32xbf16>
    %19 = vector.shape_cast %16 : vector<8x32xbf16> to vector<1x8x32xbf16>
    tpu.vector_store %arg7[%c0_12, %c0_13, %c0_14], %19 {strides = array<i32>} : memref<1x8x32xbf16, #tpu.memory_space<vmem>>, vector<1x8x32xbf16>,
    return
  }
  func.func @transform_0(%arg0: i32, %arg1: i32) -> (i32, i32, i32) {
    %c0_i32 = arith.constant 0 : i32
    %c0_i32_0 = arith.constant 0 : i32
    return %arg0, %arg1, %c0_i32 : i32, i32, i32
  }
  func.func @transform_1(%arg0: i32, %arg1: i32) -> (i32, i32) {
    %c0_i32 = arith.constant 0 : i32
    %c0_i32_0 = arith.constant 0 : i32
    %c0_i32_1 = arith.constant 0 : i32
    return %c0_i32, %c0_i32_0 : i32, i32
  }
  func.func @transform_2(%arg0: i32, %arg1: i32) -> (i32, i32) {
    %c0_i32 = arith.constant 0 : i32
    %c0_i32_0 = arith.constant 0 : i32
    %c0_i32_1 = arith.constant 0 : i32
    return %c0_i32, %c0_i32_0 : i32, i32
  }
  func.func @transform_3(%arg0: i32, %arg1: i32) -> (i32, i32, i32) {
    %c0_i32 = arith.constant 0 : i32
    %c0_i32_0 = arith.constant 0 : i32
    %c0_i32_1 = arith.constant 0 : i32
    return %arg0, %c0_i32, %c0_i32_0 : i32, i32, i32
  }
  func.func @transform_4(%arg0: i32, %arg1: i32) -> (i32, i32, i32) {
    %c0_i32 = arith.constant 0 : i32
    %c0_i32_0 = arith.constant 0 : i32
    return %arg0, %arg1, %c0_i32 : i32, i32, i32
  }
  func.func @transform_5(%arg0: i32, %arg1: i32) -> (i32, i32, i32) {
    %c0_i32 = arith.constant 0 : i32
    %c0_i32_0 = arith.constant 0 : i32
    return %arg0, %arg1, %c0_i32 : i32, i32, i32
  }
}

module attributes {stable_mosaic.version = 11 : i64} {
  func.func @_flash_attn_kernel(%arg0: i32, %arg1: i32, %arg2: memref<1x8x32xbf16, #tpu.memory_space<vmem>>, %arg3: memref<1x8x32xbf16, #tpu.memory_space<vmem>>, %arg4: memref<1x8x32xbf16, #tpu.memory_space<vmem>>, %arg5: memref<8x8xf32, #tpu.memory_space<vmem>>, %arg6: memref<8x8xf32, #tpu.memory_space<vmem>>, %arg7: memref<8x8xf32, #tpu.memory_space<vmem>>, %arg8: memref<8x8xf32, #tpu.memory_space<vmem>>, %arg9: memref<1x8x32xbf16, #tpu.memory_space<vmem>>, %arg10: memref<4x8x1xf32, #tpu.memory_space<vmem>>, %arg11: memref<4x8x1xf32, #tpu.memory_space<vmem>>, %arg12: memref<4x8x8xf32, #tpu.memory_space<vmem>>) attributes {dimension_semantics = [#tpu.dimension_semantics<parallel>, #tpu.dimension_semantics<arbitrary>], iteration_bounds = array<i64: 2, 1>, scalar_prefetch = 0 : i64, scratch_operands = 3 : i64, tpu.core_type = #tpu.core_type<tc>, window_params = [{transform_indices = @transform_0, window_bounds = array<i64: 1, 8, 32>}, {transform_indices = @transform_1, window_bounds = array<i64: 1, 8, 32>}, {transform_indices = @transform_2, window_bounds = array<i64: 1, 8, 32>}, {pipeline_mode = #tpu.pipeline_mode<synchronous>, transform_indices = @transform_3, window_bounds = array<i64: 8, 8>}, {pipeline_mode = #tpu.pipeline_mode<synchronous>, transform_indices = @transform_4, window_bounds = array<i64: 8, 8>}, {transform_indices = @transform_5, window_bounds = array<i64: 8, 8>}, {transform_indices = @transform_6, window_bounds = array<i64: 8, 8>}, {transform_indices = @transform_7, window_bounds = array<i64: 1, 8, 32>}]} {
    %c0_i32 = arith.constant 0 : i32
    %0 = arith.cmpi eq, %arg1, %c0_i32 : i32
    %1 = arith.extui %0 : i1 to i32
    %c0_i32_0 = arith.constant 0 : i32
    %2 = arith.cmpi ne, %1, %c0_i32_0 : i32
    scf.if %2 {
      %cst_115 = arith.constant 0xFF800000 : f32
      %248 = vector.broadcast %cst_115 : f32 to vector<4x8x1xf32>
      %c0_116 = arith.constant 0 : index
      %c0_117 = arith.constant 0 : index
      %c0_118 = arith.constant 0 : index
      %249 = vector.load %arg10[%c0_116, %c0_117, %c0_118] : memref<4x8x1xf32, #tpu.memory_space<vmem>>, vector<4x8x1xf32>
      tpu.vector_store %arg10[%c0_116, %c0_117, %c0_118], %248 {strides = array<i32>} : memref<4x8x1xf32, #tpu.memory_space<vmem>>, vector<4x8x1xf32>,
      %cst_119 = arith.constant 0.000000e+00 : f32
      %250 = vector.broadcast %cst_119 : f32 to vector<4x8x1xf32>
      %c0_120 = arith.constant 0 : index
      %c0_121 = arith.constant 0 : index
      %c0_122 = arith.constant 0 : index
      %251 = vector.load %arg11[%c0_120, %c0_121, %c0_122] : memref<4x8x1xf32, #tpu.memory_space<vmem>>, vector<4x8x1xf32>
      tpu.vector_store %arg11[%c0_120, %c0_121, %c0_122], %250 {strides = array<i32>} : memref<4x8x1xf32, #tpu.memory_space<vmem>>, vector<4x8x1xf32>,
      %cst_123 = arith.constant 0.000000e+00 : f32
      %252 = vector.broadcast %cst_123 : f32 to vector<4x8x8xf32>
      %c0_124 = arith.constant 0 : index
      %c0_125 = arith.constant 0 : index
      %c0_126 = arith.constant 0 : index
      %253 = vector.load %arg12[%c0_124, %c0_125, %c0_126] : memref<4x8x8xf32, #tpu.memory_space<vmem>>, vector<4x8x8xf32>
      tpu.vector_store %arg12[%c0_124, %c0_125, %c0_126], %252 {strides = array<i32>} : memref<4x8x8xf32, #tpu.memory_space<vmem>>, vector<4x8x8xf32>,
    } else {
    }
    %c0 = arith.constant 0 : index
    %c0_1 = arith.constant 0 : index
    %c0_2 = arith.constant 0 : index
    %3 = vector.load %arg2[%c0, %c0_1, %c0_2] : memref<1x8x32xbf16, #tpu.memory_space<vmem>>, vector<1x8x32xbf16>
    %4 = vector.shape_cast %3 : vector<1x8x32xbf16> to vector<8x32xbf16>
    %c0_3 = arith.constant 0 : index
    %c0_4 = arith.constant 0 : index
    %c0_5 = arith.constant 0 : index
    %5 = vector.load %arg3[%c0_3, %c0_4, %c0_5] : memref<1x8x32xbf16, #tpu.memory_space<vmem>>, vector<1x8x32xbf16>
    %6 = vector.shape_cast %5 : vector<1x8x32xbf16> to vector<8x32xbf16>
    %c0_6 = arith.constant 0 : index
    %c0_7 = arith.constant 0 : index
    %c0_8 = arith.constant 0 : index
    %7 = vector.load %arg4[%c0_6, %c0_7, %c0_8] : memref<1x8x32xbf16, #tpu.memory_space<vmem>>, vector<1x8x32xbf16>
    %8 = vector.shape_cast %7 : vector<1x8x32xbf16> to vector<8x32xbf16>
    %c0_9 = arith.constant 0 : index
    %c0_10 = arith.constant 0 : index
    %9 = vector.load %arg5[%c0_9, %c0_10] : memref<8x8xf32, #tpu.memory_space<vmem>>, vector<8x8xf32>
    %c0_11 = arith.constant 0 : index
    %c0_12 = arith.constant 0 : index
    %10 = vector.load %arg6[%c0_11, %c0_12] : memref<8x8xf32, #tpu.memory_space<vmem>>, vector<8x8xf32>
    %c0_13 = arith.constant 0 : index
    %c0_14 = arith.constant 0 : index
    %11 = vector.load %arg7[%c0_13, %c0_14] : memref<8x8xf32, #tpu.memory_space<vmem>>, vector<8x8xf32>
    %c0_15 = arith.constant 0 : index
    %c0_16 = arith.constant 0 : index
    %12 = vector.load %arg8[%c0_15, %c0_16] : memref<8x8xf32, #tpu.memory_space<vmem>>, vector<8x8xf32>
    %13 = vector.extract_strided_slice %4 {offsets = [0, 0], sizes = [8, 8], strides = [1, 1]} : vector<8x32xbf16> to vector<8x8xbf16>
    %14 = vector.extract_strided_slice %6 {offsets = [0, 0], sizes = [8, 8], strides = [1, 1]} : vector<8x32xbf16> to vector<8x8xbf16>
    %15 = vector.extract_strided_slice %8 {offsets = [0, 0], sizes = [8, 8], strides = [1, 1]} : vector<8x32xbf16> to vector<8x8xbf16>
    %16 = arith.extf %13 : vector<8x8xbf16> to vector<8x8xf32>
    %17 = arith.extf %14 : vector<8x8xbf16> to vector<8x8xf32>
    %18 = arith.mulf %16, %9 : vector<8x8xf32>
    %19 = vector.extract_strided_slice %16 {offsets = [0, 4], sizes = [8, 4], strides = [1, 1]} : vector<8x8xf32> to vector<8x4xf32>
    %cst = arith.constant 0.000000e+00 : f32
    %20 = vector.broadcast %cst : f32 to vector<8x4xf32>
    %21 = arith.subf %20, %19 : vector<8x4xf32>
    %22 = vector.extract_strided_slice %16 {offsets = [0, 0], sizes = [8, 4], strides = [1, 1]} : vector<8x8xf32> to vector<8x4xf32>
    %23 = tpu.concatenate %21, %22 in 1 : vector<8x4xf32>, vector<8x4xf32> -> vector<8x8xf32>
    %24 = arith.mulf %23, %10 : vector<8x8xf32>
    %25 = arith.addf %18, %24 : vector<8x8xf32>
    %26 = arith.truncf %25 : vector<8x8xf32> to vector<8x8xbf16>
    %27 = arith.mulf %17, %11 : vector<8x8xf32>
    %28 = vector.extract_strided_slice %17 {offsets = [0, 4], sizes = [8, 4], strides = [1, 1]} : vector<8x8xf32> to vector<8x4xf32>
    %cst_17 = arith.constant 0.000000e+00 : f32
    %29 = vector.broadcast %cst_17 : f32 to vector<8x4xf32>
    %30 = arith.subf %29, %28 : vector<8x4xf32>
    %31 = vector.extract_strided_slice %17 {offsets = [0, 0], sizes = [8, 4], strides = [1, 1]} : vector<8x8xf32> to vector<8x4xf32>
    %32 = tpu.concatenate %30, %31 in 1 : vector<8x4xf32>, vector<8x4xf32> -> vector<8x8xf32>
    %33 = arith.mulf %32, %12 : vector<8x8xf32>
    %34 = arith.addf %27, %33 : vector<8x8xf32>
    %35 = arith.truncf %34 : vector<8x8xf32> to vector<8x8xbf16>
    %cst_18 = arith.constant dense<0.000000e+00> : vector<8x8xf32>
    %36 = tpu.matmul %26, %35, %cst_18 {dimension_numbers = #tpu.dot_dimension_numbers<[1], [1], [0], [0], [0, 0, 1, 0], [], []>} : vector<8x8xbf16>, vector<8x8xbf16>, vector<8x8xf32> -> vector<8x8xf32>
    %cst_19 = arith.constant 0.353553385 : f32
    %37 = vector.broadcast %cst_19 : f32 to vector<8x8xf32>
    %38 = arith.mulf %36, %37 : vector<8x8xf32>
    %c0_20 = arith.constant 0 : index
    %c0_21 = arith.constant 0 : index
    %c0_22 = arith.constant 0 : index
    %39 = vector.load %arg10[%c0_20, %c0_21, %c0_22] : memref<4x8x1xf32, #tpu.memory_space<vmem>>, vector<1x8x1xf32>
    %40 = vector.shape_cast %39 : vector<1x8x1xf32> to vector<8x1xf32>
    %c0_23 = arith.constant 0 : index
    %c0_24 = arith.constant 0 : index
    %c0_25 = arith.constant 0 : index
    %41 = vector.load %arg11[%c0_23, %c0_24, %c0_25] : memref<4x8x1xf32, #tpu.memory_space<vmem>>, vector<1x8x1xf32>
    %42 = vector.shape_cast %41 : vector<1x8x1xf32> to vector<8x1xf32>
    %cst_26 = arith.constant dense<0xFF800000> : vector<8xf32>
    %43 = vector.multi_reduction <maximumf>, %38, %cst_26 [1] : vector<8x8xf32> to vector<8xf32>
    %44 = vector.shape_cast %43 : vector<8xf32> to vector<8x1xf32>
    %45 = arith.maximumf %40, %44 : vector<8x1xf32>
    %46 = arith.subf %40, %45 : vector<8x1xf32>
    %47 = math.exp %46 : vector<8x1xf32>
    %48 = vector.broadcast %45 : vector<8x1xf32> to vector<8x8xf32>
    %49 = arith.subf %38, %48 : vector<8x8xf32>
    %50 = math.exp %49 : vector<8x8xf32>
    %51 = arith.mulf %47, %42 : vector<8x1xf32>
    %cst_27 = arith.constant dense<0.000000e+00> : vector<8xf32>
    %52 = vector.multi_reduction <add>, %50, %cst_27 [1] : vector<8x8xf32> to vector<8xf32>
    %53 = vector.shape_cast %52 : vector<8xf32> to vector<8x1xf32>
    %54 = arith.addf %51, %53 : vector<8x1xf32>
    %c0_28 = arith.constant 0 : index
    %c0_29 = arith.constant 0 : index
    %c0_30 = arith.constant 0 : index
    %55 = vector.load %arg11[%c0_28, %c0_29, %c0_30] : memref<4x8x1xf32, #tpu.memory_space<vmem>>, vector<1x8x1xf32>
    %56 = vector.shape_cast %55 : vector<1x8x1xf32> to vector<8x1xf32>
    %57 = vector.shape_cast %54 : vector<8x1xf32> to vector<1x8x1xf32>
    tpu.vector_store %arg11[%c0_28, %c0_29, %c0_30], %57 {strides = array<i32>} : memref<4x8x1xf32, #tpu.memory_space<vmem>>, vector<1x8x1xf32>,
    %c0_31 = arith.constant 0 : index
    %c0_32 = arith.constant 0 : index
    %c0_33 = arith.constant 0 : index
    %58 = vector.load %arg12[%c0_31, %c0_32, %c0_33] : memref<4x8x8xf32, #tpu.memory_space<vmem>>, vector<1x8x8xf32>
    %59 = vector.shape_cast %58 : vector<1x8x8xf32> to vector<8x8xf32>
    %60 = vector.broadcast %47 : vector<8x1xf32> to vector<8x8xf32>
    %61 = arith.mulf %60, %59 : vector<8x8xf32>
    %62 = arith.truncf %50 : vector<8x8xf32> to vector<8x8xbf16>
    %cst_34 = arith.constant dense<0.000000e+00> : vector<8x8xf32>
    %63 = tpu.matmul %62, %15, %cst_34 {dimension_numbers = #tpu.dot_dimension_numbers<[1], [0], [0], [1], [0, 0, 1, 1], [], []>} : vector<8x8xbf16>, vector<8x8xbf16>, vector<8x8xf32> -> vector<8x8xf32>
    %64 = arith.addf %61, %63 : vector<8x8xf32>
    %c0_35 = arith.constant 0 : index
    %c0_36 = arith.constant 0 : index
    %c0_37 = arith.constant 0 : index
    %65 = vector.load %arg12[%c0_35, %c0_36, %c0_37] : memref<4x8x8xf32, #tpu.memory_space<vmem>>, vector<1x8x8xf32>
    %66 = vector.shape_cast %65 : vector<1x8x8xf32> to vector<8x8xf32>
    %67 = vector.shape_cast %64 : vector<8x8xf32> to vector<1x8x8xf32>
    tpu.vector_store %arg12[%c0_35, %c0_36, %c0_37], %67 {strides = array<i32>} : memref<4x8x8xf32, #tpu.memory_space<vmem>>, vector<1x8x8xf32>,
    %c0_38 = arith.constant 0 : index
    %c0_39 = arith.constant 0 : index
    %c0_40 = arith.constant 0 : index
    %68 = vector.load %arg10[%c0_38, %c0_39, %c0_40] : memref<4x8x1xf32, #tpu.memory_space<vmem>>, vector<1x8x1xf32>
    %69 = vector.shape_cast %68 : vector<1x8x1xf32> to vector<8x1xf32>
    %70 = vector.shape_cast %45 : vector<8x1xf32> to vector<1x8x1xf32>
    tpu.vector_store %arg10[%c0_38, %c0_39, %c0_40], %70 {strides = array<i32>} : memref<4x8x1xf32, #tpu.memory_space<vmem>>, vector<1x8x1xf32>,
    %71 = vector.extract_strided_slice %4 {offsets = [0, 8], sizes = [8, 8], strides = [1, 1]} : vector<8x32xbf16> to vector<8x8xbf16>
    %72 = vector.extract_strided_slice %6 {offsets = [0, 8], sizes = [8, 8], strides = [1, 1]} : vector<8x32xbf16> to vector<8x8xbf16>
    %73 = vector.extract_strided_slice %8 {offsets = [0, 8], sizes = [8, 8], strides = [1, 1]} : vector<8x32xbf16> to vector<8x8xbf16>
    %74 = arith.extf %71 : vector<8x8xbf16> to vector<8x8xf32>
    %75 = arith.extf %72 : vector<8x8xbf16> to vector<8x8xf32>
    %76 = arith.mulf %74, %9 : vector<8x8xf32>
    %77 = vector.extract_strided_slice %74 {offsets = [0, 4], sizes = [8, 4], strides = [1, 1]} : vector<8x8xf32> to vector<8x4xf32>
    %cst_41 = arith.constant 0.000000e+00 : f32
    %78 = vector.broadcast %cst_41 : f32 to vector<8x4xf32>
    %79 = arith.subf %78, %77 : vector<8x4xf32>
    %80 = vector.extract_strided_slice %74 {offsets = [0, 0], sizes = [8, 4], strides = [1, 1]} : vector<8x8xf32> to vector<8x4xf32>
    %81 = tpu.concatenate %79, %80 in 1 : vector<8x4xf32>, vector<8x4xf32> -> vector<8x8xf32>
    %82 = arith.mulf %81, %10 : vector<8x8xf32>
    %83 = arith.addf %76, %82 : vector<8x8xf32>
    %84 = arith.truncf %83 : vector<8x8xf32> to vector<8x8xbf16>
    %85 = arith.mulf %75, %11 : vector<8x8xf32>
    %86 = vector.extract_strided_slice %75 {offsets = [0, 4], sizes = [8, 4], strides = [1, 1]} : vector<8x8xf32> to vector<8x4xf32>
    %cst_42 = arith.constant 0.000000e+00 : f32
    %87 = vector.broadcast %cst_42 : f32 to vector<8x4xf32>
    %88 = arith.subf %87, %86 : vector<8x4xf32>
    %89 = vector.extract_strided_slice %75 {offsets = [0, 0], sizes = [8, 4], strides = [1, 1]} : vector<8x8xf32> to vector<8x4xf32>
    %90 = tpu.concatenate %88, %89 in 1 : vector<8x4xf32>, vector<8x4xf32> -> vector<8x8xf32>
    %91 = arith.mulf %90, %12 : vector<8x8xf32>
    %92 = arith.addf %85, %91 : vector<8x8xf32>
    %93 = arith.truncf %92 : vector<8x8xf32> to vector<8x8xbf16>
    %cst_43 = arith.constant dense<0.000000e+00> : vector<8x8xf32>
    %94 = tpu.matmul %84, %93, %cst_43 {dimension_numbers = #tpu.dot_dimension_numbers<[1], [1], [0], [0], [0, 0, 1, 0], [], []>} : vector<8x8xbf16>, vector<8x8xbf16>, vector<8x8xf32> -> vector<8x8xf32>
    %cst_44 = arith.constant 0.353553385 : f32
    %95 = vector.broadcast %cst_44 : f32 to vector<8x8xf32>
    %96 = arith.mulf %94, %95 : vector<8x8xf32>
    %c1 = arith.constant 1 : index
    %c0_45 = arith.constant 0 : index
    %c0_46 = arith.constant 0 : index
    %97 = vector.load %arg10[%c1, %c0_45, %c0_46] : memref<4x8x1xf32, #tpu.memory_space<vmem>>, vector<1x8x1xf32>
    %98 = vector.shape_cast %97 : vector<1x8x1xf32> to vector<8x1xf32>
    %c1_47 = arith.constant 1 : index
    %c0_48 = arith.constant 0 : index
    %c0_49 = arith.constant 0 : index
    %99 = vector.load %arg11[%c1_47, %c0_48, %c0_49] : memref<4x8x1xf32, #tpu.memory_space<vmem>>, vector<1x8x1xf32>
    %100 = vector.shape_cast %99 : vector<1x8x1xf32> to vector<8x1xf32>
    %cst_50 = arith.constant dense<0xFF800000> : vector<8xf32>
    %101 = vector.multi_reduction <maximumf>, %96, %cst_50 [1] : vector<8x8xf32> to vector<8xf32>
    %102 = vector.shape_cast %101 : vector<8xf32> to vector<8x1xf32>
    %103 = arith.maximumf %98, %102 : vector<8x1xf32>
    %104 = arith.subf %98, %103 : vector<8x1xf32>
    %105 = math.exp %104 : vector<8x1xf32>
    %106 = vector.broadcast %103 : vector<8x1xf32> to vector<8x8xf32>
    %107 = arith.subf %96, %106 : vector<8x8xf32>
    %108 = math.exp %107 : vector<8x8xf32>
    %109 = arith.mulf %105, %100 : vector<8x1xf32>
    %cst_51 = arith.constant dense<0.000000e+00> : vector<8xf32>
    %110 = vector.multi_reduction <add>, %108, %cst_51 [1] : vector<8x8xf32> to vector<8xf32>
    %111 = vector.shape_cast %110 : vector<8xf32> to vector<8x1xf32>
    %112 = arith.addf %109, %111 : vector<8x1xf32>
    %c1_52 = arith.constant 1 : index
    %c0_53 = arith.constant 0 : index
    %c0_54 = arith.constant 0 : index
    %113 = vector.load %arg11[%c1_52, %c0_53, %c0_54] : memref<4x8x1xf32, #tpu.memory_space<vmem>>, vector<1x8x1xf32>
    %114 = vector.shape_cast %113 : vector<1x8x1xf32> to vector<8x1xf32>
    %115 = vector.shape_cast %112 : vector<8x1xf32> to vector<1x8x1xf32>
    tpu.vector_store %arg11[%c1_52, %c0_53, %c0_54], %115 {strides = array<i32>} : memref<4x8x1xf32, #tpu.memory_space<vmem>>, vector<1x8x1xf32>,
    %c1_55 = arith.constant 1 : index
    %c0_56 = arith.constant 0 : index
    %c0_57 = arith.constant 0 : index
    %116 = vector.load %arg12[%c1_55, %c0_56, %c0_57] : memref<4x8x8xf32, #tpu.memory_space<vmem>>, vector<1x8x8xf32>
    %117 = vector.shape_cast %116 : vector<1x8x8xf32> to vector<8x8xf32>
    %118 = vector.broadcast %105 : vector<8x1xf32> to vector<8x8xf32>
    %119 = arith.mulf %118, %117 : vector<8x8xf32>
    %120 = arith.truncf %108 : vector<8x8xf32> to vector<8x8xbf16>
    %cst_58 = arith.constant dense<0.000000e+00> : vector<8x8xf32>
    %121 = tpu.matmul %120, %73, %cst_58 {dimension_numbers = #tpu.dot_dimension_numbers<[1], [0], [0], [1], [0, 0, 1, 1], [], []>} : vector<8x8xbf16>, vector<8x8xbf16>, vector<8x8xf32> -> vector<8x8xf32>
    %122 = arith.addf %119, %121 : vector<8x8xf32>
    %c1_59 = arith.constant 1 : index
    %c0_60 = arith.constant 0 : index
    %c0_61 = arith.constant 0 : index
    %123 = vector.load %arg12[%c1_59, %c0_60, %c0_61] : memref<4x8x8xf32, #tpu.memory_space<vmem>>, vector<1x8x8xf32>
    %124 = vector.shape_cast %123 : vector<1x8x8xf32> to vector<8x8xf32>
    %125 = vector.shape_cast %122 : vector<8x8xf32> to vector<1x8x8xf32>
    tpu.vector_store %arg12[%c1_59, %c0_60, %c0_61], %125 {strides = array<i32>} : memref<4x8x8xf32, #tpu.memory_space<vmem>>, vector<1x8x8xf32>,
    %c1_62 = arith.constant 1 : index
    %c0_63 = arith.constant 0 : index
    %c0_64 = arith.constant 0 : index
    %126 = vector.load %arg10[%c1_62, %c0_63, %c0_64] : memref<4x8x1xf32, #tpu.memory_space<vmem>>, vector<1x8x1xf32>
    %127 = vector.shape_cast %126 : vector<1x8x1xf32> to vector<8x1xf32>
    %128 = vector.shape_cast %103 : vector<8x1xf32> to vector<1x8x1xf32>
    tpu.vector_store %arg10[%c1_62, %c0_63, %c0_64], %128 {strides = array<i32>} : memref<4x8x1xf32, #tpu.memory_space<vmem>>, vector<1x8x1xf32>,
    %129 = vector.extract_strided_slice %4 {offsets = [0, 16], sizes = [8, 8], strides = [1, 1]} : vector<8x32xbf16> to vector<8x8xbf16>
    %130 = vector.extract_strided_slice %6 {offsets = [0, 16], sizes = [8, 8], strides = [1, 1]} : vector<8x32xbf16> to vector<8x8xbf16>
    %131 = vector.extract_strided_slice %8 {offsets = [0, 16], sizes = [8, 8], strides = [1, 1]} : vector<8x32xbf16> to vector<8x8xbf16>
    %132 = arith.extf %129 : vector<8x8xbf16> to vector<8x8xf32>
    %133 = arith.extf %130 : vector<8x8xbf16> to vector<8x8xf32>
    %134 = arith.mulf %132, %9 : vector<8x8xf32>
    %135 = vector.extract_strided_slice %132 {offsets = [0, 4], sizes = [8, 4], strides = [1, 1]} : vector<8x8xf32> to vector<8x4xf32>
    %cst_65 = arith.constant 0.000000e+00 : f32
    %136 = vector.broadcast %cst_65 : f32 to vector<8x4xf32>
    %137 = arith.subf %136, %135 : vector<8x4xf32>
    %138 = vector.extract_strided_slice %132 {offsets = [0, 0], sizes = [8, 4], strides = [1, 1]} : vector<8x8xf32> to vector<8x4xf32>
    %139 = tpu.concatenate %137, %138 in 1 : vector<8x4xf32>, vector<8x4xf32> -> vector<8x8xf32>
    %140 = arith.mulf %139, %10 : vector<8x8xf32>
    %141 = arith.addf %134, %140 : vector<8x8xf32>
    %142 = arith.truncf %141 : vector<8x8xf32> to vector<8x8xbf16>
    %143 = arith.mulf %133, %11 : vector<8x8xf32>
    %144 = vector.extract_strided_slice %133 {offsets = [0, 4], sizes = [8, 4], strides = [1, 1]} : vector<8x8xf32> to vector<8x4xf32>
    %cst_66 = arith.constant 0.000000e+00 : f32
    %145 = vector.broadcast %cst_66 : f32 to vector<8x4xf32>
    %146 = arith.subf %145, %144 : vector<8x4xf32>
    %147 = vector.extract_strided_slice %133 {offsets = [0, 0], sizes = [8, 4], strides = [1, 1]} : vector<8x8xf32> to vector<8x4xf32>
    %148 = tpu.concatenate %146, %147 in 1 : vector<8x4xf32>, vector<8x4xf32> -> vector<8x8xf32>
    %149 = arith.mulf %148, %12 : vector<8x8xf32>
    %150 = arith.addf %143, %149 : vector<8x8xf32>
    %151 = arith.truncf %150 : vector<8x8xf32> to vector<8x8xbf16>
    %cst_67 = arith.constant dense<0.000000e+00> : vector<8x8xf32>
    %152 = tpu.matmul %142, %151, %cst_67 {dimension_numbers = #tpu.dot_dimension_numbers<[1], [1], [0], [0], [0, 0, 1, 0], [], []>} : vector<8x8xbf16>, vector<8x8xbf16>, vector<8x8xf32> -> vector<8x8xf32>
    %cst_68 = arith.constant 0.353553385 : f32
    %153 = vector.broadcast %cst_68 : f32 to vector<8x8xf32>
    %154 = arith.mulf %152, %153 : vector<8x8xf32>
    %c2 = arith.constant 2 : index
    %c0_69 = arith.constant 0 : index
    %c0_70 = arith.constant 0 : index
    %155 = vector.load %arg10[%c2, %c0_69, %c0_70] : memref<4x8x1xf32, #tpu.memory_space<vmem>>, vector<1x8x1xf32>
    %156 = vector.shape_cast %155 : vector<1x8x1xf32> to vector<8x1xf32>
    %c2_71 = arith.constant 2 : index
    %c0_72 = arith.constant 0 : index
    %c0_73 = arith.constant 0 : index
    %157 = vector.load %arg11[%c2_71, %c0_72, %c0_73] : memref<4x8x1xf32, #tpu.memory_space<vmem>>, vector<1x8x1xf32>
    %158 = vector.shape_cast %157 : vector<1x8x1xf32> to vector<8x1xf32>
    %cst_74 = arith.constant dense<0xFF800000> : vector<8xf32>
    %159 = vector.multi_reduction <maximumf>, %154, %cst_74 [1] : vector<8x8xf32> to vector<8xf32>
    %160 = vector.shape_cast %159 : vector<8xf32> to vector<8x1xf32>
    %161 = arith.maximumf %156, %160 : vector<8x1xf32>
    %162 = arith.subf %156, %161 : vector<8x1xf32>
    %163 = math.exp %162 : vector<8x1xf32>
    %164 = vector.broadcast %161 : vector<8x1xf32> to vector<8x8xf32>
    %165 = arith.subf %154, %164 : vector<8x8xf32>
    %166 = math.exp %165 : vector<8x8xf32>
    %167 = arith.mulf %163, %158 : vector<8x1xf32>
    %cst_75 = arith.constant dense<0.000000e+00> : vector<8xf32>
    %168 = vector.multi_reduction <add>, %166, %cst_75 [1] : vector<8x8xf32> to vector<8xf32>
    %169 = vector.shape_cast %168 : vector<8xf32> to vector<8x1xf32>
    %170 = arith.addf %167, %169 : vector<8x1xf32>
    %c2_76 = arith.constant 2 : index
    %c0_77 = arith.constant 0 : index
    %c0_78 = arith.constant 0 : index
    %171 = vector.load %arg11[%c2_76, %c0_77, %c0_78] : memref<4x8x1xf32, #tpu.memory_space<vmem>>, vector<1x8x1xf32>
    %172 = vector.shape_cast %171 : vector<1x8x1xf32> to vector<8x1xf32>
    %173 = vector.shape_cast %170 : vector<8x1xf32> to vector<1x8x1xf32>
    tpu.vector_store %arg11[%c2_76, %c0_77, %c0_78], %173 {strides = array<i32>} : memref<4x8x1xf32, #tpu.memory_space<vmem>>, vector<1x8x1xf32>,
    %c2_79 = arith.constant 2 : index
    %c0_80 = arith.constant 0 : index
    %c0_81 = arith.constant 0 : index
    %174 = vector.load %arg12[%c2_79, %c0_80, %c0_81] : memref<4x8x8xf32, #tpu.memory_space<vmem>>, vector<1x8x8xf32>
    %175 = vector.shape_cast %174 : vector<1x8x8xf32> to vector<8x8xf32>
    %176 = vector.broadcast %163 : vector<8x1xf32> to vector<8x8xf32>
    %177 = arith.mulf %176, %175 : vector<8x8xf32>
    %178 = arith.truncf %166 : vector<8x8xf32> to vector<8x8xbf16>
    %cst_82 = arith.constant dense<0.000000e+00> : vector<8x8xf32>
    %179 = tpu.matmul %178, %131, %cst_82 {dimension_numbers = #tpu.dot_dimension_numbers<[1], [0], [0], [1], [0, 0, 1, 1], [], []>} : vector<8x8xbf16>, vector<8x8xbf16>, vector<8x8xf32> -> vector<8x8xf32>
    %180 = arith.addf %177, %179 : vector<8x8xf32>
    %c2_83 = arith.constant 2 : index
    %c0_84 = arith.constant 0 : index
    %c0_85 = arith.constant 0 : index
    %181 = vector.load %arg12[%c2_83, %c0_84, %c0_85] : memref<4x8x8xf32, #tpu.memory_space<vmem>>, vector<1x8x8xf32>
    %182 = vector.shape_cast %181 : vector<1x8x8xf32> to vector<8x8xf32>
    %183 = vector.shape_cast %180 : vector<8x8xf32> to vector<1x8x8xf32>
    tpu.vector_store %arg12[%c2_83, %c0_84, %c0_85], %183 {strides = array<i32>} : memref<4x8x8xf32, #tpu.memory_space<vmem>>, vector<1x8x8xf32>,
    %c2_86 = arith.constant 2 : index
    %c0_87 = arith.constant 0 : index
    %c0_88 = arith.constant 0 : index
    %184 = vector.load %arg10[%c2_86, %c0_87, %c0_88] : memref<4x8x1xf32, #tpu.memory_space<vmem>>, vector<1x8x1xf32>
    %185 = vector.shape_cast %184 : vector<1x8x1xf32> to vector<8x1xf32>
    %186 = vector.shape_cast %161 : vector<8x1xf32> to vector<1x8x1xf32>
    tpu.vector_store %arg10[%c2_86, %c0_87, %c0_88], %186 {strides = array<i32>} : memref<4x8x1xf32, #tpu.memory_space<vmem>>, vector<1x8x1xf32>,
    %187 = vector.extract_strided_slice %4 {offsets = [0, 24], sizes = [8, 8], strides = [1, 1]} : vector<8x32xbf16> to vector<8x8xbf16>
    %188 = vector.extract_strided_slice %6 {offsets = [0, 24], sizes = [8, 8], strides = [1, 1]} : vector<8x32xbf16> to vector<8x8xbf16>
    %189 = vector.extract_strided_slice %8 {offsets = [0, 24], sizes = [8, 8], strides = [1, 1]} : vector<8x32xbf16> to vector<8x8xbf16>
    %190 = arith.extf %187 : vector<8x8xbf16> to vector<8x8xf32>
    %191 = arith.extf %188 : vector<8x8xbf16> to vector<8x8xf32>
    %192 = arith.mulf %190, %9 : vector<8x8xf32>
    %193 = vector.extract_strided_slice %190 {offsets = [0, 4], sizes = [8, 4], strides = [1, 1]} : vector<8x8xf32> to vector<8x4xf32>
    %cst_89 = arith.constant 0.000000e+00 : f32
    %194 = vector.broadcast %cst_89 : f32 to vector<8x4xf32>
    %195 = arith.subf %194, %193 : vector<8x4xf32>
    %196 = vector.extract_strided_slice %190 {offsets = [0, 0], sizes = [8, 4], strides = [1, 1]} : vector<8x8xf32> to vector<8x4xf32>
    %197 = tpu.concatenate %195, %196 in 1 : vector<8x4xf32>, vector<8x4xf32> -> vector<8x8xf32>
    %198 = arith.mulf %197, %10 : vector<8x8xf32>
    %199 = arith.addf %192, %198 : vector<8x8xf32>
    %200 = arith.truncf %199 : vector<8x8xf32> to vector<8x8xbf16>
    %201 = arith.mulf %191, %11 : vector<8x8xf32>
    %202 = vector.extract_strided_slice %191 {offsets = [0, 4], sizes = [8, 4], strides = [1, 1]} : vector<8x8xf32> to vector<8x4xf32>
    %cst_90 = arith.constant 0.000000e+00 : f32
    %203 = vector.broadcast %cst_90 : f32 to vector<8x4xf32>
    %204 = arith.subf %203, %202 : vector<8x4xf32>
    %205 = vector.extract_strided_slice %191 {offsets = [0, 0], sizes = [8, 4], strides = [1, 1]} : vector<8x8xf32> to vector<8x4xf32>
    %206 = tpu.concatenate %204, %205 in 1 : vector<8x4xf32>, vector<8x4xf32> -> vector<8x8xf32>
    %207 = arith.mulf %206, %12 : vector<8x8xf32>
    %208 = arith.addf %201, %207 : vector<8x8xf32>
    %209 = arith.truncf %208 : vector<8x8xf32> to vector<8x8xbf16>
    %cst_91 = arith.constant dense<0.000000e+00> : vector<8x8xf32>
    %210 = tpu.matmul %200, %209, %cst_91 {dimension_numbers = #tpu.dot_dimension_numbers<[1], [1], [0], [0], [0, 0, 1, 0], [], []>} : vector<8x8xbf16>, vector<8x8xbf16>, vector<8x8xf32> -> vector<8x8xf32>
    %cst_92 = arith.constant 0.353553385 : f32
    %211 = vector.broadcast %cst_92 : f32 to vector<8x8xf32>
    %212 = arith.mulf %210, %211 : vector<8x8xf32>
    %c3 = arith.constant 3 : index
    %c0_93 = arith.constant 0 : index
    %c0_94 = arith.constant 0 : index
    %213 = vector.load %arg10[%c3, %c0_93, %c0_94] : memref<4x8x1xf32, #tpu.memory_space<vmem>>, vector<1x8x1xf32>
    %214 = vector.shape_cast %213 : vector<1x8x1xf32> to vector<8x1xf32>
    %c3_95 = arith.constant 3 : index
    %c0_96 = arith.constant 0 : index
    %c0_97 = arith.constant 0 : index
    %215 = vector.load %arg11[%c3_95, %c0_96, %c0_97] : memref<4x8x1xf32, #tpu.memory_space<vmem>>, vector<1x8x1xf32>
    %216 = vector.shape_cast %215 : vector<1x8x1xf32> to vector<8x1xf32>
    %cst_98 = arith.constant dense<0xFF800000> : vector<8xf32>
    %217 = vector.multi_reduction <maximumf>, %212, %cst_98 [1] : vector<8x8xf32> to vector<8xf32>
    %218 = vector.shape_cast %217 : vector<8xf32> to vector<8x1xf32>
    %219 = arith.maximumf %214, %218 : vector<8x1xf32>
    %220 = arith.subf %214, %219 : vector<8x1xf32>
    %221 = math.exp %220 : vector<8x1xf32>
    %222 = vector.broadcast %219 : vector<8x1xf32> to vector<8x8xf32>
    %223 = arith.subf %212, %222 : vector<8x8xf32>
    %224 = math.exp %223 : vector<8x8xf32>
    %225 = arith.mulf %221, %216 : vector<8x1xf32>
    %cst_99 = arith.constant dense<0.000000e+00> : vector<8xf32>
    %226 = vector.multi_reduction <add>, %224, %cst_99 [1] : vector<8x8xf32> to vector<8xf32>
    %227 = vector.shape_cast %226 : vector<8xf32> to vector<8x1xf32>
    %228 = arith.addf %225, %227 : vector<8x1xf32>
    %c3_100 = arith.constant 3 : index
    %c0_101 = arith.constant 0 : index
    %c0_102 = arith.constant 0 : index
    %229 = vector.load %arg11[%c3_100, %c0_101, %c0_102] : memref<4x8x1xf32, #tpu.memory_space<vmem>>, vector<1x8x1xf32>
    %230 = vector.shape_cast %229 : vector<1x8x1xf32> to vector<8x1xf32>
    %231 = vector.shape_cast %228 : vector<8x1xf32> to vector<1x8x1xf32>
    tpu.vector_store %arg11[%c3_100, %c0_101, %c0_102], %231 {strides = array<i32>} : memref<4x8x1xf32, #tpu.memory_space<vmem>>, vector<1x8x1xf32>,
    %c3_103 = arith.constant 3 : index
    %c0_104 = arith.constant 0 : index
    %c0_105 = arith.constant 0 : index
    %232 = vector.load %arg12[%c3_103, %c0_104, %c0_105] : memref<4x8x8xf32, #tpu.memory_space<vmem>>, vector<1x8x8xf32>
    %233 = vector.shape_cast %232 : vector<1x8x8xf32> to vector<8x8xf32>
    %234 = vector.broadcast %221 : vector<8x1xf32> to vector<8x8xf32>
    %235 = arith.mulf %234, %233 : vector<8x8xf32>
    %236 = arith.truncf %224 : vector<8x8xf32> to vector<8x8xbf16>
    %cst_106 = arith.constant dense<0.000000e+00> : vector<8x8xf32>
    %237 = tpu.matmul %236, %189, %cst_106 {dimension_numbers = #tpu.dot_dimension_numbers<[1], [0], [0], [1], [0, 0, 1, 1], [], []>} : vector<8x8xbf16>, vector<8x8xbf16>, vector<8x8xf32> -> vector<8x8xf32>
    %238 = arith.addf %235, %237 : vector<8x8xf32>
    %c3_107 = arith.constant 3 : index
    %c0_108 = arith.constant 0 : index
    %c0_109 = arith.constant 0 : index
    %239 = vector.load %arg12[%c3_107, %c0_108, %c0_109] : memref<4x8x8xf32, #tpu.memory_space<vmem>>, vector<1x8x8xf32>
    %240 = vector.shape_cast %239 : vector<1x8x8xf32> to vector<8x8xf32>
    %241 = vector.shape_cast %238 : vector<8x8xf32> to vector<1x8x8xf32>
    tpu.vector_store %arg12[%c3_107, %c0_108, %c0_109], %241 {strides = array<i32>} : memref<4x8x8xf32, #tpu.memory_space<vmem>>, vector<1x8x8xf32>,
    %c3_110 = arith.constant 3 : index
    %c0_111 = arith.constant 0 : index
    %c0_112 = arith.constant 0 : index
    %242 = vector.load %arg10[%c3_110, %c0_111, %c0_112] : memref<4x8x1xf32, #tpu.memory_space<vmem>>, vector<1x8x1xf32>
    %243 = vector.shape_cast %242 : vector<1x8x1xf32> to vector<8x1xf32>
    %244 = vector.shape_cast %219 : vector<8x1xf32> to vector<1x8x1xf32>
    tpu.vector_store %arg10[%c3_110, %c0_111, %c0_112], %244 {strides = array<i32>} : memref<4x8x1xf32, #tpu.memory_space<vmem>>, vector<1x8x1xf32>,
    %c0_i32_113 = arith.constant 0 : i32
    %245 = arith.cmpi eq, %arg1, %c0_i32_113 : i32
    %246 = arith.extui %245 : i1 to i32
    %c0_i32_114 = arith.constant 0 : i32
    %247 = arith.cmpi ne, %246, %c0_i32_114 : i32
    scf.if %247 {
      %c0_115 = arith.constant 0 : index
      %c0_116 = arith.constant 0 : index
      %c0_117 = arith.constant 0 : index
      %248 = vector.load %arg11[%c0_115, %c0_116, %c0_117] : memref<4x8x1xf32, #tpu.memory_space<vmem>>, vector<1x8x1xf32>
      %249 = vector.shape_cast %248 : vector<1x8x1xf32> to vector<8x1xf32>
      %250 = tpu.reciprocal %249 {approx = true} : vector<8x1xf32> -> vector<8x1xf32>
      %c0_118 = arith.constant 0 : index
      %c0_119 = arith.constant 0 : index
      %c0_120 = arith.constant 0 : index
      %251 = vector.load %arg12[%c0_118, %c0_119, %c0_120] : memref<4x8x8xf32, #tpu.memory_space<vmem>>, vector<1x8x8xf32>
      %252 = vector.shape_cast %251 : vector<1x8x8xf32> to vector<8x8xf32>
      %253 = vector.broadcast %250 : vector<8x1xf32> to vector<8x8xf32>
      %254 = arith.mulf %252, %253 : vector<8x8xf32>
      %c1_121 = arith.constant 1 : index
      %c0_122 = arith.constant 0 : index
      %c0_123 = arith.constant 0 : index
      %255 = vector.load %arg11[%c1_121, %c0_122, %c0_123] : memref<4x8x1xf32, #tpu.memory_space<vmem>>, vector<1x8x1xf32>
      %256 = vector.shape_cast %255 : vector<1x8x1xf32> to vector<8x1xf32>
      %257 = tpu.reciprocal %256 {approx = true} : vector<8x1xf32> -> vector<8x1xf32>
      %c1_124 = arith.constant 1 : index
      %c0_125 = arith.constant 0 : index
      %c0_126 = arith.constant 0 : index
      %258 = vector.load %arg12[%c1_124, %c0_125, %c0_126] : memref<4x8x8xf32, #tpu.memory_space<vmem>>, vector<1x8x8xf32>
      %259 = vector.shape_cast %258 : vector<1x8x8xf32> to vector<8x8xf32>
      %260 = vector.broadcast %257 : vector<8x1xf32> to vector<8x8xf32>
      %261 = arith.mulf %259, %260 : vector<8x8xf32>
      %c2_127 = arith.constant 2 : index
      %c0_128 = arith.constant 0 : index
      %c0_129 = arith.constant 0 : index
      %262 = vector.load %arg11[%c2_127, %c0_128, %c0_129] : memref<4x8x1xf32, #tpu.memory_space<vmem>>, vector<1x8x1xf32>
      %263 = vector.shape_cast %262 : vector<1x8x1xf32> to vector<8x1xf32>
      %264 = tpu.reciprocal %263 {approx = true} : vector<8x1xf32> -> vector<8x1xf32>
      %c2_130 = arith.constant 2 : index
      %c0_131 = arith.constant 0 : index
      %c0_132 = arith.constant 0 : index
      %265 = vector.load %arg12[%c2_130, %c0_131, %c0_132] : memref<4x8x8xf32, #tpu.memory_space<vmem>>, vector<1x8x8xf32>
      %266 = vector.shape_cast %265 : vector<1x8x8xf32> to vector<8x8xf32>
      %267 = vector.broadcast %264 : vector<8x1xf32> to vector<8x8xf32>
      %268 = arith.mulf %266, %267 : vector<8x8xf32>
      %c3_133 = arith.constant 3 : index
      %c0_134 = arith.constant 0 : index
      %c0_135 = arith.constant 0 : index
      %269 = vector.load %arg11[%c3_133, %c0_134, %c0_135] : memref<4x8x1xf32, #tpu.memory_space<vmem>>, vector<1x8x1xf32>
      %270 = vector.shape_cast %269 : vector<1x8x1xf32> to vector<8x1xf32>
      %271 = tpu.reciprocal %270 {approx = true} : vector<8x1xf32> -> vector<8x1xf32>
      %c3_136 = arith.constant 3 : index
      %c0_137 = arith.constant 0 : index
      %c0_138 = arith.constant 0 : index
      %272 = vector.load %arg12[%c3_136, %c0_137, %c0_138] : memref<4x8x8xf32, #tpu.memory_space<vmem>>, vector<1x8x8xf32>
      %273 = vector.shape_cast %272 : vector<1x8x8xf32> to vector<8x8xf32>
      %274 = vector.broadcast %271 : vector<8x1xf32> to vector<8x8xf32>
      %275 = arith.mulf %273, %274 : vector<8x8xf32>
      %276 = tpu.concatenate %254, %261, %268, %275 in 1 : vector<8x8xf32>, vector<8x8xf32>, vector<8x8xf32>, vector<8x8xf32> -> vector<8x32xf32>
      %277 = arith.truncf %276 : vector<8x32xf32> to vector<8x32xbf16>
      %c0_139 = arith.constant 0 : index
      %c0_140 = arith.constant 0 : index
      %c0_141 = arith.constant 0 : index
      %278 = vector.load %arg9[%c0_139, %c0_140, %c0_141] : memref<1x8x32xbf16, #tpu.memory_space<vmem>>, vector<1x8x32xbf16>
      %279 = vector.shape_cast %278 : vector<1x8x32xbf16> to vector<8x32xbf16>
      %280 = vector.shape_cast %277 : vector<8x32xbf16> to vector<1x8x32xbf16>
      tpu.vector_store %arg9[%c0_139, %c0_140, %c0_141], %280 {strides = array<i32>} : memref<1x8x32xbf16, #tpu.memory_space<vmem>>, vector<1x8x32xbf16>,
    } else {
    }
    return
  }
  func.func @transform_0(%arg0: i32, %arg1: i32) -> (i32, i32, i32) {
    %c0_i32 = arith.constant 0 : i32
    %c0_i32_0 = arith.constant 0 : i32
    %c0_i32_1 = arith.constant 0 : i32
    return %arg0, %c0_i32, %c0_i32_0 : i32, i32, i32
  }
  func.func @transform_1(%arg0: i32, %arg1: i32) -> (i32, i32, i32) {
    %c0_i32 = arith.constant 0 : i32
    %c0_i32_0 = arith.constant 0 : i32
    return %arg0, %arg1, %c0_i32 : i32, i32, i32
  }
  func.func @transform_2(%arg0: i32, %arg1: i32) -> (i32, i32, i32) {
    %c0_i32 = arith.constant 0 : i32
    %c0_i32_0 = arith.constant 0 : i32
    return %arg0, %arg1, %c0_i32 : i32, i32, i32
  }
  func.func @transform_3(%arg0: i32, %arg1: i32) -> (i32, i32) {
    %c0_i32 = arith.constant 0 : i32
    %c0_i32_0 = arith.constant 0 : i32
    %c0_i32_1 = arith.constant 0 : i32
    return %c0_i32, %c0_i32_0 : i32, i32
  }
  func.func @transform_4(%arg0: i32, %arg1: i32) -> (i32, i32) {
    %c0_i32 = arith.constant 0 : i32
    %c0_i32_0 = arith.constant 0 : i32
    %c0_i32_1 = arith.constant 0 : i32
    return %c0_i32, %c0_i32_0 : i32, i32
  }
  func.func @transform_5(%arg0: i32, %arg1: i32) -> (i32, i32) {
    %c0_i32 = arith.constant 0 : i32
    %c0_i32_0 = arith.constant 0 : i32
    return %arg1, %c0_i32 : i32, i32
  }
  func.func @transform_6(%arg0: i32, %arg1: i32) -> (i32, i32) {
    %c0_i32 = arith.constant 0 : i32
    %c0_i32_0 = arith.constant 0 : i32
    return %arg1, %c0_i32 : i32, i32
  }
  func.func @transform_7(%arg0: i32, %arg1: i32) -> (i32, i32, i32) {
    %c0_i32 = arith.constant 0 : i32
    %c0_i32_0 = arith.constant 0 : i32
    %c0_i32_1 = arith.constant 0 : i32
    return %arg0, %c0_i32, %c0_i32_0 : i32, i32, i32
  }
}

module attributes {stable_mosaic.version = 11 : i64} {
  func.func @kernel(%arg0: i32, %arg1: i32, %arg2: memref<1x8x32xbf16, #tpu.memory_space<vmem>>, %arg3: memref<32x32xbf16, #tpu.memory_space<vmem>>, %arg4: memref<1x32xbf16, #tpu.memory_space<vmem>>, %arg5: memref<1x8x32xbf16, #tpu.memory_space<vmem>>) attributes {dimension_semantics = [#tpu.dimension_semantics<parallel>, #tpu.dimension_semantics<parallel>], iteration_bounds = array<i64: 2, 1>, scalar_prefetch = 0 : i64, scratch_operands = 0 : i64, tpu.core_type = #tpu.core_type<tc>, window_params = [{transform_indices = @transform_0, window_bounds = array<i64: 1, 8, 32>}, {pipeline_mode = #tpu.pipeline_mode<synchronous>, transform_indices = @transform_1, window_bounds = array<i64: 32, 32>}, {pipeline_mode = #tpu.pipeline_mode<synchronous>, transform_indices = @transform_2, window_bounds = array<i64: 1, 32>}, {transform_indices = @transform_3, window_bounds = array<i64: 1, 8, 32>}]} {
    %c0 = arith.constant 0 : index
    %c0_0 = arith.constant 0 : index
    %c0_1 = arith.constant 0 : index
    %0 = vector.load %arg2[%c0, %c0_0, %c0_1] : memref<1x8x32xbf16, #tpu.memory_space<vmem>>, vector<1x8x32xbf16>
    %1 = vector.shape_cast %0 : vector<1x8x32xbf16> to vector<8x32xbf16>
    %2 = arith.extf %1 : vector<8x32xbf16> to vector<8x32xf32>
    %cst = arith.constant dense<0.000000e+00> : vector<8xf32>
    %3 = vector.multi_reduction <add>, %2, %cst [1] : vector<8x32xf32> to vector<8xf32>
    %4 = vector.shape_cast %3 : vector<8xf32> to vector<8x1xf32>
    %cst_2 = arith.constant 3.200000e+01 : f32
    %5 = vector.broadcast %cst_2 : f32 to vector<8x1xf32>
    %6 = arith.divf %4, %5 : vector<8x1xf32>
    %7 = vector.broadcast %6 : vector<8x1xf32> to vector<8x32xf32>
    %8 = arith.subf %2, %7 : vector<8x32xf32>
    %9 = arith.mulf %8, %8 : vector<8x32xf32>
    %cst_3 = arith.constant dense<0.000000e+00> : vector<8xf32>
    %10 = vector.multi_reduction <add>, %9, %cst_3 [1] : vector<8x32xf32> to vector<8xf32>
    %11 = vector.shape_cast %10 : vector<8xf32> to vector<8x1xf32>
    %cst_4 = arith.constant 3.200000e+01 : f32
    %12 = vector.broadcast %cst_4 : f32 to vector<8x1xf32>
    %13 = arith.divf %11, %12 : vector<8x1xf32>
    %14 = vector.broadcast %6 : vector<8x1xf32> to vector<8x32xf32>
    %15 = arith.subf %2, %14 : vector<8x32xf32>
    %cst_5 = arith.constant 9.99999974E-6 : f32
    %16 = vector.broadcast %cst_5 : f32 to vector<8x1xf32>
    %17 = arith.addf %13, %16 : vector<8x1xf32>
    %18 = math.rsqrt %17 : vector<8x1xf32>
    %19 = vector.broadcast %18 : vector<8x1xf32> to vector<8x32xf32>
    %20 = arith.mulf %15, %19 : vector<8x32xf32>
    %21 = arith.truncf %20 : vector<8x32xf32> to vector<8x32xbf16>
    %c0_6 = arith.constant 0 : index
    %c0_7 = arith.constant 0 : index
    %22 = vector.load %arg3[%c0_6, %c0_7] : memref<32x32xbf16, #tpu.memory_space<vmem>>, vector<32x32xbf16>
    %cst_8 = arith.constant dense<0.000000e+00> : vector<8x32xf32>
    %23 = tpu.matmul %21, %22, %cst_8 {dimension_numbers = #tpu.dot_dimension_numbers<[1], [0], [0], [1], [0, 0, 1, 1], [], []>} : vector<8x32xbf16>, vector<32x32xbf16>, vector<8x32xf32> -> vector<8x32xf32>
    %c0_9 = arith.constant 0 : index
    %c0_10 = arith.constant 0 : index
    %24 = vector.load %arg4[%c0_9, %c0_10] : memref<1x32xbf16, #tpu.memory_space<vmem>>, vector<1x32xbf16>
    %25 = arith.extf %24 : vector<1x32xbf16> to vector<1x32xf32>
    %26 = vector.broadcast %25 : vector<1x32xf32> to vector<8x32xf32>
    %27 = arith.addf %23, %26 : vector<8x32xf32>
    %28 = arith.truncf %27 : vector<8x32xf32> to vector<8x32xbf16>
    %c0_11 = arith.constant 0 : index
    %c0_12 = arith.constant 0 : index
    %c0_13 = arith.constant 0 : index
    %29 = vector.load %arg5[%c0_11, %c0_12, %c0_13] : memref<1x8x32xbf16, #tpu.memory_space<vmem>>, vector<1x8x32xbf16>
    %30 = vector.shape_cast %29 : vector<1x8x32xbf16> to vector<8x32xbf16>
    %31 = vector.shape_cast %28 : vector<8x32xbf16> to vector<1x8x32xbf16>
    tpu.vector_store %arg5[%c0_11, %c0_12, %c0_13], %31 {strides = array<i32>} : memref<1x8x32xbf16, #tpu.memory_space<vmem>>, vector<1x8x32xbf16>,
    return
  }
  func.func @transform_0(%arg0: i32, %arg1: i32) -> (i32, i32, i32) {
    %c0_i32 = arith.constant 0 : i32
    %c0_i32_0 = arith.constant 0 : i32
    return %arg0, %arg1, %c0_i32 : i32, i32, i32
  }
  func.func @transform_1(%arg0: i32, %arg1: i32) -> (i32, i32) {
    %c0_i32 = arith.constant 0 : i32
    %c0_i32_0 = arith.constant 0 : i32
    %c0_i32_1 = arith.constant 0 : i32
    return %c0_i32, %c0_i32_0 : i32, i32
  }
  func.func @transform_2(%arg0: i32, %arg1: i32) -> (i32, i32) {
    %c0_i32 = arith.constant 0 : i32
    %c0_i32_0 = arith.constant 0 : i32
    %c0_i32_1 = arith.constant 0 : i32
    return %c0_i32, %c0_i32_0 : i32, i32
  }
  func.func @transform_3(%arg0: i32, %arg1: i32) -> (i32, i32, i32) {
    %c0_i32 = arith.constant 0 : i32
    %c0_i32_0 = arith.constant 0 : i32
    return %arg0, %arg1, %c0_i32 : i32, i32, i32
  }
}

module attributes {stable_mosaic.version = 11 : i64} {
  func.func @_matmul_kernel(%arg0: i32, %arg1: i32, %arg2: i32, %arg3: memref<16x32xbf16, #tpu.memory_space<vmem>>, %arg4: memref<32x32xbf16, #tpu.memory_space<vmem>>, %arg5: memref<1x32xbf16, #tpu.memory_space<vmem>>, %arg6: memref<16x32xbf16, #tpu.memory_space<vmem>>, %arg7: memref<16x32xf32, #tpu.memory_space<vmem>>) attributes {dimension_semantics = [#tpu.dimension_semantics<parallel>, #tpu.dimension_semantics<parallel>, #tpu.dimension_semantics<arbitrary>], iteration_bounds = array<i64: 1, 1, 1>, scalar_prefetch = 0 : i64, scratch_operands = 1 : i64, tpu.core_type = #tpu.core_type<tc>, window_params = [{transform_indices = @transform_0, window_bounds = array<i64: 16, 32>}, {transform_indices = @transform_1, window_bounds = array<i64: 32, 32>}, {transform_indices = @transform_2, window_bounds = array<i64: 1, 32>}, {transform_indices = @transform_3, window_bounds = array<i64: 16, 32>}]} {
    %c0_i32 = arith.constant 0 : i32
    %0 = arith.cmpi eq, %arg2, %c0_i32 : i32
    %1 = arith.extui %0 : i1 to i32
    %c0_i32_0 = arith.constant 0 : i32
    %2 = arith.cmpi ne, %1, %c0_i32_0 : i32
    scf.if %2 {
      %cst_10 = arith.constant 0.000000e+00 : f32
      %12 = vector.broadcast %cst_10 : f32 to vector<16x32xf32>
      %c0_11 = arith.constant 0 : index
      %c0_12 = arith.constant 0 : index
      %13 = vector.load %arg7[%c0_11, %c0_12] : memref<16x32xf32, #tpu.memory_space<vmem>>, vector<16x32xf32>
      tpu.vector_store %arg7[%c0_11, %c0_12], %12 {strides = array<i32>} : memref<16x32xf32, #tpu.memory_space<vmem>>, vector<16x32xf32>,
    } else {
    }
    %c0 = arith.constant 0 : index
    %c0_1 = arith.constant 0 : index
    %3 = vector.load %arg7[%c0, %c0_1] : memref<16x32xf32, #tpu.memory_space<vmem>>, vector<16x32xf32>
    %c0_2 = arith.constant 0 : index
    %c0_3 = arith.constant 0 : index
    %4 = vector.load %arg3[%c0_2, %c0_3] : memref<16x32xbf16, #tpu.memory_space<vmem>>, vector<16x32xbf16>
    %c0_4 = arith.constant 0 : index
    %c0_5 = arith.constant 0 : index
    %5 = vector.load %arg4[%c0_4, %c0_5] : memref<32x32xbf16, #tpu.memory_space<vmem>>, vector<32x32xbf16>
    %cst = arith.constant dense<0.000000e+00> : vector<16x32xf32>
    %6 = tpu.matmul %4, %5, %cst {dimension_numbers = #tpu.dot_dimension_numbers<[1], [0], [0], [1], [0, 0, 1, 1], [], []>} : vector<16x32xbf16>, vector<32x32xbf16>, vector<16x32xf32> -> vector<16x32xf32>
    %7 = arith.addf %3, %6 : vector<16x32xf32>
    %c0_6 = arith.constant 0 : index
    %c0_7 = arith.constant 0 : index
    %8 = vector.load %arg7[%c0_6, %c0_7] : memref<16x32xf32, #tpu.memory_space<vmem>>, vector<16x32xf32>
    tpu.vector_store %arg7[%c0_6, %c0_7], %7 {strides = array<i32>} : memref<16x32xf32, #tpu.memory_space<vmem>>, vector<16x32xf32>,
    %c0_i32_8 = arith.constant 0 : i32
    %9 = arith.cmpi eq, %arg2, %c0_i32_8 : i32
    %10 = arith.extui %9 : i1 to i32
    %c0_i32_9 = arith.constant 0 : i32
    %11 = arith.cmpi ne, %10, %c0_i32_9 : i32
    scf.if %11 {
      %c0_10 = arith.constant 0 : index
      %c0_11 = arith.constant 0 : index
      %12 = vector.load %arg7[%c0_10, %c0_11] : memref<16x32xf32, #tpu.memory_space<vmem>>, vector<16x32xf32>
      %c0_12 = arith.constant 0 : index
      %c0_13 = arith.constant 0 : index
      %13 = vector.load %arg5[%c0_12, %c0_13] : memref<1x32xbf16, #tpu.memory_space<vmem>>, vector<1x32xbf16>
      %14 = arith.extf %13 : vector<1x32xbf16> to vector<1x32xf32>
      %15 = vector.broadcast %14 : vector<1x32xf32> to vector<16x32xf32>
      %16 = arith.addf %12, %15 : vector<16x32xf32>
      %17 = arith.truncf %16 : vector<16x32xf32> to vector<16x32xbf16>
      %c0_14 = arith.constant 0 : index
      %c0_15 = arith.constant 0 : index
      %18 = vector.load %arg6[%c0_14, %c0_15] : memref<16x32xbf16, #tpu.memory_space<vmem>>, vector<16x32xbf16>
      tpu.vector_store %arg6[%c0_14, %c0_15], %17 {strides = array<i32>} : memref<16x32xbf16, #tpu.memory_space<vmem>>, vector<16x32xbf16>,
    } else {
    }
    return
  }
  func.func @transform_0(%arg0: i32, %arg1: i32, %arg2: i32) -> (i32, i32) {
    %c0_i32 = arith.constant 0 : i32
    return %arg0, %arg2 : i32, i32
  }
  func.func @transform_1(%arg0: i32, %arg1: i32, %arg2: i32) -> (i32, i32) {
    %c0_i32 = arith.constant 0 : i32
    return %arg2, %arg1 : i32, i32
  }
  func.func @transform_2(%arg0: i32, %arg1: i32, %arg2: i32) -> (i32, i32) {
    %c0_i32 = arith.constant 0 : i32
    %c0_i32_0 = arith.constant 0 : i32
    return %c0_i32, %arg1 : i32, i32
  }
  func.func @transform_3(%arg0: i32, %arg1: i32, %arg2: i32) -> (i32, i32) {
    %c0_i32 = arith.constant 0 : i32
    return %arg0, %arg1 : i32, i32
  }
}

module attributes {stable_mosaic.version = 11 : i64} {
  func.func @_flash_attn_kernel(%arg0: i32, %arg1: i32, %arg2: memref<1x8x32xbf16, #tpu.memory_space<vmem>>, %arg3: memref<1x8x32xbf16, #tpu.memory_space<vmem>>, %arg4: memref<1x8x32xbf16, #tpu.memory_space<vmem>>, %arg5: memref<1x8x32xbf16, #tpu.memory_space<vmem>>, %arg6: memref<4x8x1xf32, #tpu.memory_space<vmem>>, %arg7: memref<4x8x1xf32, #tpu.memory_space<vmem>>, %arg8: memref<4x8x8xf32, #tpu.memory_space<vmem>>) attributes {dimension_semantics = [#tpu.dimension_semantics<parallel>, #tpu.dimension_semantics<arbitrary>], iteration_bounds = array<i64: 2, 1>, scalar_prefetch = 0 : i64, scratch_operands = 3 : i64, tpu.core_type = #tpu.core_type<tc>, window_params = [{transform_indices = @transform_0, window_bounds = array<i64: 1, 8, 32>}, {transform_indices = @transform_1, window_bounds = array<i64: 1, 8, 32>}, {transform_indices = @transform_2, window_bounds = array<i64: 1, 8, 32>}, {transform_indices = @transform_3, window_bounds = array<i64: 1, 8, 32>}]} {
    %c0_i32 = arith.constant 0 : i32
    %0 = arith.cmpi eq, %arg1, %c0_i32 : i32
    %1 = arith.extui %0 : i1 to i32
    %c0_i32_0 = arith.constant 0 : i32
    %2 = arith.cmpi ne, %1, %c0_i32_0 : i32
    scf.if %2 {
      %cst_99 = arith.constant 0xFF800000 : f32
      %164 = vector.broadcast %cst_99 : f32 to vector<4x8x1xf32>
      %c0_100 = arith.constant 0 : index
      %c0_101 = arith.constant 0 : index
      %c0_102 = arith.constant 0 : index
      %165 = vector.load %arg6[%c0_100, %c0_101, %c0_102] : memref<4x8x1xf32, #tpu.memory_space<vmem>>, vector<4x8x1xf32>
      tpu.vector_store %arg6[%c0_100, %c0_101, %c0_102], %164 {strides = array<i32>} : memref<4x8x1xf32, #tpu.memory_space<vmem>>, vector<4x8x1xf32>,
      %cst_103 = arith.constant 0.000000e+00 : f32
      %166 = vector.broadcast %cst_103 : f32 to vector<4x8x1xf32>
      %c0_104 = arith.constant 0 : index
      %c0_105 = arith.constant 0 : index
      %c0_106 = arith.constant 0 : index
      %167 = vector.load %arg7[%c0_104, %c0_105, %c0_106] : memref<4x8x1xf32, #tpu.memory_space<vmem>>, vector<4x8x1xf32>
      tpu.vector_store %arg7[%c0_104, %c0_105, %c0_106], %166 {strides = array<i32>} : memref<4x8x1xf32, #tpu.memory_space<vmem>>, vector<4x8x1xf32>,
      %cst_107 = arith.constant 0.000000e+00 : f32
      %168 = vector.broadcast %cst_107 : f32 to vector<4x8x8xf32>
      %c0_108 = arith.constant 0 : index
      %c0_109 = arith.constant 0 : index
      %c0_110 = arith.constant 0 : index
      %169 = vector.load %arg8[%c0_108, %c0_109, %c0_110] : memref<4x8x8xf32, #tpu.memory_space<vmem>>, vector<4x8x8xf32>
      tpu.vector_store %arg8[%c0_108, %c0_109, %c0_110], %168 {strides = array<i32>} : memref<4x8x8xf32, #tpu.memory_space<vmem>>, vector<4x8x8xf32>,
    } else {
    }
    %c0 = arith.constant 0 : index
    %c0_1 = arith.constant 0 : index
    %c0_2 = arith.constant 0 : index
    %3 = vector.load %arg2[%c0, %c0_1, %c0_2] : memref<1x8x32xbf16, #tpu.memory_space<vmem>>, vector<1x8x32xbf16>
    %4 = vector.shape_cast %3 : vector<1x8x32xbf16> to vector<8x32xbf16>
    %c0_3 = arith.constant 0 : index
    %c0_4 = arith.constant 0 : index
    %c0_5 = arith.constant 0 : index
    %5 = vector.load %arg3[%c0_3, %c0_4, %c0_5] : memref<1x8x32xbf16, #tpu.memory_space<vmem>>, vector<1x8x32xbf16>
    %6 = vector.shape_cast %5 : vector<1x8x32xbf16> to vector<8x32xbf16>
    %c0_6 = arith.constant 0 : index
    %c0_7 = arith.constant 0 : index
    %c0_8 = arith.constant 0 : index
    %7 = vector.load %arg4[%c0_6, %c0_7, %c0_8] : memref<1x8x32xbf16, #tpu.memory_space<vmem>>, vector<1x8x32xbf16>
    %8 = vector.shape_cast %7 : vector<1x8x32xbf16> to vector<8x32xbf16>
    %9 = vector.extract_strided_slice %4 {offsets = [0, 0], sizes = [8, 8], strides = [1, 1]} : vector<8x32xbf16> to vector<8x8xbf16>
    %10 = vector.extract_strided_slice %6 {offsets = [0, 0], sizes = [8, 8], strides = [1, 1]} : vector<8x32xbf16> to vector<8x8xbf16>
    %11 = vector.extract_strided_slice %8 {offsets = [0, 0], sizes = [8, 8], strides = [1, 1]} : vector<8x32xbf16> to vector<8x8xbf16>
    %cst = arith.constant dense<0.000000e+00> : vector<8x8xf32>
    %12 = tpu.matmul %9, %10, %cst {dimension_numbers = #tpu.dot_dimension_numbers<[1], [1], [0], [0], [0, 0, 1, 0], [], []>} : vector<8x8xbf16>, vector<8x8xbf16>, vector<8x8xf32> -> vector<8x8xf32>
    %cst_9 = arith.constant 0.353553385 : f32
    %13 = vector.broadcast %cst_9 : f32 to vector<8x8xf32>
    %14 = arith.mulf %12, %13 : vector<8x8xf32>
    %c0_10 = arith.constant 0 : index
    %c0_11 = arith.constant 0 : index
    %c0_12 = arith.constant 0 : index
    %15 = vector.load %arg6[%c0_10, %c0_11, %c0_12] : memref<4x8x1xf32, #tpu.memory_space<vmem>>, vector<1x8x1xf32>
    %16 = vector.shape_cast %15 : vector<1x8x1xf32> to vector<8x1xf32>
    %c0_13 = arith.constant 0 : index
    %c0_14 = arith.constant 0 : index
    %c0_15 = arith.constant 0 : index
    %17 = vector.load %arg7[%c0_13, %c0_14, %c0_15] : memref<4x8x1xf32, #tpu.memory_space<vmem>>, vector<1x8x1xf32>
    %18 = vector.shape_cast %17 : vector<1x8x1xf32> to vector<8x1xf32>
    %cst_16 = arith.constant dense<0xFF800000> : vector<8xf32>
    %19 = vector.multi_reduction <maximumf>, %14, %cst_16 [1] : vector<8x8xf32> to vector<8xf32>
    %20 = vector.shape_cast %19 : vector<8xf32> to vector<8x1xf32>
    %21 = arith.maximumf %16, %20 : vector<8x1xf32>
    %22 = arith.subf %16, %21 : vector<8x1xf32>
    %23 = math.exp %22 : vector<8x1xf32>
    %24 = vector.broadcast %21 : vector<8x1xf32> to vector<8x8xf32>
    %25 = arith.subf %14, %24 : vector<8x8xf32>
    %26 = math.exp %25 : vector<8x8xf32>
    %27 = arith.mulf %23, %18 : vector<8x1xf32>
    %cst_17 = arith.constant dense<0.000000e+00> : vector<8xf32>
    %28 = vector.multi_reduction <add>, %26, %cst_17 [1] : vector<8x8xf32> to vector<8xf32>
    %29 = vector.shape_cast %28 : vector<8xf32> to vector<8x1xf32>
    %30 = arith.addf %27, %29 : vector<8x1xf32>
    %c0_18 = arith.constant 0 : index
    %c0_19 = arith.constant 0 : index
    %c0_20 = arith.constant 0 : index
    %31 = vector.load %arg7[%c0_18, %c0_19, %c0_20] : memref<4x8x1xf32, #tpu.memory_space<vmem>>, vector<1x8x1xf32>
    %32 = vector.shape_cast %31 : vector<1x8x1xf32> to vector<8x1xf32>
    %33 = vector.shape_cast %30 : vector<8x1xf32> to vector<1x8x1xf32>
    tpu.vector_store %arg7[%c0_18, %c0_19, %c0_20], %33 {strides = array<i32>} : memref<4x8x1xf32, #tpu.memory_space<vmem>>, vector<1x8x1xf32>,
    %c0_21 = arith.constant 0 : index
    %c0_22 = arith.constant 0 : index
    %c0_23 = arith.constant 0 : index
    %34 = vector.load %arg8[%c0_21, %c0_22, %c0_23] : memref<4x8x8xf32, #tpu.memory_space<vmem>>, vector<1x8x8xf32>
    %35 = vector.shape_cast %34 : vector<1x8x8xf32> to vector<8x8xf32>
    %36 = vector.broadcast %23 : vector<8x1xf32> to vector<8x8xf32>
    %37 = arith.mulf %36, %35 : vector<8x8xf32>
    %38 = arith.truncf %26 : vector<8x8xf32> to vector<8x8xbf16>
    %cst_24 = arith.constant dense<0.000000e+00> : vector<8x8xf32>
    %39 = tpu.matmul %38, %11, %cst_24 {dimension_numbers = #tpu.dot_dimension_numbers<[1], [0], [0], [1], [0, 0, 1, 1], [], []>} : vector<8x8xbf16>, vector<8x8xbf16>, vector<8x8xf32> -> vector<8x8xf32>
    %40 = arith.addf %37, %39 : vector<8x8xf32>
    %c0_25 = arith.constant 0 : index
    %c0_26 = arith.constant 0 : index
    %c0_27 = arith.constant 0 : index
    %41 = vector.load %arg8[%c0_25, %c0_26, %c0_27] : memref<4x8x8xf32, #tpu.memory_space<vmem>>, vector<1x8x8xf32>
    %42 = vector.shape_cast %41 : vector<1x8x8xf32> to vector<8x8xf32>
    %43 = vector.shape_cast %40 : vector<8x8xf32> to vector<1x8x8xf32>
    tpu.vector_store %arg8[%c0_25, %c0_26, %c0_27], %43 {strides = array<i32>} : memref<4x8x8xf32, #tpu.memory_space<vmem>>, vector<1x8x8xf32>,
    %c0_28 = arith.constant 0 : index
    %c0_29 = arith.constant 0 : index
    %c0_30 = arith.constant 0 : index
    %44 = vector.load %arg6[%c0_28, %c0_29, %c0_30] : memref<4x8x1xf32, #tpu.memory_space<vmem>>, vector<1x8x1xf32>
    %45 = vector.shape_cast %44 : vector<1x8x1xf32> to vector<8x1xf32>
    %46 = vector.shape_cast %21 : vector<8x1xf32> to vector<1x8x1xf32>
    tpu.vector_store %arg6[%c0_28, %c0_29, %c0_30], %46 {strides = array<i32>} : memref<4x8x1xf32, #tpu.memory_space<vmem>>, vector<1x8x1xf32>,
    %47 = vector.extract_strided_slice %4 {offsets = [0, 8], sizes = [8, 8], strides = [1, 1]} : vector<8x32xbf16> to vector<8x8xbf16>
    %48 = vector.extract_strided_slice %6 {offsets = [0, 8], sizes = [8, 8], strides = [1, 1]} : vector<8x32xbf16> to vector<8x8xbf16>
    %49 = vector.extract_strided_slice %8 {offsets = [0, 8], sizes = [8, 8], strides = [1, 1]} : vector<8x32xbf16> to vector<8x8xbf16>
    %cst_31 = arith.constant dense<0.000000e+00> : vector<8x8xf32>
    %50 = tpu.matmul %47, %48, %cst_31 {dimension_numbers = #tpu.dot_dimension_numbers<[1], [1], [0], [0], [0, 0, 1, 0], [], []>} : vector<8x8xbf16>, vector<8x8xbf16>, vector<8x8xf32> -> vector<8x8xf32>
    %cst_32 = arith.constant 0.353553385 : f32
    %51 = vector.broadcast %cst_32 : f32 to vector<8x8xf32>
    %52 = arith.mulf %50, %51 : vector<8x8xf32>
    %c1 = arith.constant 1 : index
    %c0_33 = arith.constant 0 : index
    %c0_34 = arith.constant 0 : index
    %53 = vector.load %arg6[%c1, %c0_33, %c0_34] : memref<4x8x1xf32, #tpu.memory_space<vmem>>, vector<1x8x1xf32>
    %54 = vector.shape_cast %53 : vector<1x8x1xf32> to vector<8x1xf32>
    %c1_35 = arith.constant 1 : index
    %c0_36 = arith.constant 0 : index
    %c0_37 = arith.constant 0 : index
    %55 = vector.load %arg7[%c1_35, %c0_36, %c0_37] : memref<4x8x1xf32, #tpu.memory_space<vmem>>, vector<1x8x1xf32>
    %56 = vector.shape_cast %55 : vector<1x8x1xf32> to vector<8x1xf32>
    %cst_38 = arith.constant dense<0xFF800000> : vector<8xf32>
    %57 = vector.multi_reduction <maximumf>, %52, %cst_38 [1] : vector<8x8xf32> to vector<8xf32>
    %58 = vector.shape_cast %57 : vector<8xf32> to vector<8x1xf32>
    %59 = arith.maximumf %54, %58 : vector<8x1xf32>
    %60 = arith.subf %54, %59 : vector<8x1xf32>
    %61 = math.exp %60 : vector<8x1xf32>
    %62 = vector.broadcast %59 : vector<8x1xf32> to vector<8x8xf32>
    %63 = arith.subf %52, %62 : vector<8x8xf32>
    %64 = math.exp %63 : vector<8x8xf32>
    %65 = arith.mulf %61, %56 : vector<8x1xf32>
    %cst_39 = arith.constant dense<0.000000e+00> : vector<8xf32>
    %66 = vector.multi_reduction <add>, %64, %cst_39 [1] : vector<8x8xf32> to vector<8xf32>
    %67 = vector.shape_cast %66 : vector<8xf32> to vector<8x1xf32>
    %68 = arith.addf %65, %67 : vector<8x1xf32>
    %c1_40 = arith.constant 1 : index
    %c0_41 = arith.constant 0 : index
    %c0_42 = arith.constant 0 : index
    %69 = vector.load %arg7[%c1_40, %c0_41, %c0_42] : memref<4x8x1xf32, #tpu.memory_space<vmem>>, vector<1x8x1xf32>
    %70 = vector.shape_cast %69 : vector<1x8x1xf32> to vector<8x1xf32>
    %71 = vector.shape_cast %68 : vector<8x1xf32> to vector<1x8x1xf32>
    tpu.vector_store %arg7[%c1_40, %c0_41, %c0_42], %71 {strides = array<i32>} : memref<4x8x1xf32, #tpu.memory_space<vmem>>, vector<1x8x1xf32>,
    %c1_43 = arith.constant 1 : index
    %c0_44 = arith.constant 0 : index
    %c0_45 = arith.constant 0 : index
    %72 = vector.load %arg8[%c1_43, %c0_44, %c0_45] : memref<4x8x8xf32, #tpu.memory_space<vmem>>, vector<1x8x8xf32>
    %73 = vector.shape_cast %72 : vector<1x8x8xf32> to vector<8x8xf32>
    %74 = vector.broadcast %61 : vector<8x1xf32> to vector<8x8xf32>
    %75 = arith.mulf %74, %73 : vector<8x8xf32>
    %76 = arith.truncf %64 : vector<8x8xf32> to vector<8x8xbf16>
    %cst_46 = arith.constant dense<0.000000e+00> : vector<8x8xf32>
    %77 = tpu.matmul %76, %49, %cst_46 {dimension_numbers = #tpu.dot_dimension_numbers<[1], [0], [0], [1], [0, 0, 1, 1], [], []>} : vector<8x8xbf16>, vector<8x8xbf16>, vector<8x8xf32> -> vector<8x8xf32>
    %78 = arith.addf %75, %77 : vector<8x8xf32>
    %c1_47 = arith.constant 1 : index
    %c0_48 = arith.constant 0 : index
    %c0_49 = arith.constant 0 : index
    %79 = vector.load %arg8[%c1_47, %c0_48, %c0_49] : memref<4x8x8xf32, #tpu.memory_space<vmem>>, vector<1x8x8xf32>
    %80 = vector.shape_cast %79 : vector<1x8x8xf32> to vector<8x8xf32>
    %81 = vector.shape_cast %78 : vector<8x8xf32> to vector<1x8x8xf32>
    tpu.vector_store %arg8[%c1_47, %c0_48, %c0_49], %81 {strides = array<i32>} : memref<4x8x8xf32, #tpu.memory_space<vmem>>, vector<1x8x8xf32>,
    %c1_50 = arith.constant 1 : index
    %c0_51 = arith.constant 0 : index
    %c0_52 = arith.constant 0 : index
    %82 = vector.load %arg6[%c1_50, %c0_51, %c0_52] : memref<4x8x1xf32, #tpu.memory_space<vmem>>, vector<1x8x1xf32>
    %83 = vector.shape_cast %82 : vector<1x8x1xf32> to vector<8x1xf32>
    %84 = vector.shape_cast %59 : vector<8x1xf32> to vector<1x8x1xf32>
    tpu.vector_store %arg6[%c1_50, %c0_51, %c0_52], %84 {strides = array<i32>} : memref<4x8x1xf32, #tpu.memory_space<vmem>>, vector<1x8x1xf32>,
    %85 = vector.extract_strided_slice %4 {offsets = [0, 16], sizes = [8, 8], strides = [1, 1]} : vector<8x32xbf16> to vector<8x8xbf16>
    %86 = vector.extract_strided_slice %6 {offsets = [0, 16], sizes = [8, 8], strides = [1, 1]} : vector<8x32xbf16> to vector<8x8xbf16>
    %87 = vector.extract_strided_slice %8 {offsets = [0, 16], sizes = [8, 8], strides = [1, 1]} : vector<8x32xbf16> to vector<8x8xbf16>
    %cst_53 = arith.constant dense<0.000000e+00> : vector<8x8xf32>
    %88 = tpu.matmul %85, %86, %cst_53 {dimension_numbers = #tpu.dot_dimension_numbers<[1], [1], [0], [0], [0, 0, 1, 0], [], []>} : vector<8x8xbf16>, vector<8x8xbf16>, vector<8x8xf32> -> vector<8x8xf32>
    %cst_54 = arith.constant 0.353553385 : f32
    %89 = vector.broadcast %cst_54 : f32 to vector<8x8xf32>
    %90 = arith.mulf %88, %89 : vector<8x8xf32>
    %c2 = arith.constant 2 : index
    %c0_55 = arith.constant 0 : index
    %c0_56 = arith.constant 0 : index
    %91 = vector.load %arg6[%c2, %c0_55, %c0_56] : memref<4x8x1xf32, #tpu.memory_space<vmem>>, vector<1x8x1xf32>
    %92 = vector.shape_cast %91 : vector<1x8x1xf32> to vector<8x1xf32>
    %c2_57 = arith.constant 2 : index
    %c0_58 = arith.constant 0 : index
    %c0_59 = arith.constant 0 : index
    %93 = vector.load %arg7[%c2_57, %c0_58, %c0_59] : memref<4x8x1xf32, #tpu.memory_space<vmem>>, vector<1x8x1xf32>
    %94 = vector.shape_cast %93 : vector<1x8x1xf32> to vector<8x1xf32>
    %cst_60 = arith.constant dense<0xFF800000> : vector<8xf32>
    %95 = vector.multi_reduction <maximumf>, %90, %cst_60 [1] : vector<8x8xf32> to vector<8xf32>
    %96 = vector.shape_cast %95 : vector<8xf32> to vector<8x1xf32>
    %97 = arith.maximumf %92, %96 : vector<8x1xf32>
    %98 = arith.subf %92, %97 : vector<8x1xf32>
    %99 = math.exp %98 : vector<8x1xf32>
    %100 = vector.broadcast %97 : vector<8x1xf32> to vector<8x8xf32>
    %101 = arith.subf %90, %100 : vector<8x8xf32>
    %102 = math.exp %101 : vector<8x8xf32>
    %103 = arith.mulf %99, %94 : vector<8x1xf32>
    %cst_61 = arith.constant dense<0.000000e+00> : vector<8xf32>
    %104 = vector.multi_reduction <add>, %102, %cst_61 [1] : vector<8x8xf32> to vector<8xf32>
    %105 = vector.shape_cast %104 : vector<8xf32> to vector<8x1xf32>
    %106 = arith.addf %103, %105 : vector<8x1xf32>
    %c2_62 = arith.constant 2 : index
    %c0_63 = arith.constant 0 : index
    %c0_64 = arith.constant 0 : index
    %107 = vector.load %arg7[%c2_62, %c0_63, %c0_64] : memref<4x8x1xf32, #tpu.memory_space<vmem>>, vector<1x8x1xf32>
    %108 = vector.shape_cast %107 : vector<1x8x1xf32> to vector<8x1xf32>
    %109 = vector.shape_cast %106 : vector<8x1xf32> to vector<1x8x1xf32>
    tpu.vector_store %arg7[%c2_62, %c0_63, %c0_64], %109 {strides = array<i32>} : memref<4x8x1xf32, #tpu.memory_space<vmem>>, vector<1x8x1xf32>,
    %c2_65 = arith.constant 2 : index
    %c0_66 = arith.constant 0 : index
    %c0_67 = arith.constant 0 : index
    %110 = vector.load %arg8[%c2_65, %c0_66, %c0_67] : memref<4x8x8xf32, #tpu.memory_space<vmem>>, vector<1x8x8xf32>
    %111 = vector.shape_cast %110 : vector<1x8x8xf32> to vector<8x8xf32>
    %112 = vector.broadcast %99 : vector<8x1xf32> to vector<8x8xf32>
    %113 = arith.mulf %112, %111 : vector<8x8xf32>
    %114 = arith.truncf %102 : vector<8x8xf32> to vector<8x8xbf16>
    %cst_68 = arith.constant dense<0.000000e+00> : vector<8x8xf32>
    %115 = tpu.matmul %114, %87, %cst_68 {dimension_numbers = #tpu.dot_dimension_numbers<[1], [0], [0], [1], [0, 0, 1, 1], [], []>} : vector<8x8xbf16>, vector<8x8xbf16>, vector<8x8xf32> -> vector<8x8xf32>
    %116 = arith.addf %113, %115 : vector<8x8xf32>
    %c2_69 = arith.constant 2 : index
    %c0_70 = arith.constant 0 : index
    %c0_71 = arith.constant 0 : index
    %117 = vector.load %arg8[%c2_69, %c0_70, %c0_71] : memref<4x8x8xf32, #tpu.memory_space<vmem>>, vector<1x8x8xf32>
    %118 = vector.shape_cast %117 : vector<1x8x8xf32> to vector<8x8xf32>
    %119 = vector.shape_cast %116 : vector<8x8xf32> to vector<1x8x8xf32>
    tpu.vector_store %arg8[%c2_69, %c0_70, %c0_71], %119 {strides = array<i32>} : memref<4x8x8xf32, #tpu.memory_space<vmem>>, vector<1x8x8xf32>,
    %c2_72 = arith.constant 2 : index
    %c0_73 = arith.constant 0 : index
    %c0_74 = arith.constant 0 : index
    %120 = vector.load %arg6[%c2_72, %c0_73, %c0_74] : memref<4x8x1xf32, #tpu.memory_space<vmem>>, vector<1x8x1xf32>
    %121 = vector.shape_cast %120 : vector<1x8x1xf32> to vector<8x1xf32>
    %122 = vector.shape_cast %97 : vector<8x1xf32> to vector<1x8x1xf32>
    tpu.vector_store %arg6[%c2_72, %c0_73, %c0_74], %122 {strides = array<i32>} : memref<4x8x1xf32, #tpu.memory_space<vmem>>, vector<1x8x1xf32>,
    %123 = vector.extract_strided_slice %4 {offsets = [0, 24], sizes = [8, 8], strides = [1, 1]} : vector<8x32xbf16> to vector<8x8xbf16>
    %124 = vector.extract_strided_slice %6 {offsets = [0, 24], sizes = [8, 8], strides = [1, 1]} : vector<8x32xbf16> to vector<8x8xbf16>
    %125 = vector.extract_strided_slice %8 {offsets = [0, 24], sizes = [8, 8], strides = [1, 1]} : vector<8x32xbf16> to vector<8x8xbf16>
    %cst_75 = arith.constant dense<0.000000e+00> : vector<8x8xf32>
    %126 = tpu.matmul %123, %124, %cst_75 {dimension_numbers = #tpu.dot_dimension_numbers<[1], [1], [0], [0], [0, 0, 1, 0], [], []>} : vector<8x8xbf16>, vector<8x8xbf16>, vector<8x8xf32> -> vector<8x8xf32>
    %cst_76 = arith.constant 0.353553385 : f32
    %127 = vector.broadcast %cst_76 : f32 to vector<8x8xf32>
    %128 = arith.mulf %126, %127 : vector<8x8xf32>
    %c3 = arith.constant 3 : index
    %c0_77 = arith.constant 0 : index
    %c0_78 = arith.constant 0 : index
    %129 = vector.load %arg6[%c3, %c0_77, %c0_78] : memref<4x8x1xf32, #tpu.memory_space<vmem>>, vector<1x8x1xf32>
    %130 = vector.shape_cast %129 : vector<1x8x1xf32> to vector<8x1xf32>
    %c3_79 = arith.constant 3 : index
    %c0_80 = arith.constant 0 : index
    %c0_81 = arith.constant 0 : index
    %131 = vector.load %arg7[%c3_79, %c0_80, %c0_81] : memref<4x8x1xf32, #tpu.memory_space<vmem>>, vector<1x8x1xf32>
    %132 = vector.shape_cast %131 : vector<1x8x1xf32> to vector<8x1xf32>
    %cst_82 = arith.constant dense<0xFF800000> : vector<8xf32>
    %133 = vector.multi_reduction <maximumf>, %128, %cst_82 [1] : vector<8x8xf32> to vector<8xf32>
    %134 = vector.shape_cast %133 : vector<8xf32> to vector<8x1xf32>
    %135 = arith.maximumf %130, %134 : vector<8x1xf32>
    %136 = arith.subf %130, %135 : vector<8x1xf32>
    %137 = math.exp %136 : vector<8x1xf32>
    %138 = vector.broadcast %135 : vector<8x1xf32> to vector<8x8xf32>
    %139 = arith.subf %128, %138 : vector<8x8xf32>
    %140 = math.exp %139 : vector<8x8xf32>
    %141 = arith.mulf %137, %132 : vector<8x1xf32>
    %cst_83 = arith.constant dense<0.000000e+00> : vector<8xf32>
    %142 = vector.multi_reduction <add>, %140, %cst_83 [1] : vector<8x8xf32> to vector<8xf32>
    %143 = vector.shape_cast %142 : vector<8xf32> to vector<8x1xf32>
    %144 = arith.addf %141, %143 : vector<8x1xf32>
    %c3_84 = arith.constant 3 : index
    %c0_85 = arith.constant 0 : index
    %c0_86 = arith.constant 0 : index
    %145 = vector.load %arg7[%c3_84, %c0_85, %c0_86] : memref<4x8x1xf32, #tpu.memory_space<vmem>>, vector<1x8x1xf32>
    %146 = vector.shape_cast %145 : vector<1x8x1xf32> to vector<8x1xf32>
    %147 = vector.shape_cast %144 : vector<8x1xf32> to vector<1x8x1xf32>
    tpu.vector_store %arg7[%c3_84, %c0_85, %c0_86], %147 {strides = array<i32>} : memref<4x8x1xf32, #tpu.memory_space<vmem>>, vector<1x8x1xf32>,
    %c3_87 = arith.constant 3 : index
    %c0_88 = arith.constant 0 : index
    %c0_89 = arith.constant 0 : index
    %148 = vector.load %arg8[%c3_87, %c0_88, %c0_89] : memref<4x8x8xf32, #tpu.memory_space<vmem>>, vector<1x8x8xf32>
    %149 = vector.shape_cast %148 : vector<1x8x8xf32> to vector<8x8xf32>
    %150 = vector.broadcast %137 : vector<8x1xf32> to vector<8x8xf32>
    %151 = arith.mulf %150, %149 : vector<8x8xf32>
    %152 = arith.truncf %140 : vector<8x8xf32> to vector<8x8xbf16>
    %cst_90 = arith.constant dense<0.000000e+00> : vector<8x8xf32>
    %153 = tpu.matmul %152, %125, %cst_90 {dimension_numbers = #tpu.dot_dimension_numbers<[1], [0], [0], [1], [0, 0, 1, 1], [], []>} : vector<8x8xbf16>, vector<8x8xbf16>, vector<8x8xf32> -> vector<8x8xf32>
    %154 = arith.addf %151, %153 : vector<8x8xf32>
    %c3_91 = arith.constant 3 : index
    %c0_92 = arith.constant 0 : index
    %c0_93 = arith.constant 0 : index
    %155 = vector.load %arg8[%c3_91, %c0_92, %c0_93] : memref<4x8x8xf32, #tpu.memory_space<vmem>>, vector<1x8x8xf32>
    %156 = vector.shape_cast %155 : vector<1x8x8xf32> to vector<8x8xf32>
    %157 = vector.shape_cast %154 : vector<8x8xf32> to vector<1x8x8xf32>
    tpu.vector_store %arg8[%c3_91, %c0_92, %c0_93], %157 {strides = array<i32>} : memref<4x8x8xf32, #tpu.memory_space<vmem>>, vector<1x8x8xf32>,
    %c3_94 = arith.constant 3 : index
    %c0_95 = arith.constant 0 : index
    %c0_96 = arith.constant 0 : index
    %158 = vector.load %arg6[%c3_94, %c0_95, %c0_96] : memref<4x8x1xf32, #tpu.memory_space<vmem>>, vector<1x8x1xf32>
    %159 = vector.shape_cast %158 : vector<1x8x1xf32> to vector<8x1xf32>
    %160 = vector.shape_cast %135 : vector<8x1xf32> to vector<1x8x1xf32>
    tpu.vector_store %arg6[%c3_94, %c0_95, %c0_96], %160 {strides = array<i32>} : memref<4x8x1xf32, #tpu.memory_space<vmem>>, vector<1x8x1xf32>,
    %c0_i32_97 = arith.constant 0 : i32
    %161 = arith.cmpi eq, %arg1, %c0_i32_97 : i32
    %162 = arith.extui %161 : i1 to i32
    %c0_i32_98 = arith.constant 0 : i32
    %163 = arith.cmpi ne, %162, %c0_i32_98 : i32
    scf.if %163 {
      %c0_99 = arith.constant 0 : index
      %c0_100 = arith.constant 0 : index
      %c0_101 = arith.constant 0 : index
      %164 = vector.load %arg7[%c0_99, %c0_100, %c0_101] : memref<4x8x1xf32, #tpu.memory_space<vmem>>, vector<1x8x1xf32>
      %165 = vector.shape_cast %164 : vector<1x8x1xf32> to vector<8x1xf32>
      %166 = tpu.reciprocal %165 {approx = true} : vector<8x1xf32> -> vector<8x1xf32>
      %c0_102 = arith.constant 0 : index
      %c0_103 = arith.constant 0 : index
      %c0_104 = arith.constant 0 : index
      %167 = vector.load %arg8[%c0_102, %c0_103, %c0_104] : memref<4x8x8xf32, #tpu.memory_space<vmem>>, vector<1x8x8xf32>
      %168 = vector.shape_cast %167 : vector<1x8x8xf32> to vector<8x8xf32>
      %169 = vector.broadcast %166 : vector<8x1xf32> to vector<8x8xf32>
      %170 = arith.mulf %168, %169 : vector<8x8xf32>
      %c1_105 = arith.constant 1 : index
      %c0_106 = arith.constant 0 : index
      %c0_107 = arith.constant 0 : index
      %171 = vector.load %arg7[%c1_105, %c0_106, %c0_107] : memref<4x8x1xf32, #tpu.memory_space<vmem>>, vector<1x8x1xf32>
      %172 = vector.shape_cast %171 : vector<1x8x1xf32> to vector<8x1xf32>
      %173 = tpu.reciprocal %172 {approx = true} : vector<8x1xf32> -> vector<8x1xf32>
      %c1_108 = arith.constant 1 : index
      %c0_109 = arith.constant 0 : index
      %c0_110 = arith.constant 0 : index
      %174 = vector.load %arg8[%c1_108, %c0_109, %c0_110] : memref<4x8x8xf32, #tpu.memory_space<vmem>>, vector<1x8x8xf32>
      %175 = vector.shape_cast %174 : vector<1x8x8xf32> to vector<8x8xf32>
      %176 = vector.broadcast %173 : vector<8x1xf32> to vector<8x8xf32>
      %177 = arith.mulf %175, %176 : vector<8x8xf32>
      %c2_111 = arith.constant 2 : index
      %c0_112 = arith.constant 0 : index
      %c0_113 = arith.constant 0 : index
      %178 = vector.load %arg7[%c2_111, %c0_112, %c0_113] : memref<4x8x1xf32, #tpu.memory_space<vmem>>, vector<1x8x1xf32>
      %179 = vector.shape_cast %178 : vector<1x8x1xf32> to vector<8x1xf32>
      %180 = tpu.reciprocal %179 {approx = true} : vector<8x1xf32> -> vector<8x1xf32>
      %c2_114 = arith.constant 2 : index
      %c0_115 = arith.constant 0 : index
      %c0_116 = arith.constant 0 : index
      %181 = vector.load %arg8[%c2_114, %c0_115, %c0_116] : memref<4x8x8xf32, #tpu.memory_space<vmem>>, vector<1x8x8xf32>
      %182 = vector.shape_cast %181 : vector<1x8x8xf32> to vector<8x8xf32>
      %183 = vector.broadcast %180 : vector<8x1xf32> to vector<8x8xf32>
      %184 = arith.mulf %182, %183 : vector<8x8xf32>
      %c3_117 = arith.constant 3 : index
      %c0_118 = arith.constant 0 : index
      %c0_119 = arith.constant 0 : index
      %185 = vector.load %arg7[%c3_117, %c0_118, %c0_119] : memref<4x8x1xf32, #tpu.memory_space<vmem>>, vector<1x8x1xf32>
      %186 = vector.shape_cast %185 : vector<1x8x1xf32> to vector<8x1xf32>
      %187 = tpu.reciprocal %186 {approx = true} : vector<8x1xf32> -> vector<8x1xf32>
      %c3_120 = arith.constant 3 : index
      %c0_121 = arith.constant 0 : index
      %c0_122 = arith.constant 0 : index
      %188 = vector.load %arg8[%c3_120, %c0_121, %c0_122] : memref<4x8x8xf32, #tpu.memory_space<vmem>>, vector<1x8x8xf32>
      %189 = vector.shape_cast %188 : vector<1x8x8xf32> to vector<8x8xf32>
      %190 = vector.broadcast %187 : vector<8x1xf32> to vector<8x8xf32>
      %191 = arith.mulf %189, %190 : vector<8x8xf32>
      %192 = tpu.concatenate %170, %177, %184, %191 in 1 : vector<8x8xf32>, vector<8x8xf32>, vector<8x8xf32>, vector<8x8xf32> -> vector<8x32xf32>
      %193 = arith.truncf %192 : vector<8x32xf32> to vector<8x32xbf16>
      %c0_123 = arith.constant 0 : index
      %c0_124 = arith.constant 0 : index
      %c0_125 = arith.constant 0 : index
      %194 = vector.load %arg5[%c0_123, %c0_124, %c0_125] : memref<1x8x32xbf16, #tpu.memory_space<vmem>>, vector<1x8x32xbf16>
      %195 = vector.shape_cast %194 : vector<1x8x32xbf16> to vector<8x32xbf16>
      %196 = vector.shape_cast %193 : vector<8x32xbf16> to vector<1x8x32xbf16>
      tpu.vector_store %arg5[%c0_123, %c0_124, %c0_125], %196 {strides = array<i32>} : memref<1x8x32xbf16, #tpu.memory_space<vmem>>, vector<1x8x32xbf16>,
    } else {
    }
    return
  }
  func.func @transform_0(%arg0: i32, %arg1: i32) -> (i32, i32, i32) {
    %c0_i32 = arith.constant 0 : i32
    %c0_i32_0 = arith.constant 0 : i32
    %c0_i32_1 = arith.constant 0 : i32
    return %arg0, %c0_i32, %c0_i32_0 : i32, i32, i32
  }
  func.func @transform_1(%arg0: i32, %arg1: i32) -> (i32, i32, i32) {
    %c0_i32 = arith.constant 0 : i32
    %c0_i32_0 = arith.constant 0 : i32
    return %arg0, %arg1, %c0_i32 : i32, i32, i32
  }
  func.func @transform_2(%arg0: i32, %arg1: i32) -> (i32, i32, i32) {
    %c0_i32 = arith.constant 0 : i32
    %c0_i32_0 = arith.constant 0 : i32
    return %arg0, %arg1, %c0_i32 : i32, i32, i32
  }
  func.func @transform_3(%arg0: i32, %arg1: i32) -> (i32, i32, i32) {
    %c0_i32 = arith.constant 0 : i32
    %c0_i32_0 = arith.constant 0 : i32
    %c0_i32_1 = arith.constant 0 : i32
    return %arg0, %c0_i32, %c0_i32_0 : i32, i32, i32
  }
}

module attributes {stable_mosaic.version = 11 : i64} {
  func.func @kernel(%arg0: i32, %arg1: i32, %arg2: memref<1x8x32xbf16, #tpu.memory_space<vmem>>, %arg3: memref<32x32xbf16, #tpu.memory_space<vmem>>, %arg4: memref<1x32xbf16, #tpu.memory_space<vmem>>, %arg5: memref<1x8x32xbf16, #tpu.memory_space<vmem>>, %arg6: memref<1x8x32xbf16, #tpu.memory_space<vmem>>) attributes {dimension_semantics = [#tpu.dimension_semantics<parallel>, #tpu.dimension_semantics<parallel>], iteration_bounds = array<i64: 2, 1>, scalar_prefetch = 0 : i64, scratch_operands = 0 : i64, tpu.core_type = #tpu.core_type<tc>, window_params = [{transform_indices = @transform_0, window_bounds = array<i64: 1, 8, 32>}, {pipeline_mode = #tpu.pipeline_mode<synchronous>, transform_indices = @transform_1, window_bounds = array<i64: 32, 32>}, {pipeline_mode = #tpu.pipeline_mode<synchronous>, transform_indices = @transform_2, window_bounds = array<i64: 1, 32>}, {transform_indices = @transform_3, window_bounds = array<i64: 1, 8, 32>}, {transform_indices = @transform_4, window_bounds = array<i64: 1, 8, 32>}]} {
    %c0 = arith.constant 0 : index
    %c0_0 = arith.constant 0 : index
    %c0_1 = arith.constant 0 : index
    %0 = vector.load %arg2[%c0, %c0_0, %c0_1] : memref<1x8x32xbf16, #tpu.memory_space<vmem>>, vector<1x8x32xbf16>
    %1 = vector.shape_cast %0 : vector<1x8x32xbf16> to vector<8x32xbf16>
    %c0_2 = arith.constant 0 : index
    %c0_3 = arith.constant 0 : index
    %2 = vector.load %arg3[%c0_2, %c0_3] : memref<32x32xbf16, #tpu.memory_space<vmem>>, vector<32x32xbf16>
    %cst = arith.constant dense<0.000000e+00> : vector<8x32xf32>
    %3 = tpu.matmul %1, %2, %cst {dimension_numbers = #tpu.dot_dimension_numbers<[1], [0], [0], [1], [0, 0, 1, 1], [], []>} : vector<8x32xbf16>, vector<32x32xbf16>, vector<8x32xf32> -> vector<8x32xf32>
    %c0_4 = arith.constant 0 : index
    %c0_5 = arith.constant 0 : index
    %4 = vector.load %arg4[%c0_4, %c0_5] : memref<1x32xbf16, #tpu.memory_space<vmem>>, vector<1x32xbf16>
    %5 = arith.extf %4 : vector<1x32xbf16> to vector<1x32xf32>
    %6 = vector.broadcast %5 : vector<1x32xf32> to vector<8x32xf32>
    %7 = arith.addf %3, %6 : vector<8x32xf32>
    %c0_6 = arith.constant 0 : index
    %c0_7 = arith.constant 0 : index
    %c0_8 = arith.constant 0 : index
    %8 = vector.load %arg5[%c0_6, %c0_7, %c0_8] : memref<1x8x32xbf16, #tpu.memory_space<vmem>>, vector<1x8x32xbf16>
    %9 = vector.shape_cast %8 : vector<1x8x32xbf16> to vector<8x32xbf16>
    %10 = arith.extf %9 : vector<8x32xbf16> to vector<8x32xf32>
    %11 = arith.addf %10, %7 : vector<8x32xf32>
    %12 = arith.truncf %11 : vector<8x32xf32> to vector<8x32xbf16>
    %c0_9 = arith.constant 0 : index
    %c0_10 = arith.constant 0 : index
    %c0_11 = arith.constant 0 : index
    %13 = vector.load %arg6[%c0_9, %c0_10, %c0_11] : memref<1x8x32xbf16, #tpu.memory_space<vmem>>, vector<1x8x32xbf16>
    %14 = vector.shape_cast %13 : vector<1x8x32xbf16> to vector<8x32xbf16>
    %15 = vector.shape_cast %12 : vector<8x32xbf16> to vector<1x8x32xbf16>
    tpu.vector_store %arg6[%c0_9, %c0_10, %c0_11], %15 {strides = array<i32>} : memref<1x8x32xbf16, #tpu.memory_space<vmem>>, vector<1x8x32xbf16>,
    return
  }
  func.func @transform_0(%arg0: i32, %arg1: i32) -> (i32, i32, i32) {
    %c0_i32 = arith.constant 0 : i32
    %c0_i32_0 = arith.constant 0 : i32
    return %arg0, %arg1, %c0_i32 : i32, i32, i32
  }
  func.func @transform_1(%arg0: i32, %arg1: i32) -> (i32, i32) {
    %c0_i32 = arith.constant 0 : i32
    %c0_i32_0 = arith.constant 0 : i32
    %c0_i32_1 = arith.constant 0 : i32
    return %c0_i32, %c0_i32_0 : i32, i32
  }
  func.func @transform_2(%arg0: i32, %arg1: i32) -> (i32, i32) {
    %c0_i32 = arith.constant 0 : i32
    %c0_i32_0 = arith.constant 0 : i32
    %c0_i32_1 = arith.constant 0 : i32
    return %c0_i32, %c0_i32_0 : i32, i32
  }
  func.func @transform_3(%arg0: i32, %arg1: i32) -> (i32, i32, i32) {
    %c0_i32 = arith.constant 0 : i32
    %c0_i32_0 = arith.constant 0 : i32
    return %arg0, %arg1, %c0_i32 : i32, i32, i32
  }
  func.func @transform_4(%arg0: i32, %arg1: i32) -> (i32, i32, i32) {
    %c0_i32 = arith.constant 0 : i32
    %c0_i32_0 = arith.constant 0 : i32
    return %arg0, %arg1, %c0_i32 : i32, i32, i32
  }
}

module attributes {stable_mosaic.version = 11 : i64} {
  func.func @kernel(%arg0: i32, %arg1: i32, %arg2: memref<1x8x32xbf16, #tpu.memory_space<vmem>>, %arg3: memref<1x1x32xf32, #tpu.memory_space<vmem>>, %arg4: memref<1x1x32xf32, #tpu.memory_space<vmem>>, %arg5: memref<32x128xbf16, #tpu.memory_space<vmem>>, %arg6: memref<1x128xbf16, #tpu.memory_space<vmem>>, %arg7: memref<1x8x128xbf16, #tpu.memory_space<vmem>>) attributes {dimension_semantics = [#tpu.dimension_semantics<parallel>, #tpu.dimension_semantics<parallel>], iteration_bounds = array<i64: 2, 1>, scalar_prefetch = 0 : i64, scratch_operands = 0 : i64, tpu.core_type = #tpu.core_type<tc>, window_params = [{transform_indices = @transform_0, window_bounds = array<i64: 1, 8, 32>}, {transform_indices = @transform_1, window_bounds = array<i64: 1, 1, 32>}, {transform_indices = @transform_2, window_bounds = array<i64: 1, 1, 32>}, {pipeline_mode = #tpu.pipeline_mode<synchronous>, transform_indices = @transform_3, window_bounds = array<i64: 32, 128>}, {pipeline_mode = #tpu.pipeline_mode<synchronous>, transform_indices = @transform_4, window_bounds = array<i64: 1, 128>}, {transform_indices = @transform_5, window_bounds = array<i64: 1, 8, 128>}]} {
    %c0 = arith.constant 0 : index
    %c0_0 = arith.constant 0 : index
    %c0_1 = arith.constant 0 : index
    %0 = vector.load %arg2[%c0, %c0_0, %c0_1] : memref<1x8x32xbf16, #tpu.memory_space<vmem>>, vector<1x8x32xbf16>
    %1 = vector.shape_cast %0 : vector<1x8x32xbf16> to vector<8x32xbf16>
    %2 = arith.extf %1 : vector<8x32xbf16> to vector<8x32xf32>
    %cst = arith.constant dense<0.000000e+00> : vector<8xf32>
    %3 = vector.multi_reduction <add>, %2, %cst [1] : vector<8x32xf32> to vector<8xf32>
    %4 = vector.shape_cast %3 : vector<8xf32> to vector<8x1xf32>
    %cst_2 = arith.constant 3.200000e+01 : f32
    %5 = vector.broadcast %cst_2 : f32 to vector<8x1xf32>
    %6 = arith.divf %4, %5 : vector<8x1xf32>
    %7 = vector.broadcast %6 : vector<8x1xf32> to vector<8x32xf32>
    %8 = arith.subf %2, %7 : vector<8x32xf32>
    %9 = arith.mulf %8, %8 : vector<8x32xf32>
    %cst_3 = arith.constant dense<0.000000e+00> : vector<8xf32>
    %10 = vector.multi_reduction <add>, %9, %cst_3 [1] : vector<8x32xf32> to vector<8xf32>
    %11 = vector.shape_cast %10 : vector<8xf32> to vector<8x1xf32>
    %cst_4 = arith.constant 3.200000e+01 : f32
    %12 = vector.broadcast %cst_4 : f32 to vector<8x1xf32>
    %13 = arith.divf %11, %12 : vector<8x1xf32>
    %14 = vector.broadcast %6 : vector<8x1xf32> to vector<8x32xf32>
    %15 = arith.subf %2, %14 : vector<8x32xf32>
    %cst_5 = arith.constant 9.99999974E-6 : f32
    %16 = vector.broadcast %cst_5 : f32 to vector<8x1xf32>
    %17 = arith.addf %13, %16 : vector<8x1xf32>
    %18 = math.rsqrt %17 : vector<8x1xf32>
    %19 = vector.broadcast %18 : vector<8x1xf32> to vector<8x32xf32>
    %20 = arith.mulf %15, %19 : vector<8x32xf32>
    %c0_6 = arith.constant 0 : index
    %c0_7 = arith.constant 0 : index
    %c0_8 = arith.constant 0 : index
    %21 = vector.load %arg3[%c0_6, %c0_7, %c0_8] : memref<1x1x32xf32, #tpu.memory_space<vmem>>, vector<1x1x32xf32>
    %22 = vector.shape_cast %21 : vector<1x1x32xf32> to vector<1x32xf32>
    %cst_9 = arith.constant 1.000000e+00 : f32
    %23 = vector.broadcast %cst_9 : f32 to vector<1x32xf32>
    %24 = arith.addf %23, %22 : vector<1x32xf32>
    %25 = vector.broadcast %24 : vector<1x32xf32> to vector<8x32xf32>
    %26 = arith.mulf %20, %25 : vector<8x32xf32>
    %c0_10 = arith.constant 0 : index
    %c0_11 = arith.constant 0 : index
    %c0_12 = arith.constant 0 : index
    %27 = vector.load %arg4[%c0_10, %c0_11, %c0_12] : memref<1x1x32xf32, #tpu.memory_space<vmem>>, vector<1x1x32xf32>
    %28 = vector.shape_cast %27 : vector<1x1x32xf32> to vector<1x32xf32>
    %29 = vector.broadcast %28 : vector<1x32xf32> to vector<8x32xf32>
    %30 = arith.addf %26, %29 : vector<8x32xf32>
    %31 = arith.truncf %30 : vector<8x32xf32> to vector<8x32xbf16>
    %c0_13 = arith.constant 0 : index
    %c0_14 = arith.constant 0 : index
    %32 = vector.load %arg5[%c0_13, %c0_14] : memref<32x128xbf16, #tpu.memory_space<vmem>>, vector<32x128xbf16>
    %cst_15 = arith.constant dense<0.000000e+00> : vector<8x128xf32>
    %33 = tpu.matmul %31, %32, %cst_15 {dimension_numbers = #tpu.dot_dimension_numbers<[1], [0], [0], [1], [0, 0, 1, 1], [], []>} : vector<8x32xbf16>, vector<32x128xbf16>, vector<8x128xf32> -> vector<8x128xf32>
    %c0_16 = arith.constant 0 : index
    %c0_17 = arith.constant 0 : index
    %34 = vector.load %arg6[%c0_16, %c0_17] : memref<1x128xbf16, #tpu.memory_space<vmem>>, vector<1x128xbf16>
    %35 = arith.extf %34 : vector<1x128xbf16> to vector<1x128xf32>
    %36 = vector.broadcast %35 : vector<1x128xf32> to vector<8x128xf32>
    %37 = arith.addf %33, %36 : vector<8x128xf32>
    %38 = arith.mulf %37, %37 : vector<8x128xf32>
    %39 = arith.mulf %37, %38 : vector<8x128xf32>
    %cst_18 = arith.constant 4.471500e-02 : f32
    %40 = vector.broadcast %cst_18 : f32 to vector<8x128xf32>
    %41 = arith.mulf %40, %39 : vector<8x128xf32>
    %42 = arith.addf %37, %41 : vector<8x128xf32>
    %cst_19 = arith.constant 0.797884583 : f32
    %43 = vector.broadcast %cst_19 : f32 to vector<8x128xf32>
    %44 = arith.mulf %43, %42 : vector<8x128xf32>
    %45 = math.tanh %44 : vector<8x128xf32>
    %cst_20 = arith.constant 1.000000e+00 : f32
    %46 = vector.broadcast %cst_20 : f32 to vector<8x128xf32>
    %47 = arith.addf %46, %45 : vector<8x128xf32>
    %cst_21 = arith.constant 5.000000e-01 : f32
    %48 = vector.broadcast %cst_21 : f32 to vector<8x128xf32>
    %49 = arith.mulf %48, %47 : vector<8x128xf32>
    %50 = arith.mulf %37, %49 : vector<8x128xf32>
    %51 = arith.truncf %50 : vector<8x128xf32> to vector<8x128xbf16>
    %c0_22 = arith.constant 0 : index
    %c0_23 = arith.constant 0 : index
    %c0_24 = arith.constant 0 : index
    %52 = vector.load %arg7[%c0_22, %c0_23, %c0_24] : memref<1x8x128xbf16, #tpu.memory_space<vmem>>, vector<1x8x128xbf16>
    %53 = vector.shape_cast %52 : vector<1x8x128xbf16> to vector<8x128xbf16>
    %54 = vector.shape_cast %51 : vector<8x128xbf16> to vector<1x8x128xbf16>
    tpu.vector_store %arg7[%c0_22, %c0_23, %c0_24], %54 {strides = array<i32>} : memref<1x8x128xbf16, #tpu.memory_space<vmem>>, vector<1x8x128xbf16>,
    return
  }
  func.func @transform_0(%arg0: i32, %arg1: i32) -> (i32, i32, i32) {
    %c0_i32 = arith.constant 0 : i32
    %c0_i32_0 = arith.constant 0 : i32
    return %arg0, %arg1, %c0_i32 : i32, i32, i32
  }
  func.func @transform_1(%arg0: i32, %arg1: i32) -> (i32, i32, i32) {
    %c0_i32 = arith.constant 0 : i32
    %c0_i32_0 = arith.constant 0 : i32
    %c0_i32_1 = arith.constant 0 : i32
    return %arg0, %c0_i32, %c0_i32_0 : i32, i32, i32
  }
  func.func @transform_2(%arg0: i32, %arg1: i32) -> (i32, i32, i32) {
    %c0_i32 = arith.constant 0 : i32
    %c0_i32_0 = arith.constant 0 : i32
    %c0_i32_1 = arith.constant 0 : i32
    return %arg0, %c0_i32, %c0_i32_0 : i32, i32, i32
  }
  func.func @transform_3(%arg0: i32, %arg1: i32) -> (i32, i32) {
    %c0_i32 = arith.constant 0 : i32
    %c0_i32_0 = arith.constant 0 : i32
    %c0_i32_1 = arith.constant 0 : i32
    return %c0_i32, %c0_i32_0 : i32, i32
  }
  func.func @transform_4(%arg0: i32, %arg1: i32) -> (i32, i32) {
    %c0_i32 = arith.constant 0 : i32
    %c0_i32_0 = arith.constant 0 : i32
    %c0_i32_1 = arith.constant 0 : i32
    return %c0_i32, %c0_i32_0 : i32, i32
  }
  func.func @transform_5(%arg0: i32, %arg1: i32) -> (i32, i32, i32) {
    %c0_i32 = arith.constant 0 : i32
    %c0_i32_0 = arith.constant 0 : i32
    return %arg0, %arg1, %c0_i32 : i32, i32, i32
  }
}

module attributes {stable_mosaic.version = 11 : i64} {
  func.func @kernel(%arg0: i32, %arg1: i32, %arg2: memref<1x8x128xbf16, #tpu.memory_space<vmem>>, %arg3: memref<128x32xbf16, #tpu.memory_space<vmem>>, %arg4: memref<1x32xbf16, #tpu.memory_space<vmem>>, %arg5: memref<1x1x32xf32, #tpu.memory_space<vmem>>, %arg6: memref<1x8x32xbf16, #tpu.memory_space<vmem>>, %arg7: memref<1x8x32xbf16, #tpu.memory_space<vmem>>) attributes {dimension_semantics = [#tpu.dimension_semantics<parallel>, #tpu.dimension_semantics<parallel>], iteration_bounds = array<i64: 2, 1>, scalar_prefetch = 0 : i64, scratch_operands = 0 : i64, tpu.core_type = #tpu.core_type<tc>, window_params = [{transform_indices = @transform_0, window_bounds = array<i64: 1, 8, 128>}, {pipeline_mode = #tpu.pipeline_mode<synchronous>, transform_indices = @transform_1, window_bounds = array<i64: 128, 32>}, {pipeline_mode = #tpu.pipeline_mode<synchronous>, transform_indices = @transform_2, window_bounds = array<i64: 1, 32>}, {transform_indices = @transform_3, window_bounds = array<i64: 1, 1, 32>}, {transform_indices = @transform_4, window_bounds = array<i64: 1, 8, 32>}, {transform_indices = @transform_5, window_bounds = array<i64: 1, 8, 32>}]} {
    %c0 = arith.constant 0 : index
    %c0_0 = arith.constant 0 : index
    %c0_1 = arith.constant 0 : index
    %0 = vector.load %arg2[%c0, %c0_0, %c0_1] : memref<1x8x128xbf16, #tpu.memory_space<vmem>>, vector<1x8x128xbf16>
    %1 = vector.shape_cast %0 : vector<1x8x128xbf16> to vector<8x128xbf16>
    %c0_2 = arith.constant 0 : index
    %c0_3 = arith.constant 0 : index
    %2 = vector.load %arg3[%c0_2, %c0_3] : memref<128x32xbf16, #tpu.memory_space<vmem>>, vector<128x32xbf16>
    %cst = arith.constant dense<0.000000e+00> : vector<8x32xf32>
    %3 = tpu.matmul %1, %2, %cst {dimension_numbers = #tpu.dot_dimension_numbers<[1], [0], [0], [1], [0, 0, 1, 1], [], []>} : vector<8x128xbf16>, vector<128x32xbf16>, vector<8x32xf32> -> vector<8x32xf32>
    %c0_4 = arith.constant 0 : index
    %c0_5 = arith.constant 0 : index
    %4 = vector.load %arg4[%c0_4, %c0_5] : memref<1x32xbf16, #tpu.memory_space<vmem>>, vector<1x32xbf16>
    %5 = arith.extf %4 : vector<1x32xbf16> to vector<1x32xf32>
    %6 = vector.broadcast %5 : vector<1x32xf32> to vector<8x32xf32>
    %7 = arith.addf %3, %6 : vector<8x32xf32>
    %c0_6 = arith.constant 0 : index
    %c0_7 = arith.constant 0 : index
    %c0_8 = arith.constant 0 : index
    %8 = vector.load %arg6[%c0_6, %c0_7, %c0_8] : memref<1x8x32xbf16, #tpu.memory_space<vmem>>, vector<1x8x32xbf16>
    %9 = vector.shape_cast %8 : vector<1x8x32xbf16> to vector<8x32xbf16>
    %10 = arith.extf %9 : vector<8x32xbf16> to vector<8x32xf32>
    %c0_9 = arith.constant 0 : index
    %c0_10 = arith.constant 0 : index
    %c0_11 = arith.constant 0 : index
    %11 = vector.load %arg5[%c0_9, %c0_10, %c0_11] : memref<1x1x32xf32, #tpu.memory_space<vmem>>, vector<1x1x32xf32>
    %12 = vector.shape_cast %11 : vector<1x1x32xf32> to vector<1x32xf32>
    %13 = vector.broadcast %12 : vector<1x32xf32> to vector<8x32xf32>
    %14 = arith.mulf %13, %7 : vector<8x32xf32>
    %15 = arith.addf %10, %14 : vector<8x32xf32>
    %16 = arith.truncf %15 : vector<8x32xf32> to vector<8x32xbf16>
    %c0_12 = arith.constant 0 : index
    %c0_13 = arith.constant 0 : index
    %c0_14 = arith.constant 0 : index
    %17 = vector.load %arg7[%c0_12, %c0_13, %c0_14] : memref<1x8x32xbf16, #tpu.memory_space<vmem>>, vector<1x8x32xbf16>
    %18 = vector.shape_cast %17 : vector<1x8x32xbf16> to vector<8x32xbf16>
    %19 = vector.shape_cast %16 : vector<8x32xbf16> to vector<1x8x32xbf16>
    tpu.vector_store %arg7[%c0_12, %c0_13, %c0_14], %19 {strides = array<i32>} : memref<1x8x32xbf16, #tpu.memory_space<vmem>>, vector<1x8x32xbf16>,
    return
  }
  func.func @transform_0(%arg0: i32, %arg1: i32) -> (i32, i32, i32) {
    %c0_i32 = arith.constant 0 : i32
    %c0_i32_0 = arith.constant 0 : i32
    return %arg0, %arg1, %c0_i32 : i32, i32, i32
  }
  func.func @transform_1(%arg0: i32, %arg1: i32) -> (i32, i32) {
    %c0_i32 = arith.constant 0 : i32
    %c0_i32_0 = arith.constant 0 : i32
    %c0_i32_1 = arith.constant 0 : i32
    return %c0_i32, %c0_i32_0 : i32, i32
  }
  func.func @transform_2(%arg0: i32, %arg1: i32) -> (i32, i32) {
    %c0_i32 = arith.constant 0 : i32
    %c0_i32_0 = arith.constant 0 : i32
    %c0_i32_1 = arith.constant 0 : i32
    return %c0_i32, %c0_i32_0 : i32, i32
  }
  func.func @transform_3(%arg0: i32, %arg1: i32) -> (i32, i32, i32) {
    %c0_i32 = arith.constant 0 : i32
    %c0_i32_0 = arith.constant 0 : i32
    %c0_i32_1 = arith.constant 0 : i32
    return %arg0, %c0_i32, %c0_i32_0 : i32, i32, i32
  }
  func.func @transform_4(%arg0: i32, %arg1: i32) -> (i32, i32, i32) {
    %c0_i32 = arith.constant 0 : i32
    %c0_i32_0 = arith.constant 0 : i32
    return %arg0, %arg1, %c0_i32 : i32, i32, i32
  }
  func.func @transform_5(%arg0: i32, %arg1: i32) -> (i32, i32, i32) {
    %c0_i32 = arith.constant 0 : i32
    %c0_i32_0 = arith.constant 0 : i32
    return %arg0, %arg1, %c0_i32 : i32, i32, i32
  }
}

module attributes {stable_mosaic.version = 11 : i64} {
  func.func @kernel(%arg0: i32, %arg1: i32, %arg2: memref<1x8x32xbf16, #tpu.memory_space<vmem>>, %arg3: memref<32x32xbf16, #tpu.memory_space<vmem>>, %arg4: memref<1x32xbf16, #tpu.memory_space<vmem>>, %arg5: memref<1x8x32xbf16, #tpu.memory_space<vmem>>, %arg6: memref<1x8x32xf32, #tpu.memory_space<vmem>>) attributes {dimension_semantics = [#tpu.dimension_semantics<parallel>, #tpu.dimension_semantics<parallel>], iteration_bounds = array<i64: 2, 1>, scalar_prefetch = 0 : i64, scratch_operands = 0 : i64, tpu.core_type = #tpu.core_type<tc>, window_params = [{transform_indices = @transform_0, window_bounds = array<i64: 1, 8, 32>}, {pipeline_mode = #tpu.pipeline_mode<synchronous>, transform_indices = @transform_1, window_bounds = array<i64: 32, 32>}, {pipeline_mode = #tpu.pipeline_mode<synchronous>, transform_indices = @transform_2, window_bounds = array<i64: 1, 32>}, {transform_indices = @transform_3, window_bounds = array<i64: 1, 8, 32>}, {transform_indices = @transform_4, window_bounds = array<i64: 1, 8, 32>}]} {
    %c0 = arith.constant 0 : index
    %c0_0 = arith.constant 0 : index
    %c0_1 = arith.constant 0 : index
    %0 = vector.load %arg2[%c0, %c0_0, %c0_1] : memref<1x8x32xbf16, #tpu.memory_space<vmem>>, vector<1x8x32xbf16>
    %1 = vector.shape_cast %0 : vector<1x8x32xbf16> to vector<8x32xbf16>
    %c0_2 = arith.constant 0 : index
    %c0_3 = arith.constant 0 : index
    %2 = vector.load %arg3[%c0_2, %c0_3] : memref<32x32xbf16, #tpu.memory_space<vmem>>, vector<32x32xbf16>
    %cst = arith.constant dense<0.000000e+00> : vector<8x32xf32>
    %3 = tpu.matmul %1, %2, %cst {dimension_numbers = #tpu.dot_dimension_numbers<[1], [0], [0], [1], [0, 0, 1, 1], [], []>} : vector<8x32xbf16>, vector<32x32xbf16>, vector<8x32xf32> -> vector<8x32xf32>
    %c0_4 = arith.constant 0 : index
    %c0_5 = arith.constant 0 : index
    %4 = vector.load %arg4[%c0_4, %c0_5] : memref<1x32xbf16, #tpu.memory_space<vmem>>, vector<1x32xbf16>
    %5 = arith.extf %4 : vector<1x32xbf16> to vector<1x32xf32>
    %6 = vector.broadcast %5 : vector<1x32xf32> to vector<8x32xf32>
    %7 = arith.addf %3, %6 : vector<8x32xf32>
    %c0_6 = arith.constant 0 : index
    %c0_7 = arith.constant 0 : index
    %c0_8 = arith.constant 0 : index
    %8 = vector.load %arg5[%c0_6, %c0_7, %c0_8] : memref<1x8x32xbf16, #tpu.memory_space<vmem>>, vector<1x8x32xbf16>
    %9 = vector.shape_cast %8 : vector<1x8x32xbf16> to vector<8x32xbf16>
    %10 = arith.extf %9 : vector<8x32xbf16> to vector<8x32xf32>
    %11 = arith.addf %10, %7 : vector<8x32xf32>
    %c0_9 = arith.constant 0 : index
    %c0_10 = arith.constant 0 : index
    %c0_11 = arith.constant 0 : index
    %12 = vector.load %arg6[%c0_9, %c0_10, %c0_11] : memref<1x8x32xf32, #tpu.memory_space<vmem>>, vector<1x8x32xf32>
    %13 = vector.shape_cast %12 : vector<1x8x32xf32> to vector<8x32xf32>
    %14 = vector.shape_cast %11 : vector<8x32xf32> to vector<1x8x32xf32>
    tpu.vector_store %arg6[%c0_9, %c0_10, %c0_11], %14 {strides = array<i32>} : memref<1x8x32xf32, #tpu.memory_space<vmem>>, vector<1x8x32xf32>,
    return
  }
  func.func @transform_0(%arg0: i32, %arg1: i32) -> (i32, i32, i32) {
    %c0_i32 = arith.constant 0 : i32
    %c0_i32_0 = arith.constant 0 : i32
    return %arg0, %arg1, %c0_i32 : i32, i32, i32
  }
  func.func @transform_1(%arg0: i32, %arg1: i32) -> (i32, i32) {
    %c0_i32 = arith.constant 0 : i32
    %c0_i32_0 = arith.constant 0 : i32
    %c0_i32_1 = arith.constant 0 : i32
    return %c0_i32, %c0_i32_0 : i32, i32
  }
  func.func @transform_2(%arg0: i32, %arg1: i32) -> (i32, i32) {
    %c0_i32 = arith.constant 0 : i32
    %c0_i32_0 = arith.constant 0 : i32
    %c0_i32_1 = arith.constant 0 : i32
    return %c0_i32, %c0_i32_0 : i32, i32
  }
  func.func @transform_3(%arg0: i32, %arg1: i32) -> (i32, i32, i32) {
    %c0_i32 = arith.constant 0 : i32
    %c0_i32_0 = arith.constant 0 : i32
    return %arg0, %arg1, %c0_i32 : i32, i32, i32
  }
  func.func @transform_4(%arg0: i32, %arg1: i32) -> (i32, i32, i32) {
    %c0_i32 = arith.constant 0 : i32
    %c0_i32_0 = arith.constant 0 : i32
    return %arg0, %arg1, %c0_i32 : i32, i32, i32
  }
}

</mosaic_0001>

<bundles_post_ra>
// kernel: ditto_forward.25
= control target key start
LH: loop header
LB: loop body
LE: loop exit
PB: predicated region body
PF: predicated region fallthrough
CT: control target
= control target key end

     0   :  { %s559_s18 = smov 0   ;;  %s561_s19 = smov 0   ;;  %s619_s0 = inlined_call_operand.vmem [shape: bf16[2,8,32], index: 0, kind: input, shape index: {}]   ;;  %s620_s1 = inlined_call_operand.vmem [shape: f32[2,1,32], index: 1, kind: input, shape index: {}]   ;;  %s621_s2 = inlined_call_operand.vmem [shape: f32[2,1,32], index: 2, kind: input, shape index: {}]   ;;  %s622_s3 = inlined_call_operand.vmem [shape: bf16[32,96], index: 3, kind: input, shape index: {}]   ;;  %s623_s4 = inlined_call_operand.vmem [shape: bf16[1,96], index: 4, kind: input, shape index: {}]   ;;  %s624_s5 = inlined_call_operand.vmem [shape: bf16[2,8,96], index: 5, kind: output, shape index: {}]  }
   0x1   :  { %s563_s20 = smov 0  }
   0x2 LB: > { %s27_s21 = sadd.s32 1, %s522_s19  ;;  %p458_p0 = scmp.ge.s32.totalorder %s526_s20, 1  ;;  %s526_s20 = sphi %s563_s20, %s15_s20   ;;  %s522_s19 = sphi %s561_s19, %s626_s19   ;;  %s518_s18 = sphi %s559_s18, %s625_s18  }
   0x3   : > { %p29_p1 = scmp.ge.s32.totalorder %s27_s21, 2  ;;  %p221_p2 = scmp.lt.s32.totalorder %s526_s20, 3 }
   0x5   : > { %s628_s21 = smov (%p29_p1, %s27_s21), 0  ;;  %p222_p3 = pnand %p458_p0, %p221_p2 }
   0x6   : > { %p259_p4 = scmp.lt.s32.totalorder (!%p222_p3), %s518_s18, 1 }
   0x7   : > { %225 = sbr.rel (%p222_p3) target bundleno = 422 (0x1a6), region = 40 }
   0xc   : > { %s630_s18 = smov (!%p259_p4, %s518_s18), 1  ;;  %vm282_vm0 = vcmask 261120   ;;  %v528_v3 = vmov 32.0   ;;  %v473_v15 = vld [vmem:[%s622_s3 + $0x8] sm:$0xff]  ;;  %v472_v16 = vld [vmem:[%s622_s3] sm:$0xff]  ;;  %vm360_vm5 = vcmask 781312  }
   0xd   : > { %s459_s22 = sshll.u32 %s630_s18, 2  ;;  %500 = vrcp.f32 %v528_v3  ;;  %s271_s28 = scalar_lea.vmem %s621_s2, %s630_s18  ;;  %352 = vmatpush.bf16.msra.mxu0 %v473_v15  ;;  %v328_v35 = vld [vmem:[%s623_s4] sm:$0x1] }
   0xe   : > { %s265_s25 = scalar_lea.vmem %s619_s0, %s459_s22  ;;  %s268_s10 = scalar_lea.vmem %s620_s1, %s630_s18  ;;  %v499_v31 = vld [vmem:[%s271_s28] ss:$0 sm:$0xff]  ;;  %v329_v36 = vunpack.c.l.bf16 %v328_v35 }
   0xf   : > { %v280_v0 = vld [vmem:[%s265_s25] sm:$0xf]  ;;  %s278_s15 = scalar_lea.vmem %s624_s5, %s459_s22 }
  0x10   : > { %v281_v1 = vunpack.c.l.bf16 %v280_v0  ;;  %v312_v23 = vld [vmem:[%s268_s10] sm:$0x1]  ;;  %v330_v37 = vperm.slane %v329_v36, 0 }
  0x11   : > { %353 = vmatpush.bf16.msra.mxu0 %v472_v16  ;;  %v313_v25 = vadd.f32 1.0, %v312_v23 }
  0x12   : > { %v283_v2 = vsel %vm282_vm0, %v281_v1, 0.0 }
  0x13   : > { %284 = vadd.xlane.f32.xlu0 %v283_v2  ;;  %v501_v4 = vpop.eup %500  ;;  %v315_v28 = vperm.slane %v313_v25, 0 }
  0x14   : > { %v287_v5 = vmul.f32 32.0, %v501_v4  ;;  %vm291_vm1 = vweird.f32 %v501_v4 }
  0x16   : > { %v288_v6 = vsub.f32 1.0, %v287_v5 }
  0x18   : > { %v289_v7 = vmul.f32 %v501_v4, %v288_v6 }
  0x1a   : > { %v290_v8 = vadd.f32 %v501_v4, %v289_v7 }
  0x1c   : > { %v292_v9 = vsel %vm291_vm1, %v501_v4, %v290_v8 }
  0x86   : > { %v285_v10 = vpop.xlane.xlu0 %284 }
  0x87   : > { %v293_v11 = vmul.f32 %v292_v9, %v285_v10 }
  0x89   : > { %v294_v12 = vsub.f32 %v281_v1, %v293_v11 }
  0x8b   : > { %v295_v13 = vmul.f32 %v294_v12, %v294_v12 }
  0x8d   : > { %v296_v14 = vsel %vm282_vm0, %v295_v13, 0.0 }
  0x8e   : > { %297 = vadd.xlane.f32.xlu0 %v296_v14 }
 0x101   : > { %v298_v17 = vpop.xlane.xlu0 %297 }
 0x102   : > { %v299_v18 = vmul.f32 %v298_v17, %v292_v9 }
 0x104   : > { %v300_v19 = vadd.f32 1e-05, %v299_v18 }
 0x106   : > { %502 = vrsqrt.f32 %v300_v19  ;;  %vm307_vm3 = vweird.f32 %v300_v19 }
 0x10c   : > { %v503_v20 = vpop.eup %502 }
 0x10d   : > { %v302_v21 = vmul.f32 %v503_v20, %v300_v19  ;;  %vm308_vm2 = vweird.f32 %v503_v20 }
 0x10e   : > { %vm309_vm4 = vmor %vm307_vm3, %vm308_vm2 }
 0x10f   : > { %v303_v22 = vmul.f32 %v503_v20, %v302_v21 }
 0x111   : > { %v304_v24 = vmul.f32 0.5, %v303_v22 }
 0x113   : > { %v305_v26 = vsub.f32 1.5, %v304_v24 }
 0x115   : > { %v306_v27 = vmul.f32 %v503_v20, %v305_v26 }
 0x117   : > { %v310_v29 = vsel %vm309_vm4, %v503_v20, %v306_v27 }
 0x118   : > { %v311_v30 = vmul.f32 %v310_v29, %v294_v12 }
 0x11a   : > { %v317_v32 = vmul.f32 %v315_v28, %v311_v30 }
 0x11c   : > { %v322_v33 = vadd.f32 %v499_v31, %v317_v32 }
 0x11e   : > { %v323_v34 = vpack.c.bf16 %v322_v33, %v322_v33 }
 0x120   : > { %469 = vmatmul.msk.bf16.vlgmr.msra.gmra.mxu0 %vm282_vm0, %v323_v34 }
 0x19d   : > { %v355_v38 = vpop.f32.mrf.mxu0 }
 0x19e   : > { %v356_v39 = vadd.f32 %v355_v38, %v330_v37 }
 0x1a0   : > { %v359_v40 = vpack.c.bf16 %v356_v39, %v356_v39 }
 0x1a2   : > { %361 = vst.msk [vmem:[%s278_s15] sm:$0xf] %vm360_vm5, %v359_v40 }
 0x1a5   : > { %v357_v41 = vpop.f32.mrf.mxu0 }
 0x1a6 PF: > { %s15_s20 = sadd.s32 1, %s526_s20   ;;  %s625_s18 = smov %s522_s19 }
 0x1a7   : > { %p12_p5 = scmp.ge.s32.totalorder %s15_s20, 4   ;;  %s626_s19 = smov %s628_s21 }
 0x1a9   :  { %14 = sbr.rel (!%p12_p5) target bundleno = 2 (0x2), region = 76 }

// kernel: ditto_forward.24
= control target key start
LH: loop header
LB: loop body
LE: loop exit
PB: predicated region body
PF: predicated region fallthrough
CT: control target
= control target key end

     0   :  { %s447_s12 = smov 0   ;;  %s449_s13 = smov 0   ;;  %s502_s0 = inlined_call_operand.vmem [shape: bf16[2,8,32], index: 0, kind: input, shape index: {}]   ;;  %s503_s1 = inlined_call_operand.vmem [shape: f32[2,1,32], index: 1, kind: input, shape index: {}]   ;;  %s504_s2 = inlined_call_operand.vmem [shape: f32[2,1,32], index: 2, kind: input, shape index: {}]   ;;  %s505_s3 = inlined_call_operand.vmem [shape: bf16[2,8,32], index: 3, kind: output, shape index: {}]  }
   0x1   :  { %s451_s14 = smov 0  }
   0x2 LB: > { %s25_s15 = sadd.s32 1, %s420_s13  ;;  %p367_p0 = scmp.ge.s32.totalorder %s424_s14, 1  ;;  %s424_s14 = sphi %s451_s14, %s13_s14   ;;  %s420_s13 = sphi %s449_s13, %s507_s13   ;;  %s416_s12 = sphi %s447_s12, %s506_s12  }
   0x3   : > { %p27_p1 = scmp.ge.s32.totalorder %s25_s15, 2  ;;  %p171_p2 = scmp.lt.s32.totalorder %s424_s14, 3 }
   0x5   : > { %s509_s15 = smov (%p27_p1, %s25_s15), 0  ;;  %p172_p3 = pnand %p367_p0, %p171_p2 }
   0x6   : > { %p205_p4 = scmp.lt.s32.totalorder (!%p172_p3), %s416_s12, 1 }
   0x7   : > { %175 = sbr.rel (%p172_p3) target bundleno = 289 (0x121), region = 32 }
   0xc   : > { %s511_s12 = smov (!%p205_p4, %s416_s12), 1  ;;  %vm227_vm0 = vcmask 261120   ;;  %v426_v3 = vmov 32.0   ;;  %vm269_vm5 = vcmask 257024  }
   0xd   : > { %s368_s16 = sshll.u32 %s511_s12, 2  ;;  %s217_s22 = scalar_lea.vmem %s504_s2, %s511_s12  ;;  %398 = vrcp.f32 %v426_v3 }
   0xe   : > { %s211_s19 = scalar_lea.vmem %s502_s0, %s368_s16  ;;  %s214_s25 = scalar_lea.vmem %s503_s1, %s511_s12  ;;  %v397_v28 = vld [vmem:[%s217_s22] ss:$0 sm:$0xff] }
   0xf   : > { %v225_v0 = vld [vmem:[%s211_s19] sm:$0xf]  ;;  %s224_s30 = scalar_lea.vmem %s505_s3, %s368_s16 }
  0x10   : > { %v226_v1 = vunpack.c.l.bf16 %v225_v0  ;;  %v257_v20 = vld [vmem:[%s214_s25] sm:$0x1] }
  0x11   : > { %v258_v23 = vadd.f32 1.0, %v257_v20 }
  0x12   : > { %v228_v2 = vsel %vm227_vm0, %v226_v1, 0.0 }
  0x13   : > { %229 = vadd.xlane.f32.xlu0 %v228_v2  ;;  %v399_v4 = vpop.eup %398  ;;  %v260_v26 = vperm.slane %v258_v23, 0 }
  0x14   : > { %v232_v5 = vmul.f32 32.0, %v399_v4  ;;  %vm236_vm1 = vweird.f32 %v399_v4 }
  0x16   : > { %v233_v6 = vsub.f32 1.0, %v232_v5 }
  0x18   : > { %v234_v7 = vmul.f32 %v399_v4, %v233_v6 }
  0x1a   : > { %v235_v8 = vadd.f32 %v399_v4, %v234_v7 }
  0x1c   : > { %v237_v9 = vsel %vm236_vm1, %v399_v4, %v235_v8 }
  0x86   : > { %v230_v10 = vpop.xlane.xlu0 %229 }
  0x87   : > { %v238_v11 = vmul.f32 %v237_v9, %v230_v10 }
  0x89   : > { %v239_v12 = vsub.f32 %v226_v1, %v238_v11 }
  0x8b   : > { %v240_v13 = vmul.f32 %v239_v12, %v239_v12 }
  0x8d   : > { %v241_v14 = vsel %vm227_vm0, %v240_v13, 0.0 }
  0x8e   : > { %242 = vadd.xlane.f32.xlu0 %v241_v14 }
 0x101   : > { %v243_v15 = vpop.xlane.xlu0 %242 }
 0x102   : > { %v244_v16 = vmul.f32 %v243_v15, %v237_v9 }
 0x104   : > { %v245_v17 = vadd.f32 1e-05, %v244_v16 }
 0x106   : > { %400 = vrsqrt.f32 %v245_v17  ;;  %vm252_vm3 = vweird.f32 %v245_v17 }
 0x10c   : > { %v401_v18 = vpop.eup %400 }
 0x10d   : > { %v247_v19 = vmul.f32 %v401_v18, %v245_v17  ;;  %vm253_vm2 = vweird.f32 %v401_v18 }
 0x10e   : > { %vm254_vm4 = vmor %vm252_vm3, %vm253_vm2 }
 0x10f   : > { %v248_v21 = vmul.f32 %v401_v18, %v247_v19 }
 0x111   : > { %v249_v22 = vmul.f32 0.5, %v248_v21 }
 0x113   : > { %v250_v24 = vsub.f32 1.5, %v249_v22 }
 0x115   : > { %v251_v25 = vmul.f32 %v401_v18, %v250_v24 }
 0x117   : > { %v255_v27 = vsel %vm254_vm4, %v401_v18, %v251_v25 }
 0x118   : > { %v256_v29 = vmul.f32 %v255_v27, %v239_v12 }
 0x11a   : > { %v262_v30 = vmul.f32 %v260_v26, %v256_v29 }
 0x11c   : > { %v267_v31 = vadd.f32 %v397_v28, %v262_v30 }
 0x11e   : > { %v268_v32 = vpack.c.bf16 %v267_v31, %v267_v31 }
 0x120   : > { %270 = vst.msk [vmem:[%s224_s30] sm:$0xf] %vm269_vm5, %v268_v32 }
 0x121 PF: > { %s13_s14 = sadd.s32 1, %s424_s14   ;;  %s506_s12 = smov %s420_s13 }
 0x122   : > { %p10_p5 = scmp.ge.s32.totalorder %s13_s14, 4   ;;  %s507_s13 = smov %s509_s15 }
 0x124   :  { %12 = sbr.rel (!%p10_p5) target bundleno = 2 (0x2), region = 68 }

// kernel: ditto_forward.27
= control target key start
LH: loop header
LB: loop body
LE: loop exit
PB: predicated region body
PF: predicated region fallthrough
CT: control target
= control target key end

     0   :  { %s540_s18 = smov 0   ;;  %s542_s19 = smov 0   ;;  %s588_s0 = inlined_call_operand.vmem [shape: bf16[2,8,32], index: 0, kind: input, shape index: {}]   ;;  %s589_s1 = inlined_call_operand.vmem [shape: bf16[32,32], index: 1, kind: input, shape index: {}]   ;;  %s590_s2 = inlined_call_operand.vmem [shape: bf16[1,32], index: 2, kind: input, shape index: {}]   ;;  %s591_s3 = inlined_call_operand.vmem [shape: f32[2,1,32], index: 3, kind: input, shape index: {}]   ;;  %s592_s4 = inlined_call_operand.vmem [shape: bf16[2,8,32], index: 4, kind: input, shape index: {}]   ;;  %s593_s5 = inlined_call_operand.vmem [shape: bf16[2,8,32], index: 5, kind: output, shape index: {}]  }
   0x1   :  { %s544_s20 = smov 0  }
   0x2 LB: > { %s27_s21 = sadd.s32 1, %s504_s19  ;;  %p444_p0 = scmp.ge.s32.totalorder %s508_s20, 1  ;;  %s508_s20 = sphi %s544_s20, %s15_s20   ;;  %s504_s19 = sphi %s542_s19, %s595_s19   ;;  %s500_s18 = sphi %s540_s18, %s594_s18  }
   0x3   : > { %p29_p1 = scmp.ge.s32.totalorder %s27_s21, 2  ;;  %p227_p2 = scmp.lt.s32.totalorder %s508_s20, 3 }
   0x5   : > { %s597_s21 = smov (%p29_p1, %s27_s21), 0  ;;  %p228_p3 = pnand %p444_p0, %p227_p2 }
   0x6   : > { %p269_p4 = scmp.lt.s32.totalorder (!%p228_p3), %s500_s18, 1 }
   0x7   : > { %231 = sbr.rel (%p228_p3) target bundleno = 155 (0x9b), region = 40 }
   0xc   : > { %v460_v0 = vld [vmem:[%s589_s1 + $0x8] sm:$0xff]  ;;  %v459_v1 = vld [vmem:[%s589_s1] sm:$0xff]  ;;  %s599_s18 = smov (!%p269_p4, %s500_s18), 1  ;;  %vm314_vm0 = vcmask 261120   ;;  %vm340_vm1 = vcmask 257024  }
   0xd   : > { %324 = vmatpush.bf16.msra.mxu0 %v460_v0  ;;  %s445_s26 = sshll.u32 %s599_s18, 2  ;;  %s278_s29 = scalar_lea.vmem %s591_s3, %s599_s18  ;;  %v299_v3 = vld [vmem:[%s590_s2] sm:$0x1] }
   0xe   : > { %s275_s7 = scalar_lea.vmem %s588_s0, %s445_s26  ;;  %v300_v4 = vunpack.c.l.bf16 %v299_v3  ;;  %s285_s12 = scalar_lea.vmem %s592_s4, %s445_s26  ;;  %v485_v7 = vld [vmem:[%s278_s29] ss:$0 sm:$0xff] }
   0xf   : > { %v294_v2 = vld [vmem:[%s275_s7] sm:$0xf]  ;;  %s292_s15 = scalar_lea.vmem %s593_s5, %s445_s26 }
  0x10   : > { %v301_v5 = vperm.slane %v300_v4, 0  ;;  %v331_v6 = vld [vmem:[%s285_s12] sm:$0xf] }
  0x11   : > { %325 = vmatpush.bf16.msra.mxu0 %v459_v1  ;;  %v332_v10 = vunpack.c.l.bf16 %v331_v6 }
  0x14   : > { %456 = vmatmul.msk.bf16.vlgmr.msra.gmra.mxu0 %vm314_vm0, %v294_v2 }
  0x91   : > { %v327_v8 = vpop.f32.mrf.mxu0 }
  0x92   : > { %v328_v9 = vadd.f32 %v327_v8, %v301_v5 }
  0x94   : > { %v337_v11 = vmul.f32 %v485_v7, %v328_v9 }
  0x96   : > { %v338_v12 = vadd.f32 %v337_v11, %v332_v10 }
  0x98   : > { %v339_v13 = vpack.c.bf16 %v338_v12, %v338_v12 }
  0x99   : > { %v329_v14 = vpop.f32.mrf.mxu0 }
  0x9a   : > { %341 = vst.msk [vmem:[%s292_s15] sm:$0xf] %vm340_vm1, %v339_v13 }
  0x9b PF: > { %s15_s20 = sadd.s32 1, %s508_s20   ;;  %s594_s18 = smov %s504_s19 }
  0x9c   : > { %p12_p5 = scmp.ge.s32.totalorder %s15_s20, 4   ;;  %s595_s19 = smov %s597_s21 }
  0x9e   :  { %14 = sbr.rel (!%p12_p5) target bundleno = 2 (0x2), region = 76 }

// kernel: ditto_forward.26
= control target key start
LH: loop header
LB: loop body
LE: loop exit
PB: predicated region body
PF: predicated region fallthrough
CT: control target
= control target key end

     0   :  { %s1234_s24 = smov 0   ;;  %s1236_s25 = smov 0   ;;  %s1419_s0 = inlined_call_operand.vmem [shape: bf16[2,8,32], index: 0, kind: input, shape index: {}]   ;;  %s1420_s1 = inlined_call_operand.vmem [shape: bf16[2,8,32], index: 1, kind: input, shape index: {}]   ;;  %s1421_s2 = inlined_call_operand.vmem [shape: bf16[2,8,32], index: 2, kind: input, shape index: {}]   ;;  %s1422_s3 = inlined_call_operand.vmem [shape: f32[8,8], index: 3, kind: input, shape index: {}, may-alias: {3,5}]   ;;  %s1423_s4 = inlined_call_operand.vmem [shape: f32[8,8], index: 4, kind: input, shape index: {}, may-alias: {4,6}]   ;;  %s1424_s5 = inlined_call_operand.vmem [shape: f32[8,8], index: 5, kind: input, shape index: {}, may-alias: {3,5}]   ;;  %s1425_s6 = inlined_call_operand.vmem [shape: f32[8,8], index: 6, kind: input, shape index: {}, may-alias: {4,6}]   ;;  %s1426_s7 = inlined_call_operand.vmem [shape: bf16[2,8,32], index: 7, kind: output, shape index: {}]  }
   0x1   :  { %s1238_s26 = smov 0  }
   0x2 LB: > { %s29_s27 = sadd.s32 1, %s1174_s25  ;;  %p1061_p0 = scmp.ge.s32.totalorder %s1178_s26, 1  ;;  %s1178_s26 = sphi %s1238_s26, %s17_s26   ;;  %s1174_s25 = sphi %s1236_s25, %s1428_s25   ;;  %s1170_s24 = sphi %s1234_s24, %s1427_s24  }
   0x3   : > { %p31_p1 = scmp.ge.s32.totalorder %s29_s27, 2  ;;  %p294_p2 = scmp.lt.s32.totalorder %s1178_s26, 3 }
   0x5   : > { %s1430_s27 = smov (%p31_p1, %s29_s27), 0  ;;  %p295_p3 = pnand %p1061_p0, %p294_p2 }
   0x6   : > { %p346_p4 = scmp.lt.s32.totalorder (!%p295_p3), %s1170_s24, 1  ;;  %s1180_s12 = smov (!%p295_p3), 124  }
   0x7   : > { %298 = sbr.rel (%p295_p3) target bundleno = 1269 (0x4f5), region = 48  ;;  %s1181_s13 = smov (!%p295_p3), 116  }
   0x8   : > { %s1182_s14 = smov (!%p295_p3), 4   ;;  %s1183_s15 = smov (!%p295_p3), 108  }
   0x9   : > { %s1184_s16 = smov (!%p295_p3), 100   ;;  %s1185_s19 = smov (!%p295_p3), 8  }
   0xa   : > { %s1186_s30 = smov (!%p295_p3), 16   ;;  %s1188_s9 = smov (!%p295_p3), 120  }
   0xb   : > { %s1190_s10 = smov (!%p295_p3), 112  }
   0xc   : > { %s1432_s24 = smov (!%p346_p4, %s1170_s24), 1  ;;  %v400_v10 = vld [vmem:[%s1424_s5] sm:$0xff]  ;;  %vm414_vm0 = vcmask 31744   ;;  %vm390_vm1 = vcmask 64512   ;;  %vm381_vm2 = vcmask 7168   ;;  %vm489_vm3 = vcmask 1043456  }
   0xd   : > { %s1252_s28 = sshll.u32 %s1432_s24, 2  ;;  %v401_v14 = vld [vmem:[%s1425_s6] sm:$0xff]  ;;  %vm926_vm4 = vcmask 130048   ;;  %vm928_vm5 = vcmask 195584   ;;  %vm931_vm6 = vcmask 257024  }
   0xe   : > { %s356_s8 = scalar_lea.vmem %s1420_s1, %s1252_s28  ;;  %s349_s11 = scalar_lea.vmem %s1419_s0, %s1252_s28  ;;  %v398_v20 = vld [vmem:[%s1422_s3] sm:$0xff] }
   0xf   : > { %v396_v0 = vld [vmem:[%s356_s8] sm:$0xf]  ;;  %s1187_s8 = smov 24   ;;  %s375_s17 = scalar_lea.vmem %s1426_s7, %s1252_s28 }
  0x10   : > { %v395_v1 = vld [vmem:[%s349_s11] sm:$0xf]  ;;  %v1262_v2 = vunpack.c.l.bf16 %v396_v0  ;;  %s1193_s11 = smov 104  }
  0x11   : > { %v1264_v3 = vunpack.c.l.bf16 %v395_v1  ;;  %v399_v22 = vld [vmem:[%s1423_s4] sm:$0xff] }
  0x12   : > { %v420_v4 = vsub.f32 0.0, %v1262_v2  ;;  %v419_v18 = vmul.f32 %v1262_v2, %v400_v10 }
  0x13   : > { %v405_v5 = vsub.f32 0.0, %v1264_v3  ;;  %v1114_v6 = vpack.i.bf16 %v1264_v3, %v1262_v2  ;;  %v404_v28 = vmul.f32 %v1264_v3, %v398_v20 }
  0x14   : > { %422 = vrot.lane.b32.xlu0 %v420_v4, %s1180_s12  ;;  %533 = vrot.lane.b32.xlu2 %v420_v4, %s1181_s13 }
  0x15   : > { %407 = vrot.lane.b32.xlu1 %v405_v5, %s1180_s12 }
  0x1c   : > { %426 = vrot.lane.b32.xlu0 %v1262_v2, %s1182_s14  ;;  %1115 = vrot.lane.b32.xlu2 %v1114_v6, %s1180_s12 }
  0x1d   : > { %411 = vrot.lane.b32.xlu1 %v1264_v3, %s1182_s14  ;;  %s363_s14 = scalar_lea.vmem %s1421_s2, %s1252_s28 }
  0x24   : > { %514 = vrot.lane.b32.xlu0 %v405_v5, %s1181_s13  ;;  %1120 = vrot.lane.b32.xlu2 %v1114_v6, %s1181_s13 }
  0x25   : > { %656 = vrot.lane.b32.xlu1 %v420_v4, %s1183_s15 }
  0x2c   : > { %776 = vrot.lane.b32.xlu0 %v420_v4, %s1184_s16  ;;  %638 = vrot.lane.b32.xlu2 %v405_v5, %s1183_s15 }
  0x2d   : > { %1125 = vrot.lane.b32.xlu1 %v1114_v6, %s1183_s15  ;;  %v1189_v6 = vmov -inf  }
  0x2e   : > { %382 = vst.msk [vmem:[#allocation2] sm:$0xff] %vm381_vm2, %v1189_v6 }
  0x2f   : > { %383 = vst.msk [vmem:[#allocation2 + $0x8] sm:$0xff] %vm381_vm2, %v1189_v6 }
  0x30   : > { %384 = vst.msk [vmem:[#allocation2 + $0x10] sm:$0xff] %vm381_vm2, %v1189_v6 }
  0x31   : > { %385 = vst.msk [vmem:[#allocation2 + $0x18] sm:$0xff] %vm381_vm2, %v1189_v6 }
  0x34   : > { %758 = vrot.lane.b32.xlu0 %v405_v5, %s1184_s16 }
  0x35   : > { %529 = vrot.lane.b32.xlu1 %v400_v10, %s1185_s19 }
  0x3d   : > { %510 = vrot.lane.b32.xlu1 %v398_v20, %s1185_s19 }
  0x45   : > { %652 = vrot.lane.b32.xlu1 %v400_v10, %s1186_s30 }
  0x6e   : > { %v534_v7 = vpop.permute.xlu2 %533 }
  0x76   : > { %v1116_v11 = vpop.permute.xlu2 %1115 }
  0x77   : > { %v1117_v12 = vunpack.i.l.bf16 %v1116_v11  ;;  %v1118_v25 = vunpack.i.h.bf16 %v1116_v11 }
  0x79   : > { %v539_v13 = vsel %vm414_vm0, %v534_v7, %v1117_v12 }
  0x7a   : > { %v540_v15 = vmul.f32 %v539_v13, %v401_v14 }
  0x7c   : > { %542 = vrot.lane.b32.xlu2 %v540_v15, %s1185_s19 }
  0x7e   : > { %v1121_v35 = vpop.permute.xlu2 %1120 }
  0x7f   : > { %v1122_v37 = vunpack.i.l.bf16 %v1121_v35  ;;  %v1123_v40 = vunpack.i.h.bf16 %v1121_v35  ;;  %v397_v35 = vld [vmem:[%s363_s14] sm:$0xf] }
  0x86   : > { %v423_v8 = vpop.permute.xlu0 %422  ;;  %v639_v41 = vpop.permute.xlu2 %638 }
  0x87   : > { %v408_v9 = vpop.permute.xlu1 %407  ;;  %v644_v42 = vsel %vm414_vm0, %v639_v41, %v1123_v40 }
  0x88   : > { %v645_v43 = vmul.f32 %v644_v42, %v399_v22 }
  0x8e   : > { %v427_v16 = vpop.permute.xlu0 %426 }
  0x8f   : > { %v412_v17 = vpop.permute.xlu1 %411  ;;  %v429_v19 = vsel %vm414_vm0, %v423_v8, %v427_v16  ;;  %v1191_v16 = vmov 0  }
  0x90   : > { %v430_v21 = vmul.f32 %v429_v19, %v401_v14  ;;  %v415_v23 = vsel %vm414_vm0, %v408_v9, %v412_v17  ;;  %1129 = vset.pattern.permute.xlu2 %v1191_v16  ;;  %1130 = vset.pattern.permute.xlu0 %v1191_v16  ;;  %v1192_v17 = vmov 0.0  }
  0x91   : > { %v416_v26 = vmul.f32 %v415_v23, %v399_v22  ;;  %1131 = vset.pattern.permute.xlu1 %v1191_v16  ;;  %391 = vst.msk [vmem:[#allocation4] sm:$0xff] %vm390_vm1, %v1192_v17 }
  0x92   : > { %v431_v24 = vadd.f32 %v430_v21, %v419_v18  ;;  %386 = vst.msk [vmem:[#allocation3] sm:$0xff] %vm381_vm2, %v1192_v17 }
  0x93   : > { %v417_v32 = vadd.f32 %v416_v26, %v404_v28  ;;  %387 = vst.msk [vmem:[#allocation3 + $0x8] sm:$0xff] %vm381_vm2, %v1192_v17 }
  0x94   : > { %v432_v27 = vpack.c.bf16 %v431_v24, %v431_v24  ;;  %388 = vst.msk [vmem:[#allocation3 + $0x10] sm:$0xff] %vm381_vm2, %v1192_v17 }
  0x95   : > { %v418_v34 = vpack.c.bf16 %v417_v32, %v417_v32  ;;  %389 = vst.msk [vmem:[#allocation3 + $0x18] sm:$0xff] %vm381_vm2, %v1192_v17 }
  0x96   : > { %v438_v29 = vsel %vm390_vm1, %v432_v27, 0  ;;  %v515_v30 = vpop.permute.xlu0 %514  ;;  %392 = vst.msk [vmem:[#allocation4 + $0x8] sm:$0xff] %vm390_vm1, %v1192_v17 }
  0x97   : > { %447 = vmatpush.bf16.xpose.msra.mxu0 %v438_v29  ;;  %v520_v31 = vsel %vm414_vm0, %v515_v30, %v1118_v25  ;;  %v657_v36 = vpop.permute.xlu1 %656  ;;  %393 = vst.msk [vmem:[#allocation4 + $0x10] sm:$0xff] %vm390_vm1, %v1192_v17 }
  0x98   : > { %v521_v33 = vmul.f32 %v520_v31, %v399_v22  ;;  %v662_v38 = vsel %vm414_vm0, %v657_v36, %v1122_v37  ;;  %394 = vst.msk [vmem:[#allocation4 + $0x18] sm:$0xff] %vm390_vm1, %v1192_v17 }
  0x99   : > { %v663_v39 = vmul.f32 %v662_v38, %v401_v14 }
  0x9a   : > { %523 = vrot.lane.b32.xlu2 %v521_v33, %s1185_s19 }
  0x9b   : > { %665 = vrot.lane.b32.xlu1 %v663_v39, %s1186_s30 }
  0x9e   : > { %1066 = vmatmul.msk.bf16.vlgmr.msra.gmra.mxu0 %vm390_vm1, %v418_v34  ;;  %v777_v46 = vpop.permute.xlu0 %776 }
  0x9f   : > { %v1126_v44 = vpop.permute.xlu1 %1125 }
  0xa0   : > { %v1127_v45 = vunpack.i.l.bf16 %v1126_v44  ;;  %v1128_v54 = vunpack.i.h.bf16 %v1126_v44 }
  0xa2   : > { %772 = vrot.lane.b32.xlu2 %v400_v10, %s1187_s8  ;;  %v782_v49 = vsel %vm414_vm0, %v777_v46, %v1127_v45 }
  0xa3   : > { %634 = vrot.lane.b32.xlu1 %v398_v20, %s1186_s30  ;;  %v783_v51 = vmul.f32 %v782_v49, %v401_v14 }
  0xa6   : > { %v759_v55 = vpop.permute.xlu0 %758 }
  0xa7   : > { %v530_v47 = vpop.permute.xlu1 %529  ;;  %v764_v56 = vsel %vm414_vm0, %v759_v55, %v1128_v54 }
  0xa8   : > { %v532_v50 = vmul.f32 %v530_v47, %v1262_v2  ;;  %v765_v57 = vmul.f32 %v764_v56, %v399_v22  ;;  %v454_v22 = vld [vmem:[#allocation2] sm:$0xff] }
  0xaa   : > { %785 = vrot.lane.b32.xlu2 %v783_v51, %s1187_s8 }
  0xab   : > { %647 = vrot.lane.b32.xlu1 %v645_v43, %s1186_s30 }
  0xaf   : > { %v511_v62 = vpop.permute.xlu1 %510 }
  0xb0   : > { %v513_v63 = vmul.f32 %v511_v62, %v1264_v3  ;;  %v574_v62 = vld [vmem:[#allocation2 + $0x8] sm:$0xff] }
  0xb2   : > { %754 = vrot.lane.b32.xlu2 %v398_v20, %s1187_s8 }
  0xb7   : > { %v653_v5 = vpop.permute.xlu1 %652 }
  0xb8   : > { %v655_v7 = vmul.f32 %v653_v5, %v1262_v2 }
  0xba   : > { %767 = vrot.lane.b32.xlu2 %v765_v57, %s1187_s8 }
  0xd6   : > { %v543_v48 = vpop.permute.xlu2 %542 }
  0xd7   : > { %v545_v52 = vadd.f32 %v543_v48, %v532_v50 }
  0xd9   : > { %v546_v53 = vpack.c.bf16 %v545_v52, %v545_v52 }
  0xdb   : > { %551 = vrot.lane.b32.xlu1 %v546_v53, %s1188_s9 }
  0xf4   : > { %v524_v0 = vpop.permute.xlu2 %523 }
  0xf5   : > { %v526_v1 = vadd.f32 %v524_v0, %v513_v63 }
  0xf7   : > { %v527_v4 = vpack.c.bf16 %v526_v1, %v526_v1 }
  0xfc   : > { %v773_v18 = vpop.permute.xlu2 %772 }
  0xfd   : > { %v775_v24 = vmul.f32 %v773_v18, %v1262_v2 }
 0x104   : > { %v786_v21 = vpop.permute.xlu2 %785 }
 0x105   : > { %v788_v27 = vadd.f32 %v786_v21, %v775_v24 }
 0x107   : > { %v789_v29 = vpack.c.bf16 %v788_v27, %v788_v27 }
 0x10c   : > { %v755_v23 = vpop.permute.xlu2 %754 }
 0x10d   : > { %v666_v8 = vpop.permute.xlu1 %665  ;;  %v757_v30 = vmul.f32 %v755_v23, %v1264_v3 }
 0x10e   : > { %v668_v9 = vadd.f32 %v666_v8, %v655_v7  ;;  %v817_v8 = vld [vmem:[#allocation2 + $0x18] sm:$0xff] }
 0x110   : > { %v669_v10 = vpack.c.bf16 %v668_v9, %v668_v9 }
 0x112   : > { %674 = vrot.lane.b32.xlu1 %v669_v10, %s1190_s10 }
 0x114   : > { %v768_v31 = vpop.permute.xlu2 %767 }
 0x115   : > { %v635_v11 = vpop.permute.xlu1 %634  ;;  %v770_v32 = vadd.f32 %v768_v31, %v757_v30 }
 0x116   : > { %v637_v12 = vmul.f32 %v635_v11, %v1264_v3  ;;  %v491_v3 = vsel %vm489_vm3, %v397_v35, 0 }
 0x117   : > { %v771_v33 = vpack.c.bf16 %v770_v32, %v770_v32  ;;  %500 = vmatpush.bf16.msra.mxu1 %v491_v3 }
 0x11b   : > { %v449_v58 = vpop.f32.mrf.mxu0 }
 0x11c   : > { %v1310_v59 = vmul.f32 0.35355338, %v449_v58 }
 0x11d   : > { %v648_v13 = vpop.permute.xlu1 %647 }
 0x11e   : > { %v456_v60 = vsel %vm390_vm1, %v1310_v59, -inf  ;;  %v650_v14 = vadd.f32 %v648_v13, %v637_v12  ;;  %v697_v13 = vld [vmem:[#allocation2 + $0x10] sm:$0xff] }
 0x11f   : > { %457 = vmax.xlane.f32.xlu0 %v456_v60 }
 0x120   : > { %v651_v15 = vpack.c.bf16 %v650_v14, %v650_v14 }
 0x122   : > { %671 = vrot.lane.b32.xlu1 %v651_v15, %s1190_s10 }
 0x123   : > { %v451_v61 = vpop.f32.mrf.mxu0 }
 0x133   : > { %548 = vrot.lane.b32.xlu0 %v527_v4, %s1188_s9 }
 0x14d   : > { %v552_v19 = vpop.permute.xlu1 %551 }
 0x14e   : > { %v557_v20 = vsel %vm390_vm1, %v552_v19, 0 }
 0x14f   : > { %566 = vmatpush.bf16.xpose.msra.mxu2 %v557_v20  ;;  %v478_v20 = vld [vmem:[#allocation4] sm:$0xff] }
 0x184   : > { %v675_v34 = vpop.permute.xlu1 %674 }
 0x185   : > { %v680_v36 = vsel %vm390_vm1, %v675_v34, 0 }
 0x186   : > { %689 = vmatpush.bf16.xpose.msrb.mxu1 %v680_v36 }
 0x192   : > { %v458_v25 = vpop.xlane.xlu0 %457 }
 0x193   : > { %v459_v26 = vmax.f32 %v454_v22, %v458_v25 }
 0x194   : > { %v672_v45 = vpop.permute.xlu1 %671 }
 0x195   : > { %v460_v28 = vsub.f32 %v454_v22, %v459_v26  ;;  %508 = vst.msk [vmem:[#allocation2] sm:$0xff] %vm381_vm2, %v459_v26  ;;  %465 = vperm.xlu2 %1129, %v459_v26  }
 0x197   : > { %v461_v63 = vmul.f32 1.442695, %v460_v28 }
 0x19d   : > { %794 = vrot.lane.b32.xlu2 %v789_v29, %s1193_s11 }
 0x1a5   : > { %791 = vrot.lane.b32.xlu2 %v771_v33, %s1193_s11  ;;  %v549_v2 = vpop.permute.xlu0 %548 }
 0x1a6   : > { %1068 = vmatmul.msk.bf16.vlgmr.msra.gmra.mxu2 %vm390_vm1, %v549_v2 }
 0x1ef   : > { %v466_v37 = vpop.permute.xlu2 %465 }
 0x1f0   : > { %v468_v38 = vsub.f32 %v1310_v59, %v466_v37  ;;  %v608_v59 = vunpack.c.l.b16 %v397_v35 }
 0x1f2   : > { %v469_v39 = vmul.f32 1.442695, %v468_v38  ;;  %v609_v61 = vpack.c.b16 %v608_v59, %v608_v59 }
 0x1f4   : > { %1132 = vpow2.f32 %v469_v39 }
 0x1f5   : > { %1134 = vpow2.f32 %v461_v63 }
 0x1f7   : > { %v795_v40 = vpop.permute.xlu2 %794 }
 0x1f8   : > { %v800_v41 = vsel %vm390_vm1, %v795_v40, 0 }
 0x1f9   : > { %809 = vmatpush.bf16.xpose.msrb.mxu0 %v800_v41 }
 0x1fa   : > { %v1347_v42 = vpop.eup %1132 }
 0x1fb   : > { %v485_v43 = vpack.c.bf16 %v1347_v42, %v1347_v42  ;;  %v1365_v6 = vpop.eup %1134  ;;  %v472_v29 = vsel %vm390_vm1, %v1347_v42, 0.0 }
 0x1fd   : > { %1067 = vmatmul.msk.bf16.vlgmr.msra.gmra.mxu1 %vm390_vm1, %v485_v43 }
 0x1ff   : > { %v792_v44 = vpop.permute.xlu2 %791 }
 0x200   : > { %1072 = vmatmul.msk.bf16.vlgmr.msrb.gmra.mxu0 %vm390_vm1, %v792_v44 }
 0x20d   : > { %1070 = vmatmul.msk.bf16.vlgmr.msrb.gmra.mxu1 %vm390_vm1, %v672_v45 }
 0x229   : > { %v568_v46 = vpop.f32.mrf.mxu2 }
 0x22a   : > { %v572_v47 = vmul.f32 0.35355338, %v568_v46 }
 0x22c   : > { %v577_v48 = vsel %vm390_vm1, %v572_v47, -inf }
 0x22d   : > { %578 = vmax.xlane.f32.xlu0 %v577_v48 }
 0x231   : > { %v570_v49 = vpop.f32.mrf.mxu2 }
 0x27a   : > { %v502_v50 = vpop.f32.mrf.mxu1 }
 0x27d   : > { %v811_v51 = vpop.f32.mrf.mxu0 }
 0x27e   : > { %v1355_v52 = vmul.f32 0.35355338, %v811_v51  ;;  %v599_v51 = vld [vmem:[#allocation4 + $0x8] sm:$0xff] }
 0x280   : > { %v820_v53 = vsel %vm390_vm1, %v1355_v52, -inf }
 0x281   : > { %821 = vmax.xlane.f32.xlu2 %v820_v53 }
 0x282   : > { %v504_v54 = vpop.f32.mrf.mxu1 }
 0x283   : > { %v455_v54 = vld [vmem:[#allocation3] sm:$0xff] }
 0x285   : > { %v813_v55 = vpop.f32.mrf.mxu0 }
 0x28a   : > { %v691_v56 = vpop.f32.mrf.mxu1 }
 0x28b   : > { %v1359_v57 = vmul.f32 0.35355338, %v691_v56 }
 0x28d   : > { %v700_v58 = vsel %vm390_vm1, %v1359_v57, -inf }
 0x28e   : > { %701 = vmax.xlane.f32.xlu1 %v700_v58  ;;  %v471_v58 = vmul.f32 %v1365_v6, %v455_v54 }
 0x292   : > { %v693_v60 = vpop.f32.mrf.mxu1 }
 0x299   : > { %610 = vrot.lane.b32.xlu2 %v609_v61, %s1188_s9 }
 0x2a0   : > { %v579_v0 = vpop.xlane.xlu0 %578 }
 0x2a1   : > { %v580_v1 = vmax.f32 %v574_v62, %v579_v0 }
 0x2a3   : > { %v581_v4 = vsub.f32 %v574_v62, %v580_v1  ;;  %633 = vst.msk [vmem:[#allocation2 + $0x8] sm:$0xff] %vm381_vm2, %v580_v1  ;;  %586 = vperm.xlu0 %1130, %v580_v1   ;;  %v819_v1 = vld [vmem:[#allocation3 + $0x18] sm:$0xff] }
 0x2a5   : > { %v582_v5 = vmul.f32 1.442695, %v581_v4 }
 0x2a7   : > { %1136 = vpow2.f32 %v582_v5 }
 0x2ab   : > { %481 = vperm.xlu0 %1130, %v1365_v6  }
 0x2ad   : > { %v1368_v7 = vpop.eup %1136 }
 0x2b3   : > { %602 = vperm.xlu0 %1130, %v1368_v7  }
 0x2f4   : > { %v822_v9 = vpop.xlane.xlu2 %821 }
 0x2f5   : > { %v823_v10 = vmax.f32 %v817_v8, %v822_v9 }
 0x2f7   : > { %v824_v11 = vsub.f32 %v817_v8, %v823_v10  ;;  %873 = vst.msk [vmem:[#allocation2 + $0x18] sm:$0xff] %vm381_vm2, %v823_v10  ;;  %829 = vperm.xlu2 %1129, %v823_v10   ;;  %v842_v10 = vld [vmem:[#allocation4 + $0x18] sm:$0xff] }
 0x2f9   : > { %v825_v37 = vmul.f32 1.442695, %v824_v11 }
 0x2fc   : > { %v611_v12 = vpop.permute.xlu2 %610 }
 0x2fd   : > { %v616_v14 = vsel %vm489_vm3, %v611_v12, 0 }
 0x2fe   : > { %625 = vmatpush.bf16.msra.mxu3 %v616_v14 }
 0x2ff   : > { %850 = vrot.lane.b32.xlu2 %v609_v61, %s1193_s11 }
 0x301   : > { %v702_v15 = vpop.xlane.xlu1 %701 }
 0x302   : > { %v703_v16 = vmax.f32 %v697_v13, %v702_v15  ;;  %v699_v15 = vld [vmem:[#allocation3 + $0x10] sm:$0xff] }
 0x304   : > { %753 = vst.msk [vmem:[#allocation2 + $0x10] sm:$0xff] %vm381_vm2, %v703_v16  ;;  %709 = vperm.xlu1 %1131, %v703_v16   ;;  %v704_v27 = vsub.f32 %v697_v13, %v703_v16 }
 0x306   : > { %v705_v28 = vmul.f32 1.442695, %v704_v27 }
 0x30c   : > { %730 = vrot.lane.b32.xlu1 %v609_v61, %s1190_s10 }
 0x315   : > { %v587_v17 = vpop.permute.xlu0 %586 }
 0x316   : > { %v589_v18 = vsub.f32 %v572_v47, %v587_v17  ;;  %v576_v47 = vld [vmem:[#allocation3 + $0x8] sm:$0xff] }
 0x317   : > { %v592_v48 = vmul.f32 %v1368_v7, %v576_v47 }
 0x318   : > { %v590_v19 = vmul.f32 1.442695, %v589_v18 }
 0x31a   : > { %1138 = vpow2.f32 %v590_v19 }
 0x31b   : > { %1140 = vpow2.f32 %v705_v28 }
 0x31d   : > { %v482_v21 = vpop.permute.xlu0 %481 }
 0x31e   : > { %v484_v22 = vmul.f32 %v482_v21, %v478_v20  ;;  %v722_v21 = vld [vmem:[#allocation4 + $0x10] sm:$0xff] }
 0x320   : > { %v1139_v23 = vpop.eup %1138  ;;  %v506_v24 = vadd.f32 %v502_v50, %v484_v22 }
 0x321   : > { %v606_v25 = vpack.c.bf16 %v1139_v23, %v1139_v23  ;;  %v593_v26 = vsel %vm390_vm1, %v1139_v23, 0.0  ;;  %v1381_v30 = vpop.eup %1140 }
 0x322   : > { %507 = vst.msk [vmem:[#allocation4] sm:$0xff] %vm390_vm1, %v506_v24  ;;  %v715_v16 = vmul.f32 %v1381_v30, %v699_v15 }
 0x323   : > { %1069 = vmatmul.msk.bf16.vlgmr.msra.gmra.mxu3 %vm390_vm1, %v606_v25 }
 0x328   : > { %594 = vadd.xlane.f32.xlu2 %v593_v26 }
 0x336   : > { %473 = vadd.xlane.f32.xlu1 %v472_v29 }
 0x340   : > { %725 = vperm.xlu2 %1129, %v1381_v30  }
 0x351   : > { %v830_v31 = vpop.permute.xlu2 %829 }
 0x352   : > { %v832_v32 = vsub.f32 %v1355_v52, %v830_v31  ;;  %v603_v52 = vpop.permute.xlu0 %602 }
 0x353   : > { %v605_v53 = vmul.f32 %v603_v52, %v599_v51 }
 0x354   : > { %v833_v33 = vmul.f32 1.442695, %v832_v32 }
 0x356   : > { %1142 = vpow2.f32 %v833_v33 }
 0x357   : > { %1144 = vpow2.f32 %v825_v37 }
 0x359   : > { %v851_v2 = vpop.permute.xlu2 %850 }
 0x35a   : > { %v856_v34 = vsel %vm489_vm3, %v851_v2, 0 }
 0x35b   : > { %865 = vmatpush.bf16.msrb.mxu2 %v856_v34 }
 0x35c   : > { %v1143_v35 = vpop.eup %1142 }
 0x35d   : > { %v836_v3 = vsel %vm390_vm1, %v1143_v35, 0.0  ;;  %v849_v36 = vpack.c.bf16 %v1143_v35, %v1143_v35  ;;  %v1145_v38 = vpop.eup %1144 }
 0x35e   : > { %837 = vadd.xlane.f32.xlu1 %v836_v3  ;;  %v835_v4 = vmul.f32 %v1145_v38, %v819_v1  ;;  %v879_v3 = vld [vmem:[#allocation4] sm:$0xff] }
 0x35f   : > { %1073 = vmatmul.msk.bf16.vlgmr.msrb.gmra.mxu2 %vm390_vm1, %v849_v36 }
 0x376   : > { %v710_v39 = vpop.permute.xlu1 %709 }
 0x377   : > { %v712_v40 = vsub.f32 %v1359_v57, %v710_v39  ;;  %845 = vperm.xlu1 %1131, %v1145_v38  }
 0x379   : > { %v713_v41 = vmul.f32 1.442695, %v712_v40 }
 0x37b   : > { %1146 = vpow2.f32 %v713_v41 }
 0x37e   : > { %v731_v42 = vpop.permute.xlu1 %730 }
 0x37f   : > { %v736_v43 = vsel %vm489_vm3, %v731_v42, 0 }
 0x380   : > { %745 = vmatpush.bf16.msrb.mxu3 %v736_v43 }
 0x381   : > { %v1147_v44 = vpop.eup %1146 }
 0x382   : > { %v716_v45 = vsel %vm390_vm1, %v1147_v44, 0.0  ;;  %v729_v46 = vpack.c.bf16 %v1147_v44, %v1147_v44 }
 0x383   : > { %717 = vadd.xlane.f32.xlu0 %v716_v45 }
 0x384   : > { %1071 = vmatmul.msk.bf16.vlgmr.msrb.gmra.mxu3 %vm390_vm1, %v729_v46 }
 0x39b   : > { %v595_v49 = vpop.xlane.xlu2 %594 }
 0x39c   : > { %v596_v50 = vadd.f32 %v595_v49, %v592_v48 }
 0x39e   : > { %597 = vst.msk [vmem:[#allocation3 + $0x8] sm:$0xff] %vm381_vm2, %v596_v50 }
 0x3a3   : > { %v726_v19 = vpop.permute.xlu2 %725 }
 0x3a4   : > { %v728_v22 = vmul.f32 %v726_v19, %v722_v21 }
 0x3a5   : > { %v886_v55 = vld [vmem:[#allocation3 + $0x8] sm:$0xff] }
 0x3a6   : > { %v627_v56 = vpop.f32.mrf.mxu3  ;;  %1148 = vrcp.f32 %v886_v55 }
 0x3a7   : > { %v631_v57 = vadd.f32 %v627_v56, %v605_v53 }
 0x3a9   : > { %632 = vst.msk [vmem:[#allocation4 + $0x8] sm:$0xff] %vm390_vm1, %v631_v57  ;;  %v474_v59 = vpop.xlane.xlu1 %473 }
 0x3aa   : > { %v475_v60 = vadd.f32 %v474_v59, %v471_v58 }
 0x3ac   : > { %v1149_v61 = vpop.eup %1148  ;;  %477 = vst.msk [vmem:[#allocation3] sm:$0xff] %vm381_vm2, %v475_v60 }
 0x3ad   : > { %891 = vperm.xlu2 %1129, %v1149_v61  }
 0x3ae   : > { %v629_v62 = vpop.f32.mrf.mxu3 }
 0x3b0   : > { %v888_v25 = vld [vmem:[#allocation4 + $0x8] sm:$0xff] }
 0x3b3   : > { %v877_v63 = vld [vmem:[#allocation3] sm:$0xff] }
 0x3b4   : > { %1150 = vrcp.f32 %v877_v63 }
 0x3ba   : > { %v1151_v0 = vpop.eup %1150 }
 0x3bb   : > { %882 = vperm.xlu0 %1130, %v1151_v0  }
 0x3d1   : > { %v838_v5 = vpop.xlane.xlu1 %837 }
 0x3d2   : > { %v839_v7 = vadd.f32 %v838_v5, %v835_v4 }
 0x3d4   : > { %840 = vst.msk [vmem:[#allocation3 + $0x18] sm:$0xff] %vm381_vm2, %v839_v7 }
 0x3db   : > { %v904_v6 = vld [vmem:[#allocation3 + $0x18] sm:$0xff] }
 0x3dc   : > { %1152 = vrcp.f32 %v904_v6 }
 0x3e2   : > { %v1153_v8 = vpop.eup %1152  ;;  %v867_v9 = vpop.f32.mrf.mxu2 }
 0x3e3   : > { %909 = vperm.xlu2 %1129, %v1153_v8  }
 0x3e9   : > { %v846_v11 = vpop.permute.xlu1 %845 }
 0x3ea   : > { %v848_v12 = vmul.f32 %v846_v11, %v842_v10  ;;  %v869_v13 = vpop.f32.mrf.mxu2 }
 0x3ec   : > { %v871_v14 = vadd.f32 %v867_v9, %v848_v12 }
 0x3ee   : > { %872 = vst.msk [vmem:[#allocation4 + $0x18] sm:$0xff] %vm390_vm1, %v871_v14 }
 0x3f5   : > { %v906_v30 = vld [vmem:[#allocation4 + $0x18] sm:$0xff] }
 0x3f6   : > { %v718_v17 = vpop.xlane.xlu0 %717 }
 0x3f7   : > { %v719_v18 = vadd.f32 %v718_v17, %v715_v16 }
 0x3f9   : > { %720 = vst.msk [vmem:[#allocation3 + $0x10] sm:$0xff] %vm381_vm2, %v719_v18 }
 0x400   : > { %v895_v20 = vld [vmem:[#allocation3 + $0x10] sm:$0xff] }
 0x401   : > { %1154 = vrcp.f32 %v895_v20 }
 0x407   : > { %v1155_v23 = vpop.eup %1154  ;;  %v747_v24 = vpop.f32.mrf.mxu3 }
 0x408   : > { %v892_v26 = vpop.permute.xlu2 %891  ;;  %v751_v27 = vadd.f32 %v747_v24, %v728_v22  ;;  %900 = vperm.xlu1 %1131, %v1155_v23  }
 0x409   : > { %v894_v28 = vmul.f32 %v892_v26, %v888_v25 }
 0x40a   : > { %752 = vst.msk [vmem:[#allocation4 + $0x10] sm:$0xff] %vm390_vm1, %v751_v27 }
 0x40b   : > { %914 = vrot.lane.b32.xlu0 %v894_v28, %s1185_s19 }
 0x40f   : > { %v749_v29 = vpop.f32.mrf.mxu3 }
 0x411   : > { %v897_v2 = vld [vmem:[#allocation4 + $0x10] sm:$0xff] }
 0x42d   : > { %v883_v35 = vpop.permute.xlu0 %882 }
 0x42e   : > { %v885_v37 = vmul.f32 %v883_v35, %v879_v3 }
 0x43d   : > { %v910_v31 = vpop.permute.xlu2 %909 }
 0x43e   : > { %v912_v32 = vmul.f32 %v910_v31, %v906_v30 }
 0x440   : > { %922 = vrot.lane.b32.xlu2 %v912_v32, %s1187_s8 }
 0x47a   : > { %v901_v33 = vpop.permute.xlu1 %900 }
 0x47b   : > { %v903_v34 = vmul.f32 %v901_v33, %v897_v2 }
 0x47d   : > { %918 = vrot.lane.b32.xlu1 %v903_v34, %s1186_s30  ;;  %v915_v36 = vpop.permute.xlu0 %914 }
 0x47e   : > { %v925_v38 = vsel %vm390_vm1, %v885_v37, %v915_v36 }
 0x49a   : > { %v923_v40 = vpop.permute.xlu2 %922 }
 0x4ef   : > { %v919_v39 = vpop.permute.xlu1 %918 }
 0x4f0   : > { %v927_v41 = vsel %vm926_vm4, %v925_v38, %v919_v39 }
 0x4f1   : > { %v929_v42 = vsel %vm928_vm5, %v927_v41, %v923_v40 }
 0x4f2   : > { %v930_v43 = vpack.c.bf16 %v929_v42, %v929_v42 }
 0x4f4   : > { %932 = vst.msk [vmem:[%s375_s17] sm:$0xf] %vm931_vm6, %v930_v43 }
 0x4f5 PF: > { %s17_s26 = sadd.s32 1, %s1178_s26   ;;  %s1427_s24 = smov %s1174_s25 }
 0x4f6   : > { %p14_p5 = scmp.ge.s32.totalorder %s17_s26, 4   ;;  %s1428_s25 = smov %s1430_s27 }
 0x4f8   :  { %16 = sbr.rel (!%p14_p5) target bundleno = 2 (0x2), region = 107 }

// kernel: ditto_forward.28
= control target key start
LH: loop header
LB: loop body
LE: loop exit
PB: predicated region body
PF: predicated region fallthrough
CT: control target
= control target key end

     0   :  { %s437_s12 = smov 0   ;;  %s439_s13 = smov 0   ;;  %s489_s0 = inlined_call_operand.vmem [shape: bf16[2,8,32], index: 0, kind: input, shape index: {}]   ;;  %s490_s1 = inlined_call_operand.vmem [shape: bf16[32,32], index: 1, kind: input, shape index: {}]   ;;  %s491_s2 = inlined_call_operand.vmem [shape: bf16[1,32], index: 2, kind: input, shape index: {}]   ;;  %s492_s3 = inlined_call_operand.vmem [shape: bf16[2,8,32], index: 3, kind: output, shape index: {}]  }
   0x1   :  { %s441_s14 = smov 0  }
   0x2 LB: > { %s25_s15 = sadd.s32 1, %s410_s13  ;;  %p347_p0 = scmp.ge.s32.totalorder %s414_s14, 1  ;;  %s414_s14 = sphi %s441_s14, %s13_s14   ;;  %s410_s13 = sphi %s439_s13, %s494_s13   ;;  %s406_s12 = sphi %s437_s12, %s493_s12  }
   0x3   : > { %p27_p1 = scmp.ge.s32.totalorder %s25_s15, 2  ;;  %p155_p2 = scmp.lt.s32.totalorder %s414_s14, 3 }
   0x5   : > { %s496_s15 = smov (%p27_p1, %s25_s15), 0  ;;  %p156_p3 = pnand %p347_p0, %p155_p2 }
   0x6   : > { %p183_p4 = scmp.lt.s32.totalorder (!%p156_p3), %s406_s12, 1 }
   0x7   : > { %159 = sbr.rel (%p156_p3) target bundleno = 418 (0x1a2), region = 32 }
   0xc   : > { %s498_s12 = smov (!%p183_p4, %s406_s12), 1  ;;  %vm200_vm0 = vcmask 261120   ;;  %v416_v3 = vmov 32.0   ;;  %v362_v15 = vld [vmem:[%s490_s1 + $0x8] sm:$0xff]  ;;  %v361_v16 = vld [vmem:[%s490_s1] sm:$0xff]  ;;  %vm267_vm5 = vcmask 257024  }
   0xd   : > { %s348_s16 = sshll.u32 %s498_s12, 2  ;;  %388 = vrcp.f32 %v416_v3  ;;  %259 = vmatpush.bf16.msra.mxu0 %v362_v15  ;;  %v235_v29 = vld [vmem:[%s491_s2] sm:$0x1] }
   0xe   : > { %s189_s19 = scalar_lea.vmem %s489_s0, %s348_s16  ;;  %v236_v30 = vunpack.c.l.bf16 %v235_v29  ;;  %s196_s28 = scalar_lea.vmem %s492_s3, %s348_s16 }
   0xf   : > { %v198_v0 = vld [vmem:[%s189_s19] sm:$0xf] }
  0x10   : > { %v199_v1 = vunpack.c.l.bf16 %v198_v0  ;;  %v237_v31 = vperm.slane %v236_v30, 0 }
  0x11   : > { %260 = vmatpush.bf16.msra.mxu0 %v361_v16 }
  0x12   : > { %v201_v2 = vsel %vm200_vm0, %v199_v1, 0.0 }
  0x13   : > { %202 = vadd.xlane.f32.xlu0 %v201_v2  ;;  %v389_v4 = vpop.eup %388 }
  0x14   : > { %v205_v5 = vmul.f32 32.0, %v389_v4  ;;  %vm209_vm1 = vweird.f32 %v389_v4 }
  0x16   : > { %v206_v6 = vsub.f32 1.0, %v205_v5 }
  0x18   : > { %v207_v7 = vmul.f32 %v389_v4, %v206_v6 }
  0x1a   : > { %v208_v8 = vadd.f32 %v389_v4, %v207_v7 }
  0x1c   : > { %v210_v9 = vsel %vm209_vm1, %v389_v4, %v208_v8 }
  0x86   : > { %v203_v10 = vpop.xlane.xlu0 %202 }
  0x87   : > { %v211_v11 = vmul.f32 %v210_v9, %v203_v10 }
  0x89   : > { %v212_v12 = vsub.f32 %v199_v1, %v211_v11 }
  0x8b   : > { %v213_v13 = vmul.f32 %v212_v12, %v212_v12 }
  0x8d   : > { %v214_v14 = vsel %vm200_vm0, %v213_v13, 0.0 }
  0x8e   : > { %215 = vadd.xlane.f32.xlu0 %v214_v14 }
 0x101   : > { %v216_v17 = vpop.xlane.xlu0 %215 }
 0x102   : > { %v217_v18 = vmul.f32 %v216_v17, %v210_v9 }
 0x104   : > { %v218_v19 = vadd.f32 1e-05, %v217_v18 }
 0x106   : > { %390 = vrsqrt.f32 %v218_v19  ;;  %vm225_vm3 = vweird.f32 %v218_v19 }
 0x10c   : > { %v391_v20 = vpop.eup %390 }
 0x10d   : > { %v220_v21 = vmul.f32 %v391_v20, %v218_v19  ;;  %vm226_vm2 = vweird.f32 %v391_v20 }
 0x10e   : > { %vm227_vm4 = vmor %vm225_vm3, %vm226_vm2 }
 0x10f   : > { %v221_v22 = vmul.f32 %v391_v20, %v220_v21 }
 0x111   : > { %v222_v23 = vmul.f32 0.5, %v221_v22 }
 0x113   : > { %v223_v24 = vsub.f32 1.5, %v222_v23 }
 0x115   : > { %v224_v25 = vmul.f32 %v391_v20, %v223_v24 }
 0x117   : > { %v228_v26 = vsel %vm227_vm4, %v391_v20, %v224_v25 }
 0x118   : > { %v229_v27 = vmul.f32 %v228_v26, %v212_v12 }
 0x11a   : > { %v230_v28 = vpack.c.bf16 %v229_v27, %v229_v27 }
 0x11c   : > { %358 = vmatmul.msk.bf16.vlgmr.msra.gmra.mxu0 %vm200_vm0, %v230_v28 }
 0x199   : > { %v262_v32 = vpop.f32.mrf.mxu0 }
 0x19a   : > { %v263_v33 = vadd.f32 %v262_v32, %v237_v31 }
 0x19c   : > { %v266_v34 = vpack.c.bf16 %v263_v33, %v263_v33 }
 0x19e   : > { %268 = vst.msk [vmem:[%s196_s28] sm:$0xf] %vm267_vm5, %v266_v34 }
 0x1a1   : > { %v264_v35 = vpop.f32.mrf.mxu0 }
 0x1a2 PF: > { %s13_s14 = sadd.s32 1, %s414_s14   ;;  %s493_s12 = smov %s410_s13 }
 0x1a3   : > { %p10_p5 = scmp.ge.s32.totalorder %s13_s14, 4   ;;  %s494_s13 = smov %s496_s15 }
 0x1a5   :  { %12 = sbr.rel (!%p10_p5) target bundleno = 2 (0x2), region = 62 }

// kernel: ditto_forward.29
= control target key start
LH: loop header
LB: loop body
LE: loop exit
PB: predicated region body
PF: predicated region fallthrough
CT: control target
= control target key end

     0   :  { %vm19_vm0 = vcmask 261120   ;;  %v105_v1 = vmov 0.0   ;;  %vm81_vm1 = vcmask 257024   ;;  %s149_s1 = inlined_call_operand.vmem [shape: bf16[32,32], index: 1, kind: input, shape index: {}]   ;;  %s150_s0 = inlined_call_operand.vmem [shape: bf16[16,32], index: 0, kind: input, shape index: {}]   ;;  %s151_s2 = inlined_call_operand.vmem [shape: bf16[1,32], index: 2, kind: input, shape index: {}]   ;;  %s152_s3 = inlined_call_operand.vmem [shape: bf16[16,32], index: 3, kind: output, shape index: {}]  }
   0x1   :  { %v103_v0 = vld [vmem:[%s149_s1 + $0x8] sm:$0xff]  ;;  %20 = vst.msk [vmem:[#allocation2] sm:$0xff] %vm19_vm0, %v105_v1  ;;  %v102_v2 = vld [vmem:[%s149_s1] sm:$0xff] }
   0x2   :  { %21 = vst.msk [vmem:[#allocation2 + $0x8] sm:$0xff] %vm19_vm0, %v105_v1  ;;  %57 = vmatpush.bf16.msra.mxu0 %v103_v0  ;;  %v101_v3 = vld [vmem:[%s150_s0] sm:$0xff] }
   0x3   :  { %v74_v6 = vld [vmem:[%s151_s2] sm:$0x1] }
   0x4   :  { %v75_v8 = vunpack.c.l.bf16 %v74_v6 }
   0x6   :  { %58 = vmatpush.bf16.msra.mxu0 %v102_v2  ;;  %v76_v10 = vperm.slane %v75_v8, 0 }
   0x8   :  { %v22_v4 = vld [vmem:[#allocation2] sm:$0xff] }
   0x9   :  { %100 = vmatmul.msk.bf16.vlgmr.msra.gmra.mxu0 %vm19_vm0, %v101_v3  ;;  %v23_v9 = vld [vmem:[#allocation2 + $0x8] sm:$0xff] }
  0x86   :  { %v60_v5 = vpop.f32.mrf.mxu0 }
  0x87   :  { %v65_v7 = vadd.f32 %v60_v5, %v22_v4 }
  0x89   :  { %67 = vst.msk [vmem:[#allocation2] sm:$0xff] %vm19_vm0, %v65_v7 }
  0x8e   :  { %v62_v11 = vpop.f32.mrf.mxu0 }
  0x8f   :  { %v66_v12 = vadd.f32 %v62_v11, %v23_v9 }
  0x90   :  { %v72_v13 = vld [vmem:[#allocation2] sm:$0xff] }
  0x91   :  { %v77_v14 = vadd.f32 %v76_v10, %v72_v13  ;;  %68 = vst.msk [vmem:[#allocation2 + $0x8] sm:$0xff] %vm19_vm0, %v66_v12 }
  0x93   :  { %v79_v15 = vpack.c.bf16 %v77_v14, %v77_v14 }
  0x95   :  { %82 = vst.msk [vmem:[%s152_s3] sm:$0xf] %vm81_vm1, %v79_v15 }
  0x98   :  { %v73_v16 = vld [vmem:[#allocation2 + $0x8] sm:$0xff] }
  0x99   :  { %v78_v17 = vadd.f32 %v76_v10, %v73_v16 }
  0x9b   :  { %v80_v18 = vpack.c.bf16 %v78_v17, %v78_v17 }
  0x9d   :  { %83 = vst.msk [vmem:[%s152_s3 + $0x4] sm:$0xf] %vm81_vm1, %v80_v18 }

// kernel: ditto_forward.31
= control target key start
LH: loop header
LB: loop body
LE: loop exit
PB: predicated region body
PF: predicated region fallthrough
CT: control target
= control target key end

     0   :  { %s869_s12 = smov 0   ;;  %s871_s13 = smov 0   ;;  %s995_s0 = inlined_call_operand.vmem [shape: bf16[2,8,32], index: 0, kind: input, shape index: {}]   ;;  %s996_s1 = inlined_call_operand.vmem [shape: bf16[2,8,32], index: 1, kind: input, shape index: {}]   ;;  %s997_s2 = inlined_call_operand.vmem [shape: bf16[2,8,32], index: 2, kind: input, shape index: {}]   ;;  %s998_s3 = inlined_call_operand.vmem [shape: bf16[2,8,32], index: 3, kind: output, shape index: {}]  }
   0x1   :  { %s873_s14 = smov 0  }
   0x2 LB: > { %s25_s15 = sadd.s32 1, %s834_s13  ;;  %p741_p0 = scmp.ge.s32.totalorder %s838_s14, 1  ;;  %s838_s14 = sphi %s873_s14, %s13_s14   ;;  %s834_s13 = sphi %s871_s13, %s1000_s13   ;;  %s830_s12 = sphi %s869_s12, %s999_s12  }
   0x3   : > { %p27_p1 = scmp.ge.s32.totalorder %s25_s15, 2  ;;  %p176_p2 = scmp.lt.s32.totalorder %s838_s14, 3 }
   0x5   : > { %s1002_s15 = smov (%p27_p1, %s25_s15), 0  ;;  %p177_p3 = pnand %p741_p0, %p176_p2 }
   0x6   : > { %p212_p4 = scmp.lt.s32.totalorder (!%p177_p3), %s830_s12, 1  ;;  %s841_s23 = smov (!%p177_p3), 112  }
   0x7   : > { %180 = sbr.rel (%p177_p3) target bundleno = 1135 (0x46f), region = 32  ;;  %s842_s24 = smov (!%p177_p3), 104  }
   0x8   : > { %s843_s25 = smov (!%p177_p3), 120   ;;  %s846_s29 = smov (!%p177_p3), 8  }
   0x9   : > { %s847_s30 = smov (!%p177_p3), 24   ;;  %s848_s4 = smov (!%p177_p3), 16  }
   0xc   : > { %s1004_s12 = smov (!%p212_p4, %s830_s12), 1  ;;  %vm248_vm0 = vcmask 64512   ;;  %vm239_vm1 = vcmask 7168   ;;  %v840_v3 = vmov -inf   ;;  %v844_v12 = vmov 0  }
   0xd   : > { %s887_s16 = sshll.u32 %s1004_s12, 2  ;;  %240 = vst.msk [vmem:[#allocation2] sm:$0xff] %vm239_vm1, %v840_v3  ;;  %789 = vset.pattern.permute.xlu1 %v844_v12  ;;  %790 = vset.pattern.permute.xlu2 %v844_v12  ;;  %v845_v13 = vmov 0.0   ;;  %vm312_vm2 = vcmask 1043456   ;;  %vm639_vm3 = vcmask 130048   ;;  %vm641_vm4 = vcmask 195584  }
   0xe   : > { %s222_s19 = scalar_lea.vmem %s996_s1, %s887_s16  ;;  %s215_s22 = scalar_lea.vmem %s995_s0, %s887_s16  ;;  %241 = vst.msk [vmem:[#allocation2 + $0x8] sm:$0xff] %vm239_vm1, %v840_v3  ;;  %791 = vset.pattern.permute.xlu0 %v844_v12  ;;  %vm644_vm5 = vcmask 257024  }
   0xf   : > { %v254_v0 = vld [vmem:[%s222_s19] sm:$0xf]  ;;  %242 = vst.msk [vmem:[#allocation2 + $0x10] sm:$0xff] %vm239_vm1, %v840_v3  ;;  %s229_s28 = scalar_lea.vmem %s997_s2, %s887_s16  ;;  %s233_s7 = scalar_lea.vmem %s998_s3, %s887_s16 }
  0x10   : > { %v261_v1 = vsel %vm248_vm0, %v254_v0, 0  ;;  %v253_v2 = vld [vmem:[%s215_s22] sm:$0xf]  ;;  %243 = vst.msk [vmem:[#allocation2 + $0x18] sm:$0xff] %vm239_vm1, %v840_v3  ;;  %v338_v4 = vunpack.c.l.b16 %v254_v0 }
  0x11   : > { %270 = vmatpush.bf16.xpose.msra.mxu0 %v261_v1  ;;  %v333_v10 = vunpack.c.l.b16 %v253_v2  ;;  %244 = vst.msk [vmem:[#allocation3] sm:$0xff] %vm239_vm1, %v845_v13  ;;  %v255_v21 = vld [vmem:[%s229_s28] sm:$0xf] }
  0x12   : > { %v339_v6 = vpack.c.b16 %v338_v4, %v338_v4  ;;  %245 = vst.msk [vmem:[#allocation3 + $0x8] sm:$0xff] %vm239_vm1, %v845_v13  ;;  %v314_v22 = vsel %vm312_vm2, %v255_v21, 0  ;;  %v397_v47 = vunpack.c.l.b16 %v255_v21 }
  0x13   : > { %v334_v11 = vpack.c.b16 %v333_v10, %v333_v10  ;;  %246 = vst.msk [vmem:[#allocation3 + $0x10] sm:$0xff] %vm239_vm1, %v845_v13  ;;  %323 = vmatpush.bf16.msra.mxu1 %v314_v22 }
  0x14   : > { %425 = vrot.lane.b32.xlu2 %v339_v6, %s841_s23  ;;  %247 = vst.msk [vmem:[#allocation3 + $0x18] sm:$0xff] %vm239_vm1, %v845_v13  ;;  %v916_v14 = vld [vmem:[#allocation2] sm:$0xff]  ;;  %v398_v49 = vpack.c.b16 %v397_v47, %v397_v47 }
  0x15   : > { %249 = vst.msk [vmem:[#allocation4] sm:$0xff] %vm248_vm0, %v845_v13  ;;  %v363_v55 = vld [vmem:[#allocation2 + $0x8] sm:$0xff] }
  0x16   : > { %250 = vst.msk [vmem:[#allocation4 + $0x8] sm:$0xff] %vm248_vm0, %v845_v13  ;;  %v448_v58 = vld [vmem:[#allocation2 + $0x10] sm:$0xff] }
  0x17   : > { %251 = vst.msk [vmem:[#allocation4 + $0x10] sm:$0xff] %vm248_vm0, %v845_v13  ;;  %v530_v51 = vld [vmem:[#allocation2 + $0x18] sm:$0xff] }
  0x18   : > { %746 = vmatmul.msk.bf16.vlgmr.msra.gmra.mxu0 %vm248_vm0, %v253_v2  ;;  %252 = vst.msk [vmem:[#allocation4 + $0x18] sm:$0xff] %vm248_vm0, %v845_v13 }
  0x1c   : > { %507 = vrot.lane.b32.xlu2 %v339_v6, %s842_s24 }
  0x24   : > { %505 = vrot.lane.b32.xlu2 %v334_v11, %s842_s24 }
  0x6e   : > { %v426_v20 = vpop.permute.xlu2 %425 }
  0x6f   : > { %v431_v23 = vsel %vm248_vm0, %v426_v20, 0 }
  0x70   : > { %440 = vmatpush.bf16.xpose.msrb.mxu1 %v431_v23 }
  0x76   : > { %v508_v24 = vpop.permute.xlu2 %507 }
  0x77   : > { %v513_v25 = vsel %vm248_vm0, %v508_v24, 0 }
  0x78   : > { %522 = vmatpush.bf16.xpose.msrb.mxu0 %v513_v25 }
  0x7e   : > { %v506_v26 = vpop.permute.xlu2 %505 }
  0x7f   : > { %752 = vmatmul.msk.bf16.vlgmr.msrb.gmra.mxu0 %vm248_vm0, %v506_v26  ;;  %v301_v26 = vld [vmem:[#allocation4] sm:$0xff] }
  0x95   : > { %v272_v5 = vpop.f32.mrf.mxu0 }
  0x96   : > { %v276_v7 = vmul.f32 0.35355338, %v272_v5  ;;  %v278_v5 = vld [vmem:[#allocation3] sm:$0xff] }
  0x98   : > { %v279_v8 = vsel %vm248_vm0, %v276_v7, -inf }
  0x99   : > { %280 = vmax.xlane.f32.xlu0 %v279_v8 }
  0x9d   : > { %v274_v9 = vpop.f32.mrf.mxu0 }
  0xad   : > { %340 = vrot.lane.b32.xlu0 %v339_v6, %s843_s25 }
  0xfc   : > { %v524_v34 = vpop.f32.mrf.mxu0 }
  0xfd   : > { %v940_v35 = vmul.f32 0.35355338, %v524_v34 }
  0xff   : > { %v533_v36 = vsel %vm248_vm0, %v940_v35, -inf }
 0x100   : > { %534 = vmax.xlane.f32.xlu0 %v533_v36 }
 0x104   : > { %v526_v37 = vpop.f32.mrf.mxu0 }
 0x10c   : > { %v281_v15 = vpop.xlane.xlu0 %280 }
 0x10d   : > { %v919_v16 = vmax.f32 %v916_v14, %v281_v15 }
 0x10f   : > { %v283_v17 = vsub.f32 %v916_v14, %v919_v16  ;;  %331 = vst.msk [vmem:[#allocation2] sm:$0xff] %vm239_vm1, %v919_v16  ;;  %288 = vperm.xlu1 %789, %v919_v16  }
 0x111   : > { %v284_v60 = vmul.f32 1.442695, %v283_v17 }
 0x117   : > { %335 = vrot.lane.b32.xlu1 %v334_v11, %s843_s25 }
 0x11f   : > { %423 = vrot.lane.b32.xlu1 %v334_v11, %s841_s23  ;;  %v341_v18 = vpop.permute.xlu0 %340 }
 0x120   : > { %v346_v19 = vsel %vm248_vm0, %v341_v18, 0 }
 0x121   : > { %355 = vmatpush.bf16.xpose.msra.mxu2 %v346_v19 }
 0x173   : > { %v535_v52 = vpop.xlane.xlu0 %534 }
 0x174   : > { %v536_v53 = vmax.f32 %v530_v51, %v535_v52 }
 0x176   : > { %v537_v54 = vsub.f32 %v530_v51, %v536_v53  ;;  %586 = vst.msk [vmem:[#allocation2 + $0x18] sm:$0xff] %vm239_vm1, %v536_v53 }
 0x178   : > { %v538_v25 = vmul.f32 1.442695, %v537_v54 }
 0x181   : > { %v289_v27 = vpop.permute.xlu1 %288 }
 0x182   : > { %v291_v28 = vsub.f32 %v276_v7, %v289_v27 }
 0x184   : > { %v292_v29 = vmul.f32 1.442695, %v291_v28 }
 0x186   : > { %792 = vpow2.f32 %v292_v29 }
 0x187   : > { %794 = vpow2.f32 %v284_v60 }
 0x189   : > { %v336_v30 = vpop.permute.xlu1 %335 }
 0x18a   : > { %748 = vmatmul.msk.bf16.vlgmr.msra.gmra.mxu2 %vm248_vm0, %v336_v30 }
 0x18c   : > { %v793_v31 = vpop.eup %792 }
 0x18d   : > { %v308_v32 = vpack.c.bf16 %v793_v31, %v793_v31  ;;  %v295_v50 = vsel %vm248_vm0, %v793_v31, 0.0  ;;  %v795_v1 = vpop.eup %794 }
 0x18e   : > { %v294_v7 = vmul.f32 %v795_v1, %v278_v5 }
 0x18f   : > { %747 = vmatmul.msk.bf16.vlgmr.msra.gmra.mxu1 %vm248_vm0, %v308_v32 }
 0x191   : > { %v424_v33 = vpop.permute.xlu1 %423 }
 0x19f   : > { %750 = vmatmul.msk.bf16.vlgmr.msrb.gmra.mxu1 %vm248_vm0, %v424_v33 }
 0x20c   : > { %v944_v38 = vpop.f32.mrf.mxu1 }
 0x20d   : > { %v357_v39 = vpop.f32.mrf.mxu2 }
 0x20e   : > { %v361_v40 = vmul.f32 0.35355338, %v357_v39 }
 0x210   : > { %v366_v41 = vsel %vm248_vm0, %v361_v40, -inf }
 0x211   : > { %367 = vmax.xlane.f32.xlu1 %v366_v41  ;;  %v365_v41 = vld [vmem:[#allocation3 + $0x8] sm:$0xff] }
 0x214   : > { %v327_v42 = vpop.f32.mrf.mxu1 }
 0x215   : > { %v359_v43 = vpop.f32.mrf.mxu2 }
 0x21c   : > { %v442_v44 = vpop.f32.mrf.mxu1 }
 0x21d   : > { %v947_v45 = vmul.f32 0.35355338, %v442_v44 }
 0x21f   : > { %v451_v46 = vsel %vm248_vm0, %v947_v45, -inf }
 0x220   : > { %452 = vmax.xlane.f32.xlu2 %v451_v46 }
 0x224   : > { %v444_v48 = vpop.f32.mrf.mxu1 }
 0x22a   : > { %399 = vrot.lane.b32.xlu1 %v398_v49, %s843_s25 }
 0x232   : > { %481 = vrot.lane.b32.xlu1 %v398_v49, %s841_s23 }
 0x25c   : > { %296 = vadd.xlane.f32.xlu1 %v295_v50  ;;  %v388_v50 = vld [vmem:[#allocation4 + $0x8] sm:$0xff] }
 0x284   : > { %v368_v56 = vpop.xlane.xlu1 %367 }
 0x285   : > { %v369_v57 = vmax.f32 %v363_v55, %v368_v56 }
 0x287   : > { %422 = vst.msk [vmem:[#allocation2 + $0x8] sm:$0xff] %vm239_vm1, %v369_v57  ;;  %375 = vperm.xlu2 %790, %v369_v57   ;;  %v370_v63 = vsub.f32 %v363_v55, %v369_v57  ;;  %v555_v57 = vld [vmem:[#allocation4 + $0x18] sm:$0xff] }
 0x289   : > { %v371_v0 = vmul.f32 1.442695, %v370_v63 }
 0x28b   : > { %796 = vpow2.f32 %v371_v0 }
 0x28f   : > { %542 = vperm.xlu2 %790, %v536_v53  }
 0x291   : > { %v797_v2 = vpop.eup %796 }
 0x292   : > { %v381_v42 = vmul.f32 %v797_v2, %v365_v41 }
 0x293   : > { %v453_v59 = vpop.xlane.xlu2 %452 }
 0x294   : > { %v454_v61 = vmax.f32 %v448_v58, %v453_v59 }
 0x296   : > { %v455_v62 = vsub.f32 %v448_v58, %v454_v61  ;;  %504 = vst.msk [vmem:[#allocation2 + $0x10] sm:$0xff] %vm239_vm1, %v454_v61  ;;  %460 = vperm.xlu0 %791, %v454_v61  }
 0x297   : > { %563 = vrot.lane.b32.xlu2 %v398_v49, %s842_s24 }
 0x298   : > { %v456_v31 = vmul.f32 1.442695, %v455_v62 }
 0x29c   : > { %v400_v3 = vpop.permute.xlu1 %399 }
 0x29d   : > { %v405_v6 = vsel %vm312_vm2, %v400_v3, 0 }
 0x29e   : > { %414 = vmatpush.bf16.msra.mxu3 %v405_v6  ;;  %v473_v6 = vld [vmem:[#allocation4 + $0x10] sm:$0xff] }
 0x29f   : > { %304 = vperm.xlu2 %790, %v795_v1   ;;  %v450_v1 = vld [vmem:[#allocation3 + $0x10] sm:$0xff] }
 0x2a4   : > { %v482_v4 = vpop.permute.xlu1 %481 }
 0x2a5   : > { %v487_v19 = vsel %vm312_vm2, %v482_v4, 0 }
 0x2a6   : > { %496 = vmatpush.bf16.msrb.mxu3 %v487_v19 }
 0x2a7   : > { %391 = vperm.xlu2 %790, %v797_v2  }
 0x2cf   : > { %v297_v8 = vpop.xlane.xlu1 %296 }
 0x2d0   : > { %v298_v9 = vadd.f32 %v297_v8, %v294_v7 }
 0x2d2   : > { %300 = vst.msk [vmem:[#allocation3] sm:$0xff] %vm239_vm1, %v298_v9 }
 0x2e1   : > { %v376_v10 = vpop.permute.xlu2 %375 }
 0x2e2   : > { %v378_v11 = vsub.f32 %v361_v40, %v376_v10 }
 0x2e4   : > { %v379_v12 = vmul.f32 1.442695, %v378_v11 }
 0x2e6   : > { %798 = vpow2.f32 %v379_v12 }
 0x2e9   : > { %v543_v13 = vpop.permute.xlu2 %542 }
 0x2ea   : > { %v545_v14 = vsub.f32 %v940_v35, %v543_v13 }
 0x2ec   : > { %v799_v15 = vpop.eup %798  ;;  %v546_v16 = vmul.f32 1.442695, %v545_v14 }
 0x2ed   : > { %v382_v17 = vsel %vm248_vm0, %v799_v15, 0.0  ;;  %v395_v18 = vpack.c.bf16 %v799_v15, %v799_v15 }
 0x2ee   : > { %800 = vpow2.f32 %v546_v16  ;;  %383 = vadd.xlane.f32.xlu0 %v382_v17 }
 0x2ef   : > { %749 = vmatmul.msk.bf16.vlgmr.msra.gmra.mxu3 %vm248_vm0, %v395_v18  ;;  %802 = vpow2.f32 %v538_v25 }
 0x2f0   : > { %804 = vpow2.f32 %v456_v31 }
 0x2f1   : > { %v564_v20 = vpop.permute.xlu2 %563 }
 0x2f2   : > { %v569_v21 = vsel %vm312_vm2, %v564_v20, 0 }
 0x2f3   : > { %578 = vmatpush.bf16.msrb.mxu2 %v569_v21 }
 0x2f4   : > { %v801_v22 = vpop.eup %800 }
 0x2f5   : > { %v549_v23 = vsel %vm248_vm0, %v801_v22, 0.0  ;;  %v562_v24 = vpack.c.bf16 %v801_v22, %v801_v22  ;;  %v803_v30 = vpop.eup %802 }
 0x2f6   : > { %550 = vadd.xlane.f32.xlu1 %v549_v23  ;;  %v805_v35 = vpop.eup %804 }
 0x2f7   : > { %753 = vmatmul.msk.bf16.vlgmr.msrb.gmra.mxu2 %vm248_vm0, %v562_v24  ;;  %v466_v2 = vmul.f32 %v805_v35, %v450_v1 }
 0x2f9   : > { %v305_v27 = vpop.permute.xlu2 %304 }
 0x2fa   : > { %v307_v28 = vmul.f32 %v305_v27, %v301_v26 }
 0x2fc   : > { %v329_v29 = vadd.f32 %v944_v38, %v307_v28  ;;  %v590_v38 = vld [vmem:[#allocation3] sm:$0xff] }
 0x2fe   : > { %330 = vst.msk [vmem:[#allocation4] sm:$0xff] %vm248_vm0, %v329_v29 }
 0x301   : > { %v392_v51 = vpop.permute.xlu2 %391 }
 0x302   : > { %558 = vperm.xlu0 %791, %v803_v30   ;;  %v394_v52 = vmul.f32 %v392_v51, %v388_v50 }
 0x305   : > { %v592_v23 = vld [vmem:[#allocation4] sm:$0xff] }
 0x308   : > { %v461_v32 = vpop.permute.xlu0 %460 }
 0x309   : > { %v463_v33 = vsub.f32 %v947_v45, %v461_v32  ;;  %v532_v45 = vld [vmem:[#allocation3 + $0x18] sm:$0xff] }
 0x30a   : > { %v548_v46 = vmul.f32 %v803_v30, %v532_v45 }
 0x30b   : > { %v464_v34 = vmul.f32 1.442695, %v463_v33 }
 0x30d   : > { %806 = vpow2.f32 %v464_v34 }
 0x30e   : > { %808 = vrcp.f32 %v590_v38 }
 0x30f   : > { %476 = vperm.xlu1 %789, %v805_v35  }
 0x313   : > { %v807_v36 = vpop.eup %806 }
 0x314   : > { %v467_v37 = vsel %vm248_vm0, %v807_v36, 0.0  ;;  %v480_v39 = vpack.c.bf16 %v807_v36, %v807_v36  ;;  %v809_v40 = vpop.eup %808 }
 0x315   : > { %468 = vadd.xlane.f32.xlu2 %v467_v37 }
 0x316   : > { %751 = vmatmul.msk.bf16.vlgmr.msrb.gmra.mxu3 %vm248_vm0, %v480_v39 }
 0x32d   : > { %595 = vperm.xlu2 %790, %v809_v40  }
 0x361   : > { %v384_v43 = vpop.xlane.xlu0 %383 }
 0x362   : > { %v385_v44 = vadd.f32 %v384_v43, %v381_v42 }
 0x364   : > { %386 = vst.msk [vmem:[#allocation3 + $0x8] sm:$0xff] %vm239_vm1, %v385_v44 }
 0x369   : > { %v551_v47 = vpop.xlane.xlu1 %550 }
 0x36a   : > { %v552_v48 = vadd.f32 %v551_v47, %v548_v46 }
 0x36b   : > { %v599_v49 = vld [vmem:[#allocation3 + $0x8] sm:$0xff] }
 0x36c   : > { %553 = vst.msk [vmem:[#allocation3 + $0x18] sm:$0xff] %vm239_vm1, %v552_v48  ;;  %810 = vrcp.f32 %v599_v49 }
 0x372   : > { %v811_v53 = vpop.eup %810  ;;  %v416_v54 = vpop.f32.mrf.mxu3 }
 0x373   : > { %v420_v55 = vadd.f32 %v416_v54, %v394_v52  ;;  %604 = vperm.xlu0 %791, %v811_v53   ;;  %v617_v56 = vld [vmem:[#allocation3 + $0x18] sm:$0xff] }
 0x374   : > { %812 = vrcp.f32 %v617_v56  ;;  %v559_v58 = vpop.permute.xlu0 %558 }
 0x375   : > { %421 = vst.msk [vmem:[#allocation4 + $0x8] sm:$0xff] %vm248_vm0, %v420_v55  ;;  %v561_v59 = vmul.f32 %v559_v58, %v555_v57 }
 0x37a   : > { %v813_v60 = vpop.eup %812  ;;  %v418_v61 = vpop.f32.mrf.mxu3 }
 0x37b   : > { %v580_v62 = vpop.f32.mrf.mxu2  ;;  %622 = vperm.xlu0 %791, %v813_v60  }
 0x37c   : > { %v584_v63 = vadd.f32 %v580_v62, %v561_v59  ;;  %v601_v13 = vld [vmem:[#allocation4 + $0x8] sm:$0xff] }
 0x37e   : > { %585 = vst.msk [vmem:[#allocation4 + $0x18] sm:$0xff] %vm248_vm0, %v584_v63 }
 0x381   : > { %v477_v7 = vpop.permute.xlu1 %476 }
 0x382   : > { %v479_v8 = vmul.f32 %v477_v7, %v473_v6 }
 0x383   : > { %v582_v0 = vpop.f32.mrf.mxu2 }
 0x385   : > { %v619_v16 = vld [vmem:[#allocation4 + $0x18] sm:$0xff] }
 0x388   : > { %v469_v3 = vpop.xlane.xlu2 %468 }
 0x389   : > { %v470_v4 = vadd.f32 %v469_v3, %v466_v2 }
 0x38b   : > { %471 = vst.msk [vmem:[#allocation3 + $0x10] sm:$0xff] %vm239_vm1, %v470_v4 }
 0x390   : > { %v596_v22 = vpop.permute.xlu2 %595 }
 0x391   : > { %v598_v25 = vmul.f32 %v596_v22, %v592_v23 }
 0x392   : > { %v608_v5 = vld [vmem:[#allocation3 + $0x10] sm:$0xff] }
 0x393   : > { %814 = vrcp.f32 %v608_v5 }
 0x399   : > { %v815_v9 = vpop.eup %814  ;;  %v498_v10 = vpop.f32.mrf.mxu3 }
 0x39a   : > { %v502_v11 = vadd.f32 %v498_v10, %v479_v8  ;;  %613 = vperm.xlu1 %789, %v815_v9  }
 0x39c   : > { %503 = vst.msk [vmem:[#allocation4 + $0x10] sm:$0xff] %vm248_vm0, %v502_v11 }
 0x3a1   : > { %v500_v12 = vpop.f32.mrf.mxu3 }
 0x3a3   : > { %v610_v19 = vld [vmem:[#allocation4 + $0x10] sm:$0xff] }
 0x3e5   : > { %v605_v14 = vpop.permute.xlu0 %604 }
 0x3e6   : > { %v607_v15 = vmul.f32 %v605_v14, %v601_v13 }
 0x3e8   : > { %627 = vrot.lane.b32.xlu1 %v607_v15, %s846_s29 }
 0x3ed   : > { %v623_v17 = vpop.permute.xlu0 %622 }
 0x3ee   : > { %v625_v18 = vmul.f32 %v623_v17, %v619_v16 }
 0x3f0   : > { %635 = vrot.lane.b32.xlu0 %v625_v18, %s847_s30 }
 0x40c   : > { %v614_v20 = vpop.permute.xlu1 %613 }
 0x40d   : > { %v616_v21 = vmul.f32 %v614_v20, %v610_v19 }
 0x40f   : > { %631 = vrot.lane.b32.xlu2 %v616_v21, %s848_s4 }
 0x45a   : > { %v628_v24 = vpop.permute.xlu1 %627 }
 0x45b   : > { %v638_v26 = vsel %vm248_vm0, %v598_v25, %v628_v24 }
 0x462   : > { %v636_v28 = vpop.permute.xlu0 %635 }
 0x469   : > { %v632_v27 = vpop.permute.xlu2 %631 }
 0x46a   : > { %v640_v29 = vsel %vm639_vm3, %v638_v26, %v632_v27 }
 0x46b   : > { %v642_v30 = vsel %vm641_vm4, %v640_v29, %v636_v28 }
 0x46c   : > { %v643_v31 = vpack.c.bf16 %v642_v30, %v642_v30 }
 0x46e   : > { %645 = vst.msk [vmem:[%s233_s7] sm:$0xf] %vm644_vm5, %v643_v31 }
 0x46f PF: > { %s13_s14 = sadd.s32 1, %s838_s14   ;;  %s999_s12 = smov %s834_s13 }
 0x470   : > { %p10_p5 = scmp.ge.s32.totalorder %s13_s14, 4   ;;  %s1000_s13 = smov %s1002_s15 }
 0x472   :  { %12 = sbr.rel (!%p10_p5) target bundleno = 2 (0x2), region = 85 }

// kernel: ditto_forward.32
= control target key start
LH: loop header
LB: loop body
LE: loop exit
PB: predicated region body
PF: predicated region fallthrough
CT: control target
= control target key end

     0   :  { %s479_s15 = smov 0   ;;  %s481_s16 = smov 0   ;;  %s524_s0 = inlined_call_operand.vmem [shape: bf16[2,8,32], index: 0, kind: input, shape index: {}]   ;;  %s525_s1 = inlined_call_operand.vmem [shape: bf16[32,32], index: 1, kind: input, shape index: {}]   ;;  %s526_s2 = inlined_call_operand.vmem [shape: bf16[1,32], index: 2, kind: input, shape index: {}]   ;;  %s527_s3 = inlined_call_operand.vmem [shape: bf16[2,8,32], index: 3, kind: input, shape index: {}]   ;;  %s528_s4 = inlined_call_operand.vmem [shape: bf16[2,8,32], index: 4, kind: output, shape index: {}]  }
   0x1   :  { %s483_s17 = smov 0  }
   0x2 LB: > { %s26_s18 = sadd.s32 1, %s448_s16  ;;  %p389_p0 = scmp.ge.s32.totalorder %s452_s17, 1  ;;  %s452_s17 = sphi %s483_s17, %s14_s17   ;;  %s448_s16 = sphi %s481_s16, %s530_s16   ;;  %s444_s15 = sphi %s479_s15, %s529_s15  }
   0x3   : > { %p28_p1 = scmp.ge.s32.totalorder %s26_s18, 2  ;;  %p194_p2 = scmp.lt.s32.totalorder %s452_s17, 3 }
   0x5   : > { %s532_s18 = smov (%p28_p1, %s26_s18), 0  ;;  %p195_p3 = pnand %p389_p0, %p194_p2 }
   0x6   : > { %p231_p4 = scmp.lt.s32.totalorder (!%p195_p3), %s444_s15, 1 }
   0x7   : > { %198 = sbr.rel (%p195_p3) target bundleno = 154 (0x9a), region = 36 }
   0xc   : > { %v405_v0 = vld [vmem:[%s525_s1 + $0x8] sm:$0xff]  ;;  %v404_v1 = vld [vmem:[%s525_s1] sm:$0xff]  ;;  %s534_s15 = smov (!%p231_p4, %s444_s15), 1  ;;  %vm273_vm0 = vcmask 261120   ;;  %vm294_vm1 = vcmask 257024  }
   0xd   : > { %283 = vmatpush.bf16.msra.mxu0 %v405_v0  ;;  %s390_s23 = sshll.u32 %s534_s15, 2  ;;  %v258_v3 = vld [vmem:[%s526_s2] sm:$0x1] }
   0xe   : > { %s237_s26 = scalar_lea.vmem %s524_s0, %s390_s23  ;;  %s244_s5 = scalar_lea.vmem %s527_s3, %s390_s23  ;;  %v259_v4 = vunpack.c.l.bf16 %v258_v3 }
   0xf   : > { %v253_v2 = vld [vmem:[%s237_s26] sm:$0xf]  ;;  %s251_s8 = scalar_lea.vmem %s528_s4, %s390_s23 }
  0x10   : > { %v290_v5 = vld [vmem:[%s244_s5] sm:$0xf]  ;;  %v260_v6 = vperm.slane %v259_v4, 0 }
  0x11   : > { %284 = vmatpush.bf16.msra.mxu0 %v404_v1  ;;  %v291_v7 = vunpack.c.l.bf16 %v290_v5 }
  0x14   : > { %401 = vmatmul.msk.bf16.vlgmr.msra.gmra.mxu0 %vm273_vm0, %v253_v2 }
  0x91   : > { %v286_v8 = vpop.f32.mrf.mxu0 }
  0x92   : > { %v287_v9 = vadd.f32 %v286_v8, %v260_v6 }
  0x94   : > { %v292_v10 = vadd.f32 %v291_v7, %v287_v9 }
  0x96   : > { %v293_v11 = vpack.c.bf16 %v292_v10, %v292_v10 }
  0x98   : > { %295 = vst.msk [vmem:[%s251_s8] sm:$0xf] %vm294_vm1, %v293_v11 }
  0x99   : > { %v288_v12 = vpop.f32.mrf.mxu0 }
  0x9a PF: > { %s14_s17 = sadd.s32 1, %s452_s17   ;;  %s529_s15 = smov %s448_s16 }
  0x9b   : > { %p11_p5 = scmp.ge.s32.totalorder %s14_s17, 4   ;;  %s530_s16 = smov %s532_s18 }
  0x9d   :  { %13 = sbr.rel (!%p11_p5) target bundleno = 2 (0x2), region = 69 }

// kernel: ditto_forward.33
= control target key start
LH: loop header
LB: loop body
LE: loop exit
PB: predicated region body
PF: predicated region fallthrough
CT: control target
= control target key end

     0   :  { %s569_s18 = smov 0   ;;  %s571_s19 = smov 0   ;;  %s629_s0 = inlined_call_operand.vmem [shape: bf16[2,8,32], index: 0, kind: input, shape index: {}]   ;;  %s630_s1 = inlined_call_operand.vmem [shape: f32[2,1,32], index: 1, kind: input, shape index: {}]   ;;  %s631_s2 = inlined_call_operand.vmem [shape: f32[2,1,32], index: 2, kind: input, shape index: {}]   ;;  %s632_s3 = inlined_call_operand.vmem [shape: bf16[32,128], index: 3, kind: input, shape index: {}]   ;;  %s633_s4 = inlined_call_operand.vmem [shape: bf16[1,128], index: 4, kind: input, shape index: {}]   ;;  %s634_s5 = inlined_call_operand.vmem [shape: bf16[2,8,128], index: 5, kind: output, shape index: {}]  }
   0x1   :  { %s573_s20 = smov 0  }
   0x2 LB: > { %s27_s21 = sadd.s32 1, %s532_s19  ;;  %p466_p0 = scmp.ge.s32.totalorder %s536_s20, 1  ;;  %s536_s20 = sphi %s573_s20, %s15_s20   ;;  %s532_s19 = sphi %s571_s19, %s636_s19   ;;  %s528_s18 = sphi %s569_s18, %s635_s18  }
   0x3   : > { %p29_p1 = scmp.ge.s32.totalorder %s27_s21, 2  ;;  %p221_p2 = scmp.lt.s32.totalorder %s536_s20, 3 }
   0x5   : > { %s638_s21 = smov (%p29_p1, %s27_s21), 0  ;;  %p222_p3 = pnand %p466_p0, %p221_p2 }
   0x6   : > { %p259_p4 = scmp.lt.s32.totalorder (!%p222_p3), %s528_s18, 1 }
   0x7   : > { %225 = sbr.rel (%p222_p3) target bundleno = 442 (0x1ba), region = 40 }
   0xc   : > { %s640_s18 = smov (!%p259_p4, %s528_s18), 1  ;;  %vm282_vm0 = vcmask 261120   ;;  %v538_v3 = vmov 32.0   ;;  %v481_v15 = vld [vmem:[%s632_s3 + $0x8] sm:$0xff]  ;;  %v480_v16 = vld [vmem:[%s632_s3] sm:$0xff] }
   0xd   : > { %s467_s22 = sshll.u32 %s640_s18, 2  ;;  %508 = vrcp.f32 %v538_v3  ;;  %s271_s28 = scalar_lea.vmem %s631_s2, %s640_s18  ;;  %352 = vmatpush.bf16.msra.mxu0 %v481_v15  ;;  %v328_v35 = vld [vmem:[%s633_s4] sm:$0x1] }
   0xe   : > { %s265_s25 = scalar_lea.vmem %s629_s0, %s467_s22  ;;  %s268_s10 = scalar_lea.vmem %s630_s1, %s640_s18  ;;  %v507_v31 = vld [vmem:[%s271_s28] ss:$0 sm:$0xff]  ;;  %v329_v36 = vunpack.c.l.bf16 %v328_v35 }
   0xf   : > { %v280_v0 = vld [vmem:[%s265_s25] sm:$0xf]  ;;  %s278_s15 = scalar_lea.vmem %s634_s5, %s467_s22 }
  0x10   : > { %v281_v1 = vunpack.c.l.bf16 %v280_v0  ;;  %v312_v23 = vld [vmem:[%s268_s10] sm:$0x1]  ;;  %v330_v37 = vperm.slane %v329_v36, 0 }
  0x11   : > { %353 = vmatpush.bf16.msra.mxu0 %v480_v16  ;;  %v313_v25 = vadd.f32 1.0, %v312_v23 }
  0x12   : > { %v283_v2 = vsel %vm282_vm0, %v281_v1, 0.0 }
  0x13   : > { %284 = vadd.xlane.f32.xlu0 %v283_v2  ;;  %v509_v4 = vpop.eup %508  ;;  %v315_v28 = vperm.slane %v313_v25, 0 }
  0x14   : > { %v287_v5 = vmul.f32 32.0, %v509_v4  ;;  %vm291_vm1 = vweird.f32 %v509_v4 }
  0x16   : > { %v288_v6 = vsub.f32 1.0, %v287_v5 }
  0x18   : > { %v289_v7 = vmul.f32 %v509_v4, %v288_v6 }
  0x1a   : > { %v290_v8 = vadd.f32 %v509_v4, %v289_v7 }
  0x1c   : > { %v292_v9 = vsel %vm291_vm1, %v509_v4, %v290_v8 }
  0x86   : > { %v285_v10 = vpop.xlane.xlu0 %284 }
  0x87   : > { %v293_v11 = vmul.f32 %v292_v9, %v285_v10 }
  0x89   : > { %v294_v12 = vsub.f32 %v281_v1, %v293_v11 }
  0x8b   : > { %v295_v13 = vmul.f32 %v294_v12, %v294_v12 }
  0x8d   : > { %v296_v14 = vsel %vm282_vm0, %v295_v13, 0.0 }
  0x8e   : > { %297 = vadd.xlane.f32.xlu0 %v296_v14 }
 0x101   : > { %v298_v17 = vpop.xlane.xlu0 %297 }
 0x102   : > { %v299_v18 = vmul.f32 %v298_v17, %v292_v9 }
 0x104   : > { %v300_v19 = vadd.f32 1e-05, %v299_v18 }
 0x106   : > { %510 = vrsqrt.f32 %v300_v19  ;;  %vm307_vm3 = vweird.f32 %v300_v19 }
 0x10c   : > { %v511_v20 = vpop.eup %510 }
 0x10d   : > { %v302_v21 = vmul.f32 %v511_v20, %v300_v19  ;;  %vm308_vm2 = vweird.f32 %v511_v20 }
 0x10e   : > { %vm309_vm4 = vmor %vm307_vm3, %vm308_vm2 }
 0x10f   : > { %v303_v22 = vmul.f32 %v511_v20, %v302_v21 }
 0x111   : > { %v304_v24 = vmul.f32 0.5, %v303_v22 }
 0x113   : > { %v305_v26 = vsub.f32 1.5, %v304_v24 }
 0x115   : > { %v306_v27 = vmul.f32 %v511_v20, %v305_v26 }
 0x117   : > { %v310_v29 = vsel %vm309_vm4, %v511_v20, %v306_v27 }
 0x118   : > { %v311_v30 = vmul.f32 %v310_v29, %v294_v12 }
 0x11a   : > { %v317_v32 = vmul.f32 %v315_v28, %v311_v30 }
 0x11c   : > { %v322_v33 = vadd.f32 %v507_v31, %v317_v32 }
 0x11e   : > { %v323_v34 = vpack.c.bf16 %v322_v33, %v322_v33 }
 0x120   : > { %477 = vmatmul.msk.bf16.vlgmr.msra.gmra.mxu0 %vm282_vm0, %v323_v34 }
 0x19d   : > { %v355_v38 = vpop.f32.mrf.mxu0 }
 0x19e   : > { %v356_v39 = vadd.f32 %v355_v38, %v330_v37 }
 0x1a0   : > { %v359_v40 = vmul.f32 %v356_v39, %v356_v39 }
 0x1a2   : > { %v360_v41 = vmul.f32 %v359_v40, %v356_v39 }
 0x1a4   : > { %v361_v42 = vmul.f32 0.044715, %v360_v41 }
 0x1a5   : > { %v357_v43 = vpop.f32.mrf.mxu0 }
 0x1a6   : > { %v362_v44 = vadd.f32 %v361_v42, %v356_v39 }
 0x1a8   : > { %v363_v45 = vmul.f32 0.7978846, %v362_v44 }
 0x1aa   : > { %512 = vtanh.f32 %v363_v45 }
 0x1b0   : > { %v513_v46 = vpop.eup %512 }
 0x1b1   : > { %v365_v47 = vadd.f32 1.0, %v513_v46 }
 0x1b3   : > { %v366_v48 = vmul.f32 0.5, %v365_v47 }
 0x1b5   : > { %v367_v49 = vmul.f32 %v366_v48, %v356_v39 }
 0x1b7   : > { %v368_v50 = vpack.c.bf16 %v367_v49, %v367_v49 }
 0x1b9   : > { %369 = vst [vmem:[%s278_s15] sm:$0xf] %v368_v50 }
 0x1ba PF: > { %s15_s20 = sadd.s32 1, %s536_s20   ;;  %s635_s18 = smov %s532_s19 }
 0x1bb   : > { %p12_p5 = scmp.ge.s32.totalorder %s15_s20, 4   ;;  %s636_s19 = smov %s638_s21 }
 0x1bd   :  { %14 = sbr.rel (!%p12_p5) target bundleno = 2 (0x2), region = 76 }

// kernel: ditto_forward.34
= control target key start
LH: loop header
LB: loop body
LE: loop exit
PB: predicated region body
PF: predicated region fallthrough
CT: control target
= control target key end

     0   :  { %s612_s18 = smov 0   ;;  %s614_s19 = smov 0   ;;  %s678_s0 = inlined_call_operand.vmem [shape: bf16[2,8,128], index: 0, kind: input, shape index: {}]   ;;  %s679_s1 = inlined_call_operand.vmem [shape: bf16[128,32], index: 1, kind: input, shape index: {}]   ;;  %s680_s2 = inlined_call_operand.vmem [shape: bf16[1,32], index: 2, kind: input, shape index: {}]   ;;  %s681_s3 = inlined_call_operand.vmem [shape: f32[2,1,32], index: 3, kind: input, shape index: {}]   ;;  %s682_s4 = inlined_call_operand.vmem [shape: bf16[2,8,32], index: 4, kind: input, shape index: {}]   ;;  %s683_s5 = inlined_call_operand.vmem [shape: bf16[2,8,32], index: 5, kind: output, shape index: {}]  }
   0x1   :  { %s616_s20 = smov 0  }
   0x2 LB: > { %s27_s21 = sadd.s32 1, %s576_s19  ;;  %p487_p0 = scmp.ge.s32.totalorder %s580_s20, 1  ;;  %s580_s20 = sphi %s616_s20, %s15_s20   ;;  %s576_s19 = sphi %s614_s19, %s685_s19   ;;  %s572_s18 = sphi %s612_s18, %s684_s18  }
   0x3   : > { %p29_p1 = scmp.ge.s32.totalorder %s27_s21, 2  ;;  %p227_p2 = scmp.lt.s32.totalorder %s580_s20, 3 }
   0x5   : > { %s687_s21 = smov (%p29_p1, %s27_s21), 0  ;;  %p228_p3 = pnand %p487_p0, %p227_p2 }
   0x6   : > { %p269_p4 = scmp.lt.s32.totalorder (!%p228_p3), %s572_s18, 1 }
   0x7   : > { %231 = sbr.rel (%p228_p3) target bundleno = 179 (0xb3), region = 40 }
   0xc   : > { %v532_v0 = vld [vmem:[%s679_s1 + $0x38] sm:$0xff]  ;;  %v531_v1 = vld [vmem:[%s679_s1 + $0x30] sm:$0xff]  ;;  %s689_s18 = smov (!%p269_p4, %s572_s18), 1  ;;  %v530_v2 = vld [vmem:[%s679_s1 + $0x28] sm:$0xff]  ;;  %vm383_vm0 = vcmask 257024  }
   0xd   : > { %361 = vmatpush.bf16.msra.mxu0 %v532_v0  ;;  %s278_s28 = scalar_lea.vmem %s681_s3, %s689_s18  ;;  %v529_v3 = vld [vmem:[%s679_s1 + $0x20] sm:$0xff]  ;;  %v528_v4 = vld [vmem:[%s679_s1 + $0x18] sm:$0xff]  ;;  %v527_v5 = vld [vmem:[%s679_s1 + $0x10] sm:$0xff]  ;;  %s488_s14 = sshll.u32 %s689_s18, 2 }
   0xe   : > { %v526_v6 = vld [vmem:[%s679_s1 + $0x8] sm:$0xff]  ;;  %v525_v7 = vld [vmem:[%s679_s1] sm:$0xff]  ;;  %s275_s23 = scalar_lea.vmem %s678_s0, %s488_s14  ;;  %s285_s18 = scalar_lea.vmem %s682_s4, %s488_s14 }
   0xf   : > { %v293_v8 = vld [vmem:[%s275_s23] sm:$0xf]  ;;  %s292_s6 = scalar_lea.vmem %s683_s5, %s488_s14 }
  0x10   : > { %v310_v9 = vld [vmem:[%s680_s2] sm:$0x1] }
  0x11   : > { %362 = vmatpush.bf16.msra.mxu0 %v531_v1  ;;  %v311_v10 = vunpack.c.l.bf16 %v310_v9  ;;  %v374_v12 = vld [vmem:[%s285_s18] sm:$0xf] }
  0x12   : > { %v557_v13 = vld [vmem:[%s278_s28] ss:$0 sm:$0xff]  ;;  %v375_v15 = vunpack.c.l.bf16 %v374_v12 }
  0x13   : > { %v312_v11 = vperm.slane %v311_v10, 0 }
  0x15   : > { %363 = vmatpush.bf16.msra.mxu0 %v530_v2 }
  0x19   : > { %364 = vmatpush.bf16.msra.mxu0 %v529_v3 }
  0x1d   : > { %365 = vmatpush.bf16.msra.mxu0 %v528_v4 }
  0x21   : > { %366 = vmatpush.bf16.msra.mxu0 %v527_v5 }
  0x25   : > { %367 = vmatpush.bf16.msra.mxu0 %v526_v6 }
  0x29   : > { %368 = vmatpush.bf16.msra.mxu0 %v525_v7 }
  0x2c   : > { %369 = vmatmul.bf16.vlgmr.msra.gmra.mxu0 %v293_v8 }
  0xa9   : > { %v370_v14 = vpop.f32.mrf.mxu0 }
  0xaa   : > { %v371_v16 = vadd.f32 %v370_v14, %v312_v11 }
  0xac   : > { %v380_v17 = vmul.f32 %v557_v13, %v371_v16 }
  0xae   : > { %v381_v18 = vadd.f32 %v380_v17, %v375_v15 }
  0xb0   : > { %v382_v19 = vpack.c.bf16 %v381_v18, %v381_v18 }
  0xb1   : > { %v372_v20 = vpop.f32.mrf.mxu0 }
  0xb2   : > { %384 = vst.msk [vmem:[%s292_s6] sm:$0xf] %vm383_vm0, %v382_v19 }
  0xb3 PF: > { %s15_s20 = sadd.s32 1, %s580_s20   ;;  %s684_s18 = smov %s576_s19 }
  0xb4   : > { %p12_p5 = scmp.ge.s32.totalorder %s15_s20, 4   ;;  %s685_s19 = smov %s687_s21 }
  0xb6   :  { %14 = sbr.rel (!%p12_p5) target bundleno = 2 (0x2), region = 76 }

// kernel: ditto_forward.45
= control target key start
LH: loop header
LB: loop body
LE: loop exit
PB: predicated region body
PF: predicated region fallthrough
CT: control target
= control target key end

     0   :  { %9 = vsyncpa [#allocation3], 0  ;;  %s685_s0 = inlined_call_operand.vmem [shape: bf16[2,8,32], index: 0, kind: input, shape index: {}]   ;;  %s686_s1 = inlined_call_operand.vmem [shape: bf16[32,32], index: 1, kind: input, shape index: {}]   ;;  %s687_s2 = inlined_call_operand.vmem [shape: bf16[1,32], index: 2, kind: input, shape index: {}]   ;;  %s688_s3 = inlined_call_operand.vmem [shape: bf16[2,8,32], index: 3, kind: input, shape index: {}]   ;;  %s689_s4 = inlined_call_operand.hbm [shape: f32[2,8,32], index: 4, kind: output, shape index: {}]  }
   0x1   :  { %11 = vsyncpa [#allocation3 + $0x1], 0  ;;  %s574_s15 = smov 0   ;;  %s576_s16 = smov 0  }
   0x2   :  { %s578_s17 = smov 0   ;;  %s580_s18 = smov 0  }
   0x3   :  { %s582_s19 = smov 0   ;;  %s584_s20 = smov 0  }
   0x4 LB: > { %s391_s21 = sadd.s32 4294967295, %s547_s20   ;;  %s392_s22 = sadd.s32 4294967294, %s547_s20   ;;  %s547_s20 = sphi %s584_s20, %s17_s20   ;;  %s543_s19 = sphi %s582_s19, %s696_s19   ;;  %s539_s18 = sphi %s580_s18, %s695_s18   ;;  %s535_s17 = sphi %s578_s17, %s694_s17   ;;  %s531_s16 = sphi %s576_s16, %s693_s16   ;;  %s527_s15 = sphi %s574_s15, %s692_s15  }
   0x5   : > { %s29_s23 = sadd.s32 1, %s543_s19  ;;  %s136_s24 = sadd.s32 1, %s535_s17 }
   0x6   : > { %p31_p0 = scmp.ge.s32.totalorder %s29_s23, 2  ;;  %p146_p1 = scmp.ne.s32.totalorder %s535_s17, %s531_s16 }
   0x7   : > { %p147_p2 = scmp.eq.s32.totalorder %s391_s21, 1  ;;  %p152_p3 = scmp.ne.s32.totalorder %s531_s16, %s527_s15 }
   0x8   : > { %s698_s23 = smov (%p31_p0, %s29_s23), 0  ;;  %p153_p5 = scmp.eq.s32.totalorder %s392_s22, 1 }
   0x9   : > { %p614_p4 = por %p147_p2, %p146_p1  ;;  %s131_s26 = ssub.s32 %s543_s19, %s698_s23 }
   0xa   : > { %p395_p6 = scmp.ge.s32.totalorder %s547_s20, 1  ;;  %p134_p7 = scmp.eq.s32.totalorder %s131_s26, 0 }
   0xb   : > { %p621_p8 = por %p153_p5, %p152_p3  ;;  %p197_p9 = scmp.lt.s32.totalorder %s547_s20, 3 }
   0xc   : > { %s627_s28 = scalar_select %p134_p7, %s535_s17, %s136_s24  }
   0xd   : > { %p198_p10 = pnand %p395_p6, %p197_p9 }
   0xe   : > { %p232_p11 = scmp.lt.s32.totalorder (!%p198_p10), %s539_s18, 1  ;;  %s229_s14 = sand.u32 (!%p198_p10), 1, %s531_s16  }
   0xf   : > { %201 = sbr.rel (%p198_p10) target bundleno = 162 (0xa2), region = 36  ;;  %s396_s26 = sshll.u32 (!%p198_p10), %s229_s14, 3 }
  0x10   : > { %s409_s29 = sshll.u32 (!%p198_p10), %s539_s18, 3  ;;  %s489_s21 = scalar_lea.hbm (!%p198_p10), %s689_s4, 16 }
  0x11   : > { %s300_s6 = scalar_lea.hbm (!%p198_p10), %s689_s4, %s409_s29 }
  0x12   : > { %s304_s10 = sshll.u32 (!%p198_p10), %s300_s6, 4  ;;  %s305_s10 = int_to_ptr.hbm [resolvable:$true] %s304_s10 }
  0x14   : > { %v413_v0 = vld [vmem:[%s686_s1 + $0x8] sm:$0xff]  ;;  %v412_v1 = vld [vmem:[%s686_s1] sm:$0xff]  ;;  %s233_s7 = scalar_select %p232_p11, %s539_s18, 1  ;;  %vm267_vm0 = vcmask 261120  }
  0x15   : > { %277 = vmatpush.bf16.msra.mxu0 %v413_v0  ;;  %v252_v3 = vld [vmem:[%s687_s2] sm:$0x1]  ;;  %s483_s18 = sshra.s32 %s305_s10, 4  ;;  %s484_s18 = int_to_ptr.hbm [resolvable:$true] %s483_s18 }
  0x16   : > { %s397_s8 = sshll.u32 %s233_s7, 2  ;;  %v253_v4 = vunpack.c.l.bf16 %v252_v3  ;;  %s231_s7 = scalar_lea.vmem [#allocation2], %s396_s26 }
  0x17   : > { %s238_s11 = scalar_lea.vmem %s685_s0, %s397_s8  ;;  %s245_s24 = scalar_lea.vmem %s688_s3, %s397_s8 }
  0x18   : > { %v247_v2 = vld [vmem:[%s238_s11] sm:$0xf]  ;;  %v254_v6 = vperm.slane %v253_v4, 0  ;;  %s302_s9 = sshll.u32 %s231_s7, 4  ;;  %s289_s8 = scalar_lea.sflag [#allocation3], %s229_s14  ;;  %s303_s9 = int_to_ptr.vmem [resolvable:$true] %s302_s9 }
  0x19   : > { %278 = vmatpush.bf16.msra.mxu0 %v412_v1  ;;  %v284_v5 = vld [vmem:[%s245_s24] sm:$0xf]  ;;  %s485_s11 = scalar_lea.hbm %s484_s18, 8  ;;  %p490_p1 = scmp.lt.s32.totalorder %s484_s18, %s689_s4 }
  0x1a   : > { %v285_v7 = vunpack.c.l.bf16 %v284_v5  ;;  %p486_p12 = scmp.ne.s32.totalorder %s484_s18, %s485_s11  ;;  %p491_p2 = scmp.lt.s32.totalorder %s489_s21, %s485_s11 }
  0x1c   : > { %407 = vmatmul.msk.bf16.vlgmr.msra.gmra.mxu0 %vm267_vm0, %v247_v2  ;;  %p487_p13 = pnand %p486_p12, %p614_p4  ;;  %p492_p3 = por %p491_p2, %p490_p1 }
  0x1e   : > { %p488_p0 = pneg %p487_p13 }
  0x20   : > { %p493_p5 = pnand %p492_p3, %p488_p0 }
  0x99   : > { %v280_v8 = vpop.f32.mrf.mxu0 }
  0x9a   : > { %v281_v9 = vadd.f32 %v280_v8, %v254_v6 }
  0x9c   : > { %v286_v10 = vadd.f32 %v285_v7, %v281_v9 }
  0x9e   : > { %287 = vst.msk [vmem:[%s231_s7] sm:$0xff] %vm267_vm0, %v286_v10 }
  0x9f   : > { %496 = shalt.err (!%p493_p5)
}
  0xa0   : > { %414 = dma.vmem_to_hbm [thread:$0]  (%p614_p4), %s303_s9, 128, %s305_s10, %s289_s8  }
  0xa1   : > { %v282_v11 = vpop.f32.mrf.mxu0 }
  0xa2 PF: > { %p420_p6 = scmp.ge.s32.totalorder %s547_s20, 2  ;;  %s316_s14 = sand.u32 1, %s527_s15  }
  0xa3   : > { %s317_s26 = scalar_lea.sflag [#allocation3], %s316_s14 }
  0xa4   : > { %p417_p7 = pnand %p420_p6, %p621_p8 }
  0xa6   : > { %p418_p9 = pneg %p417_p7 }
  0xa8   : > { %522 = dma.done.wait (%p418_p9), %s317_s26, 128  }
  0xa9   : > { %524 = vsyncadd (%p418_p9), %s317_s26, 4294967168  ;;  %s17_s20 = sadd.s32 1, %s547_s20   ;;  %s692_s15 = smov %s531_s16 }
  0xaa   : > { %p14_p10 = scmp.ge.s32.totalorder %s17_s20, 4   ;;  %s693_s16 = smov %s535_s17 }
  0xab   : > { %s694_s17 = smov %s627_s28  ;;  %s695_s18 = smov %s543_s19 }
  0xac   : > { %s696_s19 = smov %s698_s23  ;;  %16 = sbr.rel (!%p14_p10) target bundleno = 4 (0x4), region = 74 }
  0xb1   :  { %323 = vsyncpa [#allocation3], 1 }
  0xb2   :  { %325 = vsyncpa [#allocation3 + $0x1], 1 }

</bundles_post_ra>
